<compile_context>
chip_gen: v7x
topology: tpu7x:2x2x1
jax: 0.10.0
libtpu: 0.0.40
codegen_flags: <defaults>
</compile_context>

<pallas_src>
import jax
import jax.numpy as jnp
from jax import lax
from jax.experimental import pallas as pl
from jax.experimental.pallas import tpu as pltpu


# ---------------------------------------------------------------------------
# Kernel 1: fused conv1 + pool1 + relu + conv2 + pool2 + relu  (one batch elt)
# ---------------------------------------------------------------------------

def _conv_pool_kernel(x_ref, p1_ref, a10_ref, a11_ref, b1_ref, s1e_ref, s1o_ref,
                      p2_ref, a20_ref, a21_ref, b2_ref, s2e_ref, s2o_ref, o_ref):
    f32 = jnp.float32
    bf16 = jnp.bfloat16

    x = x_ref[...].astype(bf16)                                           # (256, 128) = (H, W)

    # ---- stage 1: conv1 (2x2 stride 2, 1->4) + maxpool 2x2 + relu ------------------
    # Row gather via one bf16 MXU matmul: xs[k*64 + i, :] = x[4*i + k, :].
    xs = jnp.dot(p1_ref[...], x, preferred_element_type=f32).astype(bf16)  # (256, 128)
    x0, x1, x2, x3 = xs[0:64], xs[64:128], xs[128:192], xs[192:256]
    # A1_a[r, w*4+c] = sum_b [r == 2w+b] * K1[c, a, b]; top/bot = conv rows 2i / 2i+1.
    top = (jnp.dot(x0, a10_ref[...], preferred_element_type=f32)
           + jnp.dot(x1, a11_ref[...], preferred_element_type=f32))        # (64, 256)
    bot = (jnp.dot(x2, a10_ref[...], preferred_element_type=f32)
           + jnp.dot(x3, a11_ref[...], preferred_element_type=f32))
    v = (jnp.maximum(top, bot) + b1_ref[...]).astype(bf16)                 # (64, 256): (i, w*4+c)
    z1 = jnp.maximum(
        jnp.maximum(jnp.dot(v, s1e_ref[...], preferred_element_type=f32),
                    jnp.dot(v, s1o_ref[...], preferred_element_type=f32)),
        0.0).astype(bf16)                                                  # (64, 128): (i, j*4+c)

    # ---- stage 2: conv2 (2x2 stride 2, 4->8) + maxpool 2x2 + relu ------------------
    zs = jnp.dot(p2_ref[...], z1, preferred_element_type=f32).astype(bf16)  # (64, 128) row gather
    y0, y1, y2, y3 = zs[0:16], zs[16:32], zs[32:48], zs[48:64]
    top2 = (jnp.dot(y0, a20_ref[...], preferred_element_type=f32)
            + jnp.dot(y1, a21_ref[...], preferred_element_type=f32))        # (16, 128)
    bot2 = (jnp.dot(y2, a20_ref[...], preferred_element_type=f32)
            + jnp.dot(y3, a21_ref[...], preferred_element_type=f32))
    w2 = (jnp.maximum(top2, bot2) + b2_ref[...]).astype(bf16)               # (16, 128): (s, q*8+d)
    z2 = jnp.maximum(
        jnp.maximum(jnp.dot(w2, s2e_ref[...], preferred_element_type=f32),
                    jnp.dot(w2, s2o_ref[...], preferred_element_type=f32)),
        0.0)                                                                # (16, 64): (s, t*8+d)
    o_ref[...] = z2


def _conv_pool_call(x, kp):
    bs = x.shape[0]

    def aux(shape):
        return pl.BlockSpec(shape, lambda *_: (0,) * len(shape))

    return pl.pallas_call(
        _conv_pool_kernel,
        out_shape=jax.ShapeDtypeStruct((bs, 16, 64), jnp.float32),
        grid=(bs,),
        in_specs=[
            pl.BlockSpec((None, 256, 128), lambda b: (b, 0, 0)),
            aux((256, 256)),                    # P1 row-gather permutation
            aux((128, 256)), aux((128, 256)),   # A1_0, A1_1 conv1 matrices
            aux((1, 256)),                      # conv1 bias (channel-tiled)
            aux((256, 128)), aux((256, 128)),   # S1e, S1o column-pool selectors
            aux((64, 64)),                      # P2 row-gather permutation
            aux((128, 128)), aux((128, 128)),   # A2_0, A2_1 conv2 matrices
            aux((1, 128)),                      # conv2 bias (channel-tiled)
            aux((128, 64)), aux((128, 64)),     # S2e, S2o column-pool selectors
        ],
        out_specs=pl.BlockSpec((None, 16, 64), lambda b: (b, 0, 0)),
        compiler_params=pltpu.CompilerParams(dimension_semantics=("parallel",)),
    )(x, kp["P1"], kp["A1_0"], kp["A1_1"], kp["b1b"], kp["S1e"], kp["S1o"],
      kp["P2"], kp["A2_0"], kp["A2_1"], kp["b2b"], kp["S2e"], kp["S2o"])


# ---------------------------------------------------------------------------
# Kernel 2: fused BatchNorm2d + fc1/relu + fc2/relu + fc3 + log_softmax
# ---------------------------------------------------------------------------

def _bn_mlp_kernel(x_ref, g_ref, gt_ref, gam_ref, bet_ref,
                   w1_ref, b1_ref, w2_ref, b2_ref, w3_ref, b3_ref, o_ref):
    f32 = jnp.float32
    bf16 = jnp.bfloat16
    x = x_ref[...]                                    # (bs, 1024), col = s*64 + t*8 + d
    cnt = float(x.shape[0] * 128)                     # N*H*W elements per channel

    # BatchNorm2d(8), training-mode biased batch statistics.  Channel of column = col%8;
    # per-channel reduce via 0/1 gather matrix G (1024, 8), broadcast back via G^T.
    colsum = jnp.sum(x, axis=0, keepdims=True)                                 # (1, 1024)
    ch_mean = jnp.dot(colsum, g_ref[...], preferred_element_type=f32) / cnt    # (1, 8)
    mean_b = jnp.dot(ch_mean, gt_ref[...], preferred_element_type=f32)         # (1, 1024)
    xc = x - mean_b
    colsq = jnp.sum(xc * xc, axis=0, keepdims=True)
    ch_var = jnp.dot(colsq, g_ref[...], preferred_element_type=f32) / cnt      # (1, 8)
    inv_b = jnp.dot(lax.rsqrt(ch_var + 1e-5), gt_ref[...],
                    preferred_element_type=f32)                                # (1, 1024)
    xb = xc * inv_b * gam_ref[...] + bet_ref[...]

    # fc1 -> relu -> fc2 -> relu -> fc3 -> log_softmax (bf16 weights, f32 accumulation).
    h = jnp.dot(xb.astype(bf16), w1_ref[...], preferred_element_type=f32) + b1_ref[...]
    h = jnp.maximum(h, 0.0)
    h = jnp.dot(h.astype(bf16), w2_ref[...], preferred_element_type=f32) + b2_ref[...]
    h = jnp.maximum(h, 0.0)
    logits = jnp.dot(h.astype(bf16), w3_ref[...], preferred_element_type=f32) + b3_ref[...]
    s = logits - jnp.max(logits, axis=1, keepdims=True)
    lse = jnp.log(jnp.sum(jnp.exp(s), axis=1, keepdims=True))
    o_ref[...] = s - lse


def _bn_mlp_call(act, kp):
    bs = act.shape[0]
    vspec = pl.BlockSpec(memory_space=pltpu.MemorySpace.VMEM)
    # TODO(synk): for very large bs this single-block kernel would need row tiling plus a
    # two-pass BatchNorm reduction; at these sizes it is fc1-weight-DMA bound.
    return pl.pallas_call(
        _bn_mlp_kernel,
        out_shape=jax.ShapeDtypeStruct((bs, 10), jnp.float32),
        in_specs=[vspec] * 11,
        out_specs=vspec,
    )(act, kp["G"], kp["GT"], kp["gam_b"], kp["bet_b"],
      kp["fc1_wp"], kp["fc1_b"], kp["fc2_w"], kp["fc2_b"], kp["fc3_w"], kp["fc3_b"])


# ------------------------------- glue (JAX) ---------------------------------

def feature_net_forward(x, kp):
    bs = x.shape[0]
    # x.view(bs, 1, 256, 128); C == 1 so dropping the channel dim is layout-free.
    x = x.reshape(bs, 256, 128).astype(jnp.float32)
    act = _conv_pool_call(x, kp)              # (bs, 16, 64), layout (s, t*8 + d)
    act = act.reshape(bs, 1024)               # col = s*64 + t*8 + d (perm folded into fc1)
    return _bn_mlp_call(act, kp)


def init_params(key):
    ks = jax.random.split(key, 10)

    def u(k, shape, fan_in):
        bound = 1.0 / jnp.sqrt(jnp.float32(fan_in))
        return jax.random.uniform(k, shape, jnp.float32, -bound, bound)

    return dict(
        conv1_w=u(ks[0], (4, 1, 2, 2), 4),       # OIHW
        conv1_b=u(ks[1], (1, 4), 4),
        conv2_w=u(ks[2], (8, 4, 2, 2), 16),
        conv2_b=u(ks[3], (1, 8), 16),
        bn_gamma=jnp.ones((8,), jnp.float32),
        bn_beta=jnp.zeros((8,), jnp.float32),
        fc1_w=u(ks[4], (1024, 512), 1024),       # stored as (in, out) == PyTorch W.T
        fc1_b=u(ks[5], (1, 512), 1024),
        fc2_w=u(ks[6], (512, 256), 512),
        fc2_b=u(ks[7], (1, 256), 512),
        fc3_w=u(ks[8], (256, 10), 256),
        fc3_b=u(ks[9], (1, 10), 256),
    )


def prepare_params(p):
    """One-time conversion of PyTorch-style params into kernel-ready operands."""
    f32 = jnp.float32
    bf16 = jnp.bfloat16

    # ---- stage 1: conv1 horizontal matrices + column-pool selectors ----
    k1 = p["conv1_w"][:, 0]                                    # (cout=4, kh=2, kw=2)
    rv = jnp.arange(128)
    wv = jnp.arange(64)
    e0 = (rv[:, None] == 2 * wv[None, :]).astype(f32)          # (128, 64)
    e1 = (rv[:, None] == 2 * wv[None, :] + 1).astype(f32)

    def conv1_mat(a):
        # A1_a[r, w*4+c] = sum_b [r == 2w+b] * k1[c, a, b]
        return (e0[:, :, None] * k1[None, None, :, a, 0]
                + e1[:, :, None] * k1[None, None, :, a, 1]).reshape(128, 256)

    jv = jnp.arange(32)
    se = (wv[:, None] == 2 * jv[None, :]).astype(f32)          # (64, 32)
    so = (wv[:, None] == 2 * jv[None, :] + 1).astype(f32)
    eye4 = jnp.eye(4, dtype=f32)
    S1e = (se[:, None, :, None] * eye4[None, :, None, :]).reshape(256, 128)
    S1o = (so[:, None, :, None] * eye4[None, :, None, :]).reshape(256, 128)

    # ---- stage 2: conv2 horizontal matrices + column-pool selectors ----
    k2 = p["conv2_w"]                                          # (d=8, c=4, kh=2, kw=2)
    qv = jnp.arange(16)
    f0 = (jv[:, None] == 2 * qv[None, :]).astype(f32)          # (32, 16)
    f1 = (jv[:, None] == 2 * qv[None, :] + 1).astype(f32)

    def conv2_mat(a):
        # A2_a[j*4+c, q*8+d] = sum_b [j == 2q+b] * k2[d, c, a, b]
        kcd0 = jnp.transpose(k2[:, :, a, 0])                   # (c, d)
        kcd1 = jnp.transpose(k2[:, :, a, 1])
        return (f0[:, None, :, None] * kcd0[None, :, None, :]
                + f1[:, None, :, None] * kcd1[None, :, None, :]).reshape(128, 128)

    tv = jnp.arange(8)
    g0 = (qv[:, None] == 2 * tv[None, :]).astype(f32)          # (16, 8)
    g1 = (qv[:, None] == 2 * tv[None, :] + 1).astype(f32)
    eye8 = jnp.eye(8, dtype=f32)
    S2e = (g0[:, None, :, None] * eye8[None, :, None, :]).reshape(128, 64)
    S2o = (g1[:, None, :, None] * eye8[None, :, None, :]).reshape(128, 64)

    # ---- every-4th-row gather permutations (row-pair structure of conv+pool folded
    #      into one bf16 MXU matmul per stage; sliced at vreg-aligned offsets) ----
    kk = jnp.arange(4)
    iv = jnp.arange(64)
    r256 = jnp.arange(256)
    P1 = (r256[None, None, :] == 4 * iv[None, :, None] + kk[:, None, None]
          ).astype(f32).reshape(256, 256)                      # [k*64+i, r] = [r == 4i+k]
    sv = jnp.arange(16)
    r64 = jnp.arange(64)
    P2 = (r64[None, None, :] == 4 * sv[None, :, None] + kk[:, None, None]
          ).astype(f32).reshape(64, 64)                        # [k*16+s, r] = [r == 4s+k]

    # ---- BatchNorm channel gather/broadcast for the (s*64 + t*8 + d) column layout ----
    col = jnp.arange(1024)
    G = (col[:, None] % 8 == jnp.arange(8)[None, :]).astype(f32)   # (1024, 8)

    # Fold the NCHW flatten permutation (PyTorch index d*128 + s*8 + t) into fc1 rows.
    s_i = col // 64
    t_i = (col % 64) // 8
    d_i = col % 8
    perm = d_i * 128 + s_i * 8 + t_i
    fc1_wp = p["fc1_w"][perm, :].astype(bf16)

    return dict(
        P1=P1.astype(bf16),
        A1_0=conv1_mat(0).astype(bf16), A1_1=conv1_mat(1).astype(bf16),
        b1b=jnp.tile(p["conv1_b"].reshape(-1), 64).reshape(1, 256),
        S1e=S1e.astype(bf16), S1o=S1o.astype(bf16),
        P2=P2.astype(bf16),
        A2_0=conv2_mat(0).astype(bf16), A2_1=conv2_mat(1).astype(bf16),
        b2b=jnp.tile(p["conv2_b"].reshape(-1), 16).reshape(1, 128),
        S2e=S2e.astype(bf16), S2o=S2o.astype(bf16),
        G=G, GT=G.T,
        gam_b=jnp.tile(p["bn_gamma"].reshape(-1), 128).reshape(1, 1024),
        bet_b=jnp.tile(p["bn_beta"].reshape(-1), 128).reshape(1, 1024),
        fc1_wp=fc1_wp, fc1_b=p["fc1_b"],
        fc2_w=p["fc2_w"].astype(bf16), fc2_b=p["fc2_b"],
        fc3_w=p["fc3_w"].astype(bf16), fc3_b=p["fc3_b"],
    )


def reference_forward(x, p):
    """Pure-JAX (XLA) reference mirroring the PyTorch module, all f32."""
    bs = x.shape[0]
    y = x.reshape(bs, 1, 256, 128)
    y = lax.conv_general_dilated(y, p["conv1_w"], (2, 2), "VALID",
                                 dimension_numbers=("NCHW", "OIHW", "NCHW"))
    y = y + p["conv1_b"].reshape(1, 4, 1, 1)
    b, c, h, w = y.shape
    y = jnp.maximum(y.reshape(b, c, h // 2, 2, w // 2, 2).max(axis=(3, 5)), 0.0)
    y = lax.conv_general_dilated(y, p["conv2_w"], (2, 2), "VALID",
                                 dimension_numbers=("NCHW", "OIHW", "NCHW"))
    y = y + p["conv2_b"].reshape(1, 8, 1, 1)
    b, c, h, w = y.shape
    y = jnp.maximum(y.reshape(b, c, h // 2, 2, w // 2, 2).max(axis=(3, 5)), 0.0)
    mean = jnp.mean(y, axis=(0, 2, 3), keepdims=True)
    var = jnp.mean((y - mean) ** 2, axis=(0, 2, 3), keepdims=True)
    y = (y - mean) * lax.rsqrt(var + 1e-5)
    y = y * p["bn_gamma"].reshape(1, 8, 1, 1) + p["bn_beta"].reshape(1, 8, 1, 1)
    y = y.reshape(bs, 1024)
    h1 = jnp.maximum(y @ p["fc1_w"] + p["fc1_b"], 0.0)
    h2 = jnp.maximum(h1 @ p["fc2_w"] + p["fc2_b"], 0.0)
    logits = h2 @ p["fc3_w"] + p["fc3_b"]
    return jax.nn.log_softmax(logits, axis=1)


if __name__ == "__main__":
    key = jax.random.PRNGKey(0)
    kx, kp = jax.random.split(key)
    bs = 2
    # Architecture fixes spatial size: input must reshape to (bs, 1, 256, 128).
    x = jax.random.normal(kx, (bs, 1, 256, 128), jnp.float32)
    params = init_params(kp)
    kparams = prepare_params(params)

    fwd = jax.jit(feature_net_forward)
    out = jax.block_until_ready(fwd(x, kparams))

    assert out.shape == (bs, 10) and out.dtype == jnp.float32
    # log_softmax rows should (approximately) sum to 1 in probability space
    assert bool(jnp.all(jnp.abs(jnp.sum(jnp.exp(out), axis=1) - 1.0) < 1e-3))
    # validate against the pure-JAX f32 reference (loose tol: both conv and MLP matmuls
    # run with bf16 operands / f32 accumulation inside the kernels)
    ref = reference_forward(x, params)
    err = float(jnp.max(jnp.abs(out - ref)))
    assert err < 0.25, f"mismatch vs reference: {err}"
    print("KERNEL_OK")
</pallas_src>

<mosaic_0001>
module attributes {stable_mosaic.version = 11 : i64} {
  func.func @_conv_pool_kernel(%arg0: i32, %arg1: memref<1x256x128xf32, #tpu.memory_space<vmem>>, %arg2: memref<256x256xbf16, #tpu.memory_space<vmem>>, %arg3: memref<128x256xbf16, #tpu.memory_space<vmem>>, %arg4: memref<128x256xbf16, #tpu.memory_space<vmem>>, %arg5: memref<1x256xf32, #tpu.memory_space<vmem>>, %arg6: memref<256x128xbf16, #tpu.memory_space<vmem>>, %arg7: memref<256x128xbf16, #tpu.memory_space<vmem>>, %arg8: memref<64x64xbf16, #tpu.memory_space<vmem>>, %arg9: memref<128x128xbf16, #tpu.memory_space<vmem>>, %arg10: memref<128x128xbf16, #tpu.memory_space<vmem>>, %arg11: memref<1x128xf32, #tpu.memory_space<vmem>>, %arg12: memref<128x64xbf16, #tpu.memory_space<vmem>>, %arg13: memref<128x64xbf16, #tpu.memory_space<vmem>>, %arg14: memref<1x16x64xf32, #tpu.memory_space<vmem>>) attributes {dimension_semantics = [#tpu.dimension_semantics<parallel>], iteration_bounds = array<i64: 2>, scalar_prefetch = 0 : i64, scratch_operands = 0 : i64, tpu.core_type = #tpu.core_type<tc>, window_params = [{transform_indices = @transform_0, window_bounds = array<i64: 1, 256, 128>}, {pipeline_mode = #tpu.pipeline_mode<synchronous>, transform_indices = @transform_1, window_bounds = array<i64: 256, 256>}, {pipeline_mode = #tpu.pipeline_mode<synchronous>, transform_indices = @transform_2, window_bounds = array<i64: 128, 256>}, {pipeline_mode = #tpu.pipeline_mode<synchronous>, transform_indices = @transform_3, window_bounds = array<i64: 128, 256>}, {pipeline_mode = #tpu.pipeline_mode<synchronous>, transform_indices = @transform_4, window_bounds = array<i64: 1, 256>}, {pipeline_mode = #tpu.pipeline_mode<synchronous>, transform_indices = @transform_5, window_bounds = array<i64: 256, 128>}, {pipeline_mode = #tpu.pipeline_mode<synchronous>, transform_indices = @transform_6, window_bounds = array<i64: 256, 128>}, {pipeline_mode = #tpu.pipeline_mode<synchronous>, transform_indices = @transform_7, window_bounds = array<i64: 64, 64>}, {pipeline_mode = #tpu.pipeline_mode<synchronous>, transform_indices = @transform_8, window_bounds = array<i64: 128, 128>}, {pipeline_mode = #tpu.pipeline_mode<synchronous>, transform_indices = @transform_9, window_bounds = array<i64: 128, 128>}, {pipeline_mode = #tpu.pipeline_mode<synchronous>, transform_indices = @transform_10, window_bounds = array<i64: 1, 128>}, {pipeline_mode = #tpu.pipeline_mode<synchronous>, transform_indices = @transform_11, window_bounds = array<i64: 128, 64>}, {pipeline_mode = #tpu.pipeline_mode<synchronous>, transform_indices = @transform_12, window_bounds = array<i64: 128, 64>}, {transform_indices = @transform_13, window_bounds = array<i64: 1, 16, 64>}]} {
    %c0 = arith.constant 0 : index
    %c0_0 = arith.constant 0 : index
    %c0_1 = arith.constant 0 : index
    %0 = vector.load %arg1[%c0, %c0_0, %c0_1] : memref<1x256x128xf32, #tpu.memory_space<vmem>>, vector<1x256x128xf32>
    %1 = vector.shape_cast %0 : vector<1x256x128xf32> to vector<256x128xf32>
    %2 = arith.truncf %1 : vector<256x128xf32> to vector<256x128xbf16>
    %c0_2 = arith.constant 0 : index
    %c0_3 = arith.constant 0 : index
    %3 = vector.load %arg2[%c0_2, %c0_3] : memref<256x256xbf16, #tpu.memory_space<vmem>>, vector<256x256xbf16>
    %cst = arith.constant dense<0.000000e+00> : vector<256x128xf32>
    %4 = tpu.matmul %3, %2, %cst {dimension_numbers = #tpu.dot_dimension_numbers<[1], [0], [0], [1], [0, 0, 1, 1], [], []>} : vector<256x256xbf16>, vector<256x128xbf16>, vector<256x128xf32> -> vector<256x128xf32>
    %5 = arith.truncf %4 : vector<256x128xf32> to vector<256x128xbf16>
    %6 = vector.extract_strided_slice %5 {offsets = [0, 0], sizes = [64, 128], strides = [1, 1]} : vector<256x128xbf16> to vector<64x128xbf16>
    %7 = vector.extract_strided_slice %5 {offsets = [64, 0], sizes = [64, 128], strides = [1, 1]} : vector<256x128xbf16> to vector<64x128xbf16>
    %8 = vector.extract_strided_slice %5 {offsets = [128, 0], sizes = [64, 128], strides = [1, 1]} : vector<256x128xbf16> to vector<64x128xbf16>
    %9 = vector.extract_strided_slice %5 {offsets = [192, 0], sizes = [64, 128], strides = [1, 1]} : vector<256x128xbf16> to vector<64x128xbf16>
    %c0_4 = arith.constant 0 : index
    %c0_5 = arith.constant 0 : index
    %10 = vector.load %arg3[%c0_4, %c0_5] : memref<128x256xbf16, #tpu.memory_space<vmem>>, vector<128x256xbf16>
    %cst_6 = arith.constant dense<0.000000e+00> : vector<64x256xf32>
    %11 = tpu.matmul %6, %10, %cst_6 {dimension_numbers = #tpu.dot_dimension_numbers<[1], [0], [0], [1], [0, 0, 1, 1], [], []>} : vector<64x128xbf16>, vector<128x256xbf16>, vector<64x256xf32> -> vector<64x256xf32>
    %c0_7 = arith.constant 0 : index
    %c0_8 = arith.constant 0 : index
    %12 = vector.load %arg4[%c0_7, %c0_8] : memref<128x256xbf16, #tpu.memory_space<vmem>>, vector<128x256xbf16>
    %cst_9 = arith.constant dense<0.000000e+00> : vector<64x256xf32>
    %13 = tpu.matmul %7, %12, %cst_9 {dimension_numbers = #tpu.dot_dimension_numbers<[1], [0], [0], [1], [0, 0, 1, 1], [], []>} : vector<64x128xbf16>, vector<128x256xbf16>, vector<64x256xf32> -> vector<64x256xf32>
    %14 = arith.addf %11, %13 : vector<64x256xf32>
    %c0_10 = arith.constant 0 : index
    %c0_11 = arith.constant 0 : index
    %15 = vector.load %arg3[%c0_10, %c0_11] : memref<128x256xbf16, #tpu.memory_space<vmem>>, vector<128x256xbf16>
    %cst_12 = arith.constant dense<0.000000e+00> : vector<64x256xf32>
    %16 = tpu.matmul %8, %15, %cst_12 {dimension_numbers = #tpu.dot_dimension_numbers<[1], [0], [0], [1], [0, 0, 1, 1], [], []>} : vector<64x128xbf16>, vector<128x256xbf16>, vector<64x256xf32> -> vector<64x256xf32>
    %c0_13 = arith.constant 0 : index
    %c0_14 = arith.constant 0 : index
    %17 = vector.load %arg4[%c0_13, %c0_14] : memref<128x256xbf16, #tpu.memory_space<vmem>>, vector<128x256xbf16>
    %cst_15 = arith.constant dense<0.000000e+00> : vector<64x256xf32>
    %18 = tpu.matmul %9, %17, %cst_15 {dimension_numbers = #tpu.dot_dimension_numbers<[1], [0], [0], [1], [0, 0, 1, 1], [], []>} : vector<64x128xbf16>, vector<128x256xbf16>, vector<64x256xf32> -> vector<64x256xf32>
    %19 = arith.addf %16, %18 : vector<64x256xf32>
    %20 = arith.maximumf %14, %19 : vector<64x256xf32>
    %c0_16 = arith.constant 0 : index
    %c0_17 = arith.constant 0 : index
    %21 = vector.load %arg5[%c0_16, %c0_17] : memref<1x256xf32, #tpu.memory_space<vmem>>, vector<1x256xf32>
    %22 = vector.broadcast %21 : vector<1x256xf32> to vector<64x256xf32>
    %23 = arith.addf %20, %22 : vector<64x256xf32>
    %24 = arith.truncf %23 : vector<64x256xf32> to vector<64x256xbf16>
    %c0_18 = arith.constant 0 : index
    %c0_19 = arith.constant 0 : index
    %25 = vector.load %arg6[%c0_18, %c0_19] : memref<256x128xbf16, #tpu.memory_space<vmem>>, vector<256x128xbf16>
    %cst_20 = arith.constant dense<0.000000e+00> : vector<64x128xf32>
    %26 = tpu.matmul %24, %25, %cst_20 {dimension_numbers = #tpu.dot_dimension_numbers<[1], [0], [0], [1], [0, 0, 1, 1], [], []>} : vector<64x256xbf16>, vector<256x128xbf16>, vector<64x128xf32> -> vector<64x128xf32>
    %c0_21 = arith.constant 0 : index
    %c0_22 = arith.constant 0 : index
    %27 = vector.load %arg7[%c0_21, %c0_22] : memref<256x128xbf16, #tpu.memory_space<vmem>>, vector<256x128xbf16>
    %cst_23 = arith.constant dense<0.000000e+00> : vector<64x128xf32>
    %28 = tpu.matmul %24, %27, %cst_23 {dimension_numbers = #tpu.dot_dimension_numbers<[1], [0], [0], [1], [0, 0, 1, 1], [], []>} : vector<64x256xbf16>, vector<256x128xbf16>, vector<64x128xf32> -> vector<64x128xf32>
    %29 = arith.maximumf %26, %28 : vector<64x128xf32>
    %cst_24 = arith.constant 0.000000e+00 : f32
    %30 = vector.broadcast %cst_24 : f32 to vector<64x128xf32>
    %31 = arith.maximumf %29, %30 : vector<64x128xf32>
    %32 = arith.truncf %31 : vector<64x128xf32> to vector<64x128xbf16>
    %c0_25 = arith.constant 0 : index
    %c0_26 = arith.constant 0 : index
    %33 = vector.load %arg8[%c0_25, %c0_26] : memref<64x64xbf16, #tpu.memory_space<vmem>>, vector<64x64xbf16>
    %cst_27 = arith.constant dense<0.000000e+00> : vector<64x128xf32>
    %34 = tpu.matmul %33, %32, %cst_27 {dimension_numbers = #tpu.dot_dimension_numbers<[1], [0], [0], [1], [0, 0, 1, 1], [], []>} : vector<64x64xbf16>, vector<64x128xbf16>, vector<64x128xf32> -> vector<64x128xf32>
    %35 = arith.truncf %34 : vector<64x128xf32> to vector<64x128xbf16>
    %36 = vector.extract_strided_slice %35 {offsets = [0, 0], sizes = [16, 128], strides = [1, 1]} : vector<64x128xbf16> to vector<16x128xbf16>
    %37 = vector.extract_strided_slice %35 {offsets = [16, 0], sizes = [16, 128], strides = [1, 1]} : vector<64x128xbf16> to vector<16x128xbf16>
    %38 = vector.extract_strided_slice %35 {offsets = [32, 0], sizes = [16, 128], strides = [1, 1]} : vector<64x128xbf16> to vector<16x128xbf16>
    %39 = vector.extract_strided_slice %35 {offsets = [48, 0], sizes = [16, 128], strides = [1, 1]} : vector<64x128xbf16> to vector<16x128xbf16>
    %c0_28 = arith.constant 0 : index
    %c0_29 = arith.constant 0 : index
    %40 = vector.load %arg9[%c0_28, %c0_29] : memref<128x128xbf16, #tpu.memory_space<vmem>>, vector<128x128xbf16>
    %cst_30 = arith.constant dense<0.000000e+00> : vector<16x128xf32>
    %41 = tpu.matmul %36, %40, %cst_30 {dimension_numbers = #tpu.dot_dimension_numbers<[1], [0], [0], [1], [0, 0, 1, 1], [], []>} : vector<16x128xbf16>, vector<128x128xbf16>, vector<16x128xf32> -> vector<16x128xf32>
    %c0_31 = arith.constant 0 : index
    %c0_32 = arith.constant 0 : index
    %42 = vector.load %arg10[%c0_31, %c0_32] : memref<128x128xbf16, #tpu.memory_space<vmem>>, vector<128x128xbf16>
    %cst_33 = arith.constant dense<0.000000e+00> : vector<16x128xf32>
    %43 = tpu.matmul %37, %42, %cst_33 {dimension_numbers = #tpu.dot_dimension_numbers<[1], [0], [0], [1], [0, 0, 1, 1], [], []>} : vector<16x128xbf16>, vector<128x128xbf16>, vector<16x128xf32> -> vector<16x128xf32>
    %44 = arith.addf %41, %43 : vector<16x128xf32>
    %c0_34 = arith.constant 0 : index
    %c0_35 = arith.constant 0 : index
    %45 = vector.load %arg9[%c0_34, %c0_35] : memref<128x128xbf16, #tpu.memory_space<vmem>>, vector<128x128xbf16>
    %cst_36 = arith.constant dense<0.000000e+00> : vector<16x128xf32>
    %46 = tpu.matmul %38, %45, %cst_36 {dimension_numbers = #tpu.dot_dimension_numbers<[1], [0], [0], [1], [0, 0, 1, 1], [], []>} : vector<16x128xbf16>, vector<128x128xbf16>, vector<16x128xf32> -> vector<16x128xf32>
    %c0_37 = arith.constant 0 : index
    %c0_38 = arith.constant 0 : index
    %47 = vector.load %arg10[%c0_37, %c0_38] : memref<128x128xbf16, #tpu.memory_space<vmem>>, vector<128x128xbf16>
    %cst_39 = arith.constant dense<0.000000e+00> : vector<16x128xf32>
    %48 = tpu.matmul %39, %47, %cst_39 {dimension_numbers = #tpu.dot_dimension_numbers<[1], [0], [0], [1], [0, 0, 1, 1], [], []>} : vector<16x128xbf16>, vector<128x128xbf16>, vector<16x128xf32> -> vector<16x128xf32>
    %49 = arith.addf %46, %48 : vector<16x128xf32>
    %50 = arith.maximumf %44, %49 : vector<16x128xf32>
    %c0_40 = arith.constant 0 : index
    %c0_41 = arith.constant 0 : index
    %51 = vector.load %arg11[%c0_40, %c0_41] : memref<1x128xf32, #tpu.memory_space<vmem>>, vector<1x128xf32>
    %52 = vector.broadcast %51 : vector<1x128xf32> to vector<16x128xf32>
    %53 = arith.addf %50, %52 : vector<16x128xf32>
    %54 = arith.truncf %53 : vector<16x128xf32> to vector<16x128xbf16>
    %c0_42 = arith.constant 0 : index
    %c0_43 = arith.constant 0 : index
    %55 = vector.load %arg12[%c0_42, %c0_43] : memref<128x64xbf16, #tpu.memory_space<vmem>>, vector<128x64xbf16>
    %cst_44 = arith.constant dense<0.000000e+00> : vector<16x64xf32>
    %56 = tpu.matmul %54, %55, %cst_44 {dimension_numbers = #tpu.dot_dimension_numbers<[1], [0], [0], [1], [0, 0, 1, 1], [], []>} : vector<16x128xbf16>, vector<128x64xbf16>, vector<16x64xf32> -> vector<16x64xf32>
    %c0_45 = arith.constant 0 : index
    %c0_46 = arith.constant 0 : index
    %57 = vector.load %arg13[%c0_45, %c0_46] : memref<128x64xbf16, #tpu.memory_space<vmem>>, vector<128x64xbf16>
    %cst_47 = arith.constant dense<0.000000e+00> : vector<16x64xf32>
    %58 = tpu.matmul %54, %57, %cst_47 {dimension_numbers = #tpu.dot_dimension_numbers<[1], [0], [0], [1], [0, 0, 1, 1], [], []>} : vector<16x128xbf16>, vector<128x64xbf16>, vector<16x64xf32> -> vector<16x64xf32>
    %59 = arith.maximumf %56, %58 : vector<16x64xf32>
    %cst_48 = arith.constant 0.000000e+00 : f32
    %60 = vector.broadcast %cst_48 : f32 to vector<16x64xf32>
    %61 = arith.maximumf %59, %60 : vector<16x64xf32>
    %c0_49 = arith.constant 0 : index
    %c0_50 = arith.constant 0 : index
    %c0_51 = arith.constant 0 : index
    %62 = vector.load %arg14[%c0_49, %c0_50, %c0_51] : memref<1x16x64xf32, #tpu.memory_space<vmem>>, vector<1x16x64xf32>
    %63 = vector.shape_cast %62 : vector<1x16x64xf32> to vector<16x64xf32>
    %64 = vector.shape_cast %61 : vector<16x64xf32> to vector<1x16x64xf32>
    tpu.vector_store %arg14[%c0_49, %c0_50, %c0_51], %64 {strides = array<i32>} : memref<1x16x64xf32, #tpu.memory_space<vmem>>, vector<1x16x64xf32>,
    return
  }
  func.func @transform_0(%arg0: i32) -> (i32, i32, i32) {
    %c0_i32 = arith.constant 0 : i32
    %c0_i32_0 = arith.constant 0 : i32
    %c0_i32_1 = arith.constant 0 : i32
    return %arg0, %c0_i32, %c0_i32_0 : i32, i32, i32
  }
  func.func @transform_1(%arg0: i32) -> (i32, i32) {
    %c0_i32 = arith.constant 0 : i32
    %c0_i32_0 = arith.constant 0 : i32
    %c0_i32_1 = arith.constant 0 : i32
    return %c0_i32, %c0_i32_0 : i32, i32
  }
  func.func @transform_2(%arg0: i32) -> (i32, i32) {
    %c0_i32 = arith.constant 0 : i32
    %c0_i32_0 = arith.constant 0 : i32
    %c0_i32_1 = arith.constant 0 : i32
    return %c0_i32, %c0_i32_0 : i32, i32
  }
  func.func @transform_3(%arg0: i32) -> (i32, i32) {
    %c0_i32 = arith.constant 0 : i32
    %c0_i32_0 = arith.constant 0 : i32
    %c0_i32_1 = arith.constant 0 : i32
    return %c0_i32, %c0_i32_0 : i32, i32
  }
  func.func @transform_4(%arg0: i32) -> (i32, i32) {
    %c0_i32 = arith.constant 0 : i32
    %c0_i32_0 = arith.constant 0 : i32
    %c0_i32_1 = arith.constant 0 : i32
    return %c0_i32, %c0_i32_0 : i32, i32
  }
  func.func @transform_5(%arg0: i32) -> (i32, i32) {
    %c0_i32 = arith.constant 0 : i32
    %c0_i32_0 = arith.constant 0 : i32
    %c0_i32_1 = arith.constant 0 : i32
    return %c0_i32, %c0_i32_0 : i32, i32
  }
  func.func @transform_6(%arg0: i32) -> (i32, i32) {
    %c0_i32 = arith.constant 0 : i32
    %c0_i32_0 = arith.constant 0 : i32
    %c0_i32_1 = arith.constant 0 : i32
    return %c0_i32, %c0_i32_0 : i32, i32
  }
  func.func @transform_7(%arg0: i32) -> (i32, i32) {
    %c0_i32 = arith.constant 0 : i32
    %c0_i32_0 = arith.constant 0 : i32
    %c0_i32_1 = arith.constant 0 : i32
    return %c0_i32, %c0_i32_0 : i32, i32
  }
  func.func @transform_8(%arg0: i32) -> (i32, i32) {
    %c0_i32 = arith.constant 0 : i32
    %c0_i32_0 = arith.constant 0 : i32
    %c0_i32_1 = arith.constant 0 : i32
    return %c0_i32, %c0_i32_0 : i32, i32
  }
  func.func @transform_9(%arg0: i32) -> (i32, i32) {
    %c0_i32 = arith.constant 0 : i32
    %c0_i32_0 = arith.constant 0 : i32
    %c0_i32_1 = arith.constant 0 : i32
    return %c0_i32, %c0_i32_0 : i32, i32
  }
  func.func @transform_10(%arg0: i32) -> (i32, i32) {
    %c0_i32 = arith.constant 0 : i32
    %c0_i32_0 = arith.constant 0 : i32
    %c0_i32_1 = arith.constant 0 : i32
    return %c0_i32, %c0_i32_0 : i32, i32
  }
  func.func @transform_11(%arg0: i32) -> (i32, i32) {
    %c0_i32 = arith.constant 0 : i32
    %c0_i32_0 = arith.constant 0 : i32
    %c0_i32_1 = arith.constant 0 : i32
    return %c0_i32, %c0_i32_0 : i32, i32
  }
  func.func @transform_12(%arg0: i32) -> (i32, i32) {
    %c0_i32 = arith.constant 0 : i32
    %c0_i32_0 = arith.constant 0 : i32
    %c0_i32_1 = arith.constant 0 : i32
    return %c0_i32, %c0_i32_0 : i32, i32
  }
  func.func @transform_13(%arg0: i32) -> (i32, i32, i32) {
    %c0_i32 = arith.constant 0 : i32
    %c0_i32_0 = arith.constant 0 : i32
    %c0_i32_1 = arith.constant 0 : i32
    return %arg0, %c0_i32, %c0_i32_0 : i32, i32, i32
  }
}

module attributes {stable_mosaic.version = 11 : i64} {
  func.func @_bn_mlp_kernel(%arg0: memref<2x1024xf32, #tpu.memory_space<vmem>>, %arg1: memref<1024x8xf32, #tpu.memory_space<vmem>>, %arg2: memref<8x1024xf32, #tpu.memory_space<vmem>>, %arg3: memref<1x1024xf32, #tpu.memory_space<vmem>>, %arg4: memref<1x1024xf32, #tpu.memory_space<vmem>>, %arg5: memref<1024x512xbf16, #tpu.memory_space<vmem>>, %arg6: memref<1x512xf32, #tpu.memory_space<vmem>>, %arg7: memref<512x256xbf16, #tpu.memory_space<vmem>>, %arg8: memref<1x256xf32, #tpu.memory_space<vmem>>, %arg9: memref<256x10xbf16, #tpu.memory_space<vmem>>, %arg10: memref<1x10xf32, #tpu.memory_space<vmem>>, %arg11: memref<2x10xf32, #tpu.memory_space<vmem>>) attributes {dimension_semantics = [], scalar_prefetch = 0 : i64, scratch_operands = 0 : i64, tpu.core_type = #tpu.core_type<tc>} {
    %c0 = arith.constant 0 : index
    %c0_0 = arith.constant 0 : index
    %0 = vector.load %arg0[%c0, %c0_0] : memref<2x1024xf32, #tpu.memory_space<vmem>>, vector<2x1024xf32>
    %cst = arith.constant dense<0.000000e+00> : vector<1024xf32>
    %1 = vector.multi_reduction <add>, %0, %cst [0] : vector<2x1024xf32> to vector<1024xf32>
    %2 = vector.shape_cast %1 : vector<1024xf32> to vector<1x1024xf32>
    %c0_1 = arith.constant 0 : index
    %c0_2 = arith.constant 0 : index
    %3 = vector.load %arg1[%c0_1, %c0_2] : memref<1024x8xf32, #tpu.memory_space<vmem>>, vector<1024x8xf32>
    %cst_3 = arith.constant dense<0.000000e+00> : vector<1x8xf32>
    %4 = tpu.matmul %2, %3, %cst_3 {dimension_numbers = #tpu.dot_dimension_numbers<[1], [0], [0], [1], [0, 0, 1, 1], [], []>} : vector<1x1024xf32>, vector<1024x8xf32>, vector<1x8xf32> -> vector<1x8xf32>
    %cst_4 = arith.constant 2.560000e+02 : f32
    %5 = vector.broadcast %cst_4 : f32 to vector<1x8xf32>
    %6 = arith.divf %4, %5 : vector<1x8xf32>
    %c0_5 = arith.constant 0 : index
    %c0_6 = arith.constant 0 : index
    %7 = vector.load %arg2[%c0_5, %c0_6] : memref<8x1024xf32, #tpu.memory_space<vmem>>, vector<8x1024xf32>
    %cst_7 = arith.constant dense<0.000000e+00> : vector<1x1024xf32>
    %8 = tpu.matmul %6, %7, %cst_7 {dimension_numbers = #tpu.dot_dimension_numbers<[1], [0], [0], [1], [0, 0, 1, 1], [], []>} : vector<1x8xf32>, vector<8x1024xf32>, vector<1x1024xf32> -> vector<1x1024xf32>
    %9 = vector.broadcast %8 : vector<1x1024xf32> to vector<2x1024xf32>
    %10 = arith.subf %0, %9 : vector<2x1024xf32>
    %11 = arith.mulf %10, %10 : vector<2x1024xf32>
    %cst_8 = arith.constant dense<0.000000e+00> : vector<1024xf32>
    %12 = vector.multi_reduction <add>, %11, %cst_8 [0] : vector<2x1024xf32> to vector<1024xf32>
    %13 = vector.shape_cast %12 : vector<1024xf32> to vector<1x1024xf32>
    %c0_9 = arith.constant 0 : index
    %c0_10 = arith.constant 0 : index
    %14 = vector.load %arg1[%c0_9, %c0_10] : memref<1024x8xf32, #tpu.memory_space<vmem>>, vector<1024x8xf32>
    %cst_11 = arith.constant dense<0.000000e+00> : vector<1x8xf32>
    %15 = tpu.matmul %13, %14, %cst_11 {dimension_numbers = #tpu.dot_dimension_numbers<[1], [0], [0], [1], [0, 0, 1, 1], [], []>} : vector<1x1024xf32>, vector<1024x8xf32>, vector<1x8xf32> -> vector<1x8xf32>
    %cst_12 = arith.constant 2.560000e+02 : f32
    %16 = vector.broadcast %cst_12 : f32 to vector<1x8xf32>
    %17 = arith.divf %15, %16 : vector<1x8xf32>
    %cst_13 = arith.constant 9.99999974E-6 : f32
    %18 = vector.broadcast %cst_13 : f32 to vector<1x8xf32>
    %19 = arith.addf %17, %18 : vector<1x8xf32>
    %20 = math.rsqrt %19 : vector<1x8xf32>
    %c0_14 = arith.constant 0 : index
    %c0_15 = arith.constant 0 : index
    %21 = vector.load %arg2[%c0_14, %c0_15] : memref<8x1024xf32, #tpu.memory_space<vmem>>, vector<8x1024xf32>
    %cst_16 = arith.constant dense<0.000000e+00> : vector<1x1024xf32>
    %22 = tpu.matmul %20, %21, %cst_16 {dimension_numbers = #tpu.dot_dimension_numbers<[1], [0], [0], [1], [0, 0, 1, 1], [], []>} : vector<1x8xf32>, vector<8x1024xf32>, vector<1x1024xf32> -> vector<1x1024xf32>
    %23 = vector.broadcast %22 : vector<1x1024xf32> to vector<2x1024xf32>
    %24 = arith.mulf %10, %23 : vector<2x1024xf32>
    %c0_17 = arith.constant 0 : index
    %c0_18 = arith.constant 0 : index
    %25 = vector.load %arg3[%c0_17, %c0_18] : memref<1x1024xf32, #tpu.memory_space<vmem>>, vector<1x1024xf32>
    %26 = vector.broadcast %25 : vector<1x1024xf32> to vector<2x1024xf32>
    %27 = arith.mulf %24, %26 : vector<2x1024xf32>
    %c0_19 = arith.constant 0 : index
    %c0_20 = arith.constant 0 : index
    %28 = vector.load %arg4[%c0_19, %c0_20] : memref<1x1024xf32, #tpu.memory_space<vmem>>, vector<1x1024xf32>
    %29 = vector.broadcast %28 : vector<1x1024xf32> to vector<2x1024xf32>
    %30 = arith.addf %27, %29 : vector<2x1024xf32>
    %31 = arith.truncf %30 : vector<2x1024xf32> to vector<2x1024xbf16>
    %c0_21 = arith.constant 0 : index
    %c0_22 = arith.constant 0 : index
    %32 = vector.load %arg5[%c0_21, %c0_22] : memref<1024x512xbf16, #tpu.memory_space<vmem>>, vector<1024x512xbf16>
    %cst_23 = arith.constant dense<0.000000e+00> : vector<2x512xf32>
    %33 = tpu.matmul %31, %32, %cst_23 {dimension_numbers = #tpu.dot_dimension_numbers<[1], [0], [0], [1], [0, 0, 1, 1], [], []>} : vector<2x1024xbf16>, vector<1024x512xbf16>, vector<2x512xf32> -> vector<2x512xf32>
    %c0_24 = arith.constant 0 : index
    %c0_25 = arith.constant 0 : index
    %34 = vector.load %arg6[%c0_24, %c0_25] : memref<1x512xf32, #tpu.memory_space<vmem>>, vector<1x512xf32>
    %35 = vector.broadcast %34 : vector<1x512xf32> to vector<2x512xf32>
    %36 = arith.addf %33, %35 : vector<2x512xf32>
    %cst_26 = arith.constant 0.000000e+00 : f32
    %37 = vector.broadcast %cst_26 : f32 to vector<2x512xf32>
    %38 = arith.maximumf %36, %37 : vector<2x512xf32>
    %39 = arith.truncf %38 : vector<2x512xf32> to vector<2x512xbf16>
    %c0_27 = arith.constant 0 : index
    %c0_28 = arith.constant 0 : index
    %40 = vector.load %arg7[%c0_27, %c0_28] : memref<512x256xbf16, #tpu.memory_space<vmem>>, vector<512x256xbf16>
    %cst_29 = arith.constant dense<0.000000e+00> : vector<2x256xf32>
    %41 = tpu.matmul %39, %40, %cst_29 {dimension_numbers = #tpu.dot_dimension_numbers<[1], [0], [0], [1], [0, 0, 1, 1], [], []>} : vector<2x512xbf16>, vector<512x256xbf16>, vector<2x256xf32> -> vector<2x256xf32>
    %c0_30 = arith.constant 0 : index
    %c0_31 = arith.constant 0 : index
    %42 = vector.load %arg8[%c0_30, %c0_31] : memref<1x256xf32, #tpu.memory_space<vmem>>, vector<1x256xf32>
    %43 = vector.broadcast %42 : vector<1x256xf32> to vector<2x256xf32>
    %44 = arith.addf %41, %43 : vector<2x256xf32>
    %cst_32 = arith.constant 0.000000e+00 : f32
    %45 = vector.broadcast %cst_32 : f32 to vector<2x256xf32>
    %46 = arith.maximumf %44, %45 : vector<2x256xf32>
    %47 = arith.truncf %46 : vector<2x256xf32> to vector<2x256xbf16>
    %c0_33 = arith.constant 0 : index
    %c0_34 = arith.constant 0 : index
    %48 = vector.load %arg9[%c0_33, %c0_34] : memref<256x10xbf16, #tpu.memory_space<vmem>>, vector<256x10xbf16>
    %cst_35 = arith.constant dense<0.000000e+00> : vector<2x10xf32>
    %49 = tpu.matmul %47, %48, %cst_35 {dimension_numbers = #tpu.dot_dimension_numbers<[1], [0], [0], [1], [0, 0, 1, 1], [], []>} : vector<2x256xbf16>, vector<256x10xbf16>, vector<2x10xf32> -> vector<2x10xf32>
    %c0_36 = arith.constant 0 : index
    %c0_37 = arith.constant 0 : index
    %50 = vector.load %arg10[%c0_36, %c0_37] : memref<1x10xf32, #tpu.memory_space<vmem>>, vector<1x10xf32>
    %51 = vector.broadcast %50 : vector<1x10xf32> to vector<2x10xf32>
    %52 = arith.addf %49, %51 : vector<2x10xf32>
    %cst_38 = arith.constant dense<0xFF800000> : vector<2xf32>
    %53 = vector.multi_reduction <maximumf>, %52, %cst_38 [1] : vector<2x10xf32> to vector<2xf32>
    %54 = vector.shape_cast %53 : vector<2xf32> to vector<2x1xf32>
    %55 = vector.broadcast %54 : vector<2x1xf32> to vector<2x10xf32>
    %56 = arith.subf %52, %55 : vector<2x10xf32>
    %57 = math.exp %56 : vector<2x10xf32>
    %cst_39 = arith.constant dense<0.000000e+00> : vector<2xf32>
    %58 = vector.multi_reduction <add>, %57, %cst_39 [1] : vector<2x10xf32> to vector<2xf32>
    %59 = vector.shape_cast %58 : vector<2xf32> to vector<2x1xf32>
    %60 = math.log %59 : vector<2x1xf32>
    %61 = vector.broadcast %60 : vector<2x1xf32> to vector<2x10xf32>
    %62 = arith.subf %56, %61 : vector<2x10xf32>
    %c0_40 = arith.constant 0 : index
    %c0_41 = arith.constant 0 : index
    %63 = vector.load %arg11[%c0_40, %c0_41] : memref<2x10xf32, #tpu.memory_space<vmem>>, vector<2x10xf32>
    tpu.vector_store %arg11[%c0_40, %c0_41], %62 {strides = array<i32>} : memref<2x10xf32, #tpu.memory_space<vmem>>, vector<2x10xf32>,
    return
  }
}

</mosaic_0001>

<bundles_post_ra>
// kernel: feature_net_forward.2
= control target key start
LH: loop header
LB: loop body
LE: loop exit
PB: predicated region body
PF: predicated region fallthrough
CT: control target
= control target key end

     0   :  { %s4913_s0 = inlined_call_operand.hbm [shape: f32[2,256,128], index: 0, kind: input, shape index: {}]   ;;  %s4914_s1 = inlined_call_operand.hbm [shape: bf16[256,256], index: 1, kind: input, shape index: {}]   ;;  %s4915_s2 = inlined_call_operand.hbm [shape: bf16[128,256], index: 2, kind: input, shape index: {}]   ;;  %s4916_s3 = inlined_call_operand.hbm [shape: bf16[128,256], index: 3, kind: input, shape index: {}]   ;;  %s4917_s4 = inlined_call_operand.hbm [shape: f32[1,256], index: 4, kind: input, shape index: {}]   ;;  %s4918_s5 = inlined_call_operand.hbm [shape: bf16[256,128], index: 5, kind: input, shape index: {}]   ;;  %s4919_s6 = inlined_call_operand.hbm [shape: bf16[256,128], index: 6, kind: input, shape index: {}]   ;;  %s4920_s7 = inlined_call_operand.hbm [shape: bf16[64,64], index: 7, kind: input, shape index: {}]   ;;  %s4921_s8 = inlined_call_operand.hbm [shape: bf16[128,128], index: 8, kind: input, shape index: {}]   ;;  %s4922_s9 = inlined_call_operand.hbm [shape: bf16[128,128], index: 9, kind: input, shape index: {}]   ;;  %s4923_s10 = inlined_call_operand.hbm [shape: f32[1,128], index: 10, kind: input, shape index: {}]   ;;  %s4924_s11 = inlined_call_operand.vmem [shape: bf16[128,64], index: 11, kind: input, shape index: {}]   ;;  %s4925_s12 = inlined_call_operand.vmem [shape: bf16[128,64], index: 12, kind: input, shape index: {}]   ;;  %s4926_s13 = inlined_call_operand.vmem [shape: f32[2,16,64], index: 13, kind: output, shape index: {}]  }
   0x1   :  { %4939 = sst [smem:[#allocation26_spill]] %s4913_s0 }
   0x2   :  { %4940 = sst [smem:[#allocation27_spill]] %s4914_s1 }
   0x3   :  { %4941 = sst [smem:[#allocation28_spill]] %s4916_s3 }
   0x4   :  { %4942 = sst [smem:[#allocation29_spill]] %s4924_s11 }
   0x5   :  { %4943 = sst [smem:[#allocation30_spill]] %s4925_s12 }
   0x6   :  { %4944 = sst [smem:[#allocation31_spill]] %s4926_s13 }
   0x7   :  { %18 = vsyncpa [#allocation3], 0 }
   0x8   :  { %20 = vsyncpa [#allocation3 + $0x1], 0 }
   0x9   :  { %21 = vsyncpa [#allocation5], 0 }
   0xa   :  { %22 = vsyncpa [#allocation8], 0 }
   0xb   :  { %23 = vsyncpa [#allocation11], 0 }
   0xc   :  { %24 = vsyncpa [#allocation14], 0 }
   0xd   :  { %25 = vsyncpa [#allocation17], 0  ;;  %s4120_s25 = smov 0   ;;  %s4122_s26 = smov 0  }
   0xe   :  { %s4124_s27 = smov 0   ;;  %s4126_s28 = smov 0  }
   0xf LB: > { %s4032_s29 = smov [#allocation4]   ;;  %s4141_s14 = sadd.s32 4294967295, %s4030_s28   ;;  %s4030_s28 = sphi %s4126_s28, %s4976_s28   ;;  %s4026_s27 = sphi %s4124_s27, %s4975_s27   ;;  %s4022_s26 = sphi %s4122_s26, %s4974_s26   ;;  %s4018_s25 = sphi %s4120_s25, %s4973_s25  }
  0x10   : > { %s352_s30 = sshll.u32 %s4032_s29, 4  ;;  %p2755_p0 = scmp.ge.s32.totalorder %s4030_s28, 1  ;;  %s4146_s30 = int_to_ptr.vmem [resolvable:$true] %s352_s30 }
  0x11   : > { %p4935_p1 = scmp.eq.s32.totalorder %s4141_s14, 0  ;;  %p340_p2 = scmp.lt.s32.totalorder %s4030_s28, 3 }
  0x12   : > { %s4033_s16 = smov [#allocation7]   ;;  %s4034_s19 = smov [#allocation10]  }
  0x13   : > { %p4148_p3 = pnand %p2755_p0, %p340_p2  ;;  %s378_s17 = sshll.u32 %s4033_s16, 4  ;;  %s4160_s17 = int_to_ptr.vmem [resolvable:$true] %s378_s17 }
  0x14   : > { %s402_s20 = sshll.u32 %s4034_s19, 4  ;;  %s4948_s1 = sld [smem:[#allocation27_spill]]  ;;  %s4162_s20 = int_to_ptr.vmem [resolvable:$true] %s402_s20 }
  0x15   : > { %s4945_s15 = scalar_select %p4148_p3, 1, 0 }
  0x16   : > { %p3397_p4 = pneg %p4148_p3 }
  0x17   : > { %4946 = sst [smem:[#allocation25_spill]] %s4945_s15 }
  0x18   : > { %p4156_p5 = pnand %p3397_p4, %p4935_p1 }
  0x1a   : > { %s3666_s23 = scalar_lea.hbm %s4948_s1, 4096  ;;  %p4172_p7 = pneg %p4156_p5 }
  0x1b   : > { %p3667_p6 = scmp.ne.s32.totalorder %s4948_s1, %s3666_s23  ;;  %p3673_p10 = scmp.lt.u32.totalorder %s3666_s23, %s4948_s1 }
  0x1d   : > { %p3669_p8 = pnand %p4172_p7, %p3667_p6 }
  0x1f   : > { %p3670_p9 = pneg %p3669_p8 }
  0x21   : > { %p3675_p11 = pnand %p3673_p10, %p3670_p9 }
  0x23   : > { %3678 = shalt.err (!%p3675_p11)
}
  0x24   : > { %s3679_s21 = scalar_lea.vmem %s4146_s30, 4096  ;;  %p3687_p2 = scmp.lt.s32.totalorder %s4146_s30, %s4146_s30 }
  0x25   : > { %p3680_p12 = scmp.ne.s32.totalorder %s4146_s30, %s3679_s21  ;;  %p3688_p4 = scmp.lt.s32.totalorder %s3679_s21, %s3679_s21 }
  0x27   : > { %p3682_p13 = pnand %p3680_p12, %p4172_p7  ;;  %p3689_p6 = por %p3688_p4, %p3687_p2 }
  0x29   : > { %p3683_p0 = pneg %p3682_p13 }
  0x2b   : > { %p3690_p8 = pnand %p3689_p6, %p3683_p0 }
  0x2d   : > { %3693 = shalt.err (!%p3690_p8)
}
  0x2e   : > { %s4931_s22 = smov 128   ;;  %s4933_s13 = smov 8  }
  0x2f   : > { %3400 = dma.hbm_to_vmem [thread:$0]  (!%p4156_p5), %s4948_s1, 4096, %s4146_s30, [#allocation5], %s4931_s22, %s4931_s22, %s4933_s13  }
  0x30   : > { %s4950_s3 = sld [smem:[#allocation28_spill]] }
  0x36   : > { %s3694_s21 = scalar_lea.hbm %s4950_s3, 2048 }
  0x37   : > { %p3695_p9 = scmp.ne.s32.totalorder %s4950_s3, %s3694_s21  ;;  %p3701_p12 = scmp.lt.u32.totalorder %s3694_s21, %s4950_s3 }
  0x39   : > { %p3697_p10 = pnand %p3695_p9, %p4172_p7 }
  0x3b   : > { %p3698_p11 = pneg %p3697_p10 }
  0x3d   : > { %p3703_p13 = pnand %p3701_p12, %p3698_p11 }
  0x3f   : > { %3706 = shalt.err (!%p3703_p13)
}
  0x40   : > { %s3707_s30 = scalar_lea.vmem %s4160_s17, 2048  ;;  %p3715_p6 = scmp.lt.s32.totalorder %s4160_s17, %s4160_s17 }
  0x41   : > { %p3708_p0 = scmp.ne.s32.totalorder %s4160_s17, %s3707_s30  ;;  %p3716_p8 = scmp.lt.s32.totalorder %s3707_s30, %s3707_s30 }
  0x43   : > { %p3710_p2 = pnand %p3708_p0, %p4172_p7  ;;  %p3717_p9 = por %p3716_p8, %p3715_p6 }
  0x45   : > { %p3711_p4 = pneg %p3710_p2 }
  0x47   : > { %p3718_p10 = pnand %p3717_p9, %p3711_p4 }
  0x49   : > { %3721 = shalt.err (!%p3718_p10)
}
  0x4a   : > { %3406 = dma.hbm_to_vmem [thread:$0]  (!%p4156_p5), %s4950_s3, 2048, %s4160_s17, [#allocation8], %s4931_s22, %s4931_s22, %s4933_s13  }
  0x4b   : > { %s3722_s23 = scalar_lea.hbm %s4918_s5, 2048 }
  0x4c   : > { %p3723_p11 = scmp.ne.s32.totalorder %s4918_s5, %s3722_s23  ;;  %p3729_p0 = scmp.lt.u32.totalorder %s3722_s23, %s4918_s5 }
  0x4e   : > { %p3725_p12 = pnand %p3723_p11, %p4172_p7 }
  0x50   : > { %p3726_p13 = pneg %p3725_p12 }
  0x52   : > { %p3731_p2 = pnand %p3729_p0, %p3726_p13 }
  0x54   : > { %3734 = shalt.err (!%p3731_p2)
}
  0x55   : > { %s3735_s17 = scalar_lea.vmem %s4162_s20, 2048  ;;  %p3743_p9 = scmp.lt.s32.totalorder %s4162_s20, %s4162_s20 }
  0x56   : > { %p3736_p4 = scmp.ne.s32.totalorder %s4162_s20, %s3735_s17  ;;  %p3744_p10 = scmp.lt.s32.totalorder %s3735_s17, %s3735_s17 }
  0x58   : > { %p3738_p6 = pnand %p3736_p4, %p4172_p7  ;;  %p3745_p11 = por %p3744_p10, %p3743_p9 }
  0x5a   : > { %p3739_p8 = pneg %p3738_p6 }
  0x5c   : > { %p3746_p12 = pnand %p3745_p11, %p3739_p8 }
  0x5e   : > { %3749 = shalt.err (!%p3746_p12)
}
  0x5f   : > { %s4937_s30 = smov 64   ;;  %s4038_s0 = smov 4  }
  0x60   : > { %3412 = dma.hbm_to_vmem [thread:$0]  (!%p4156_p5), %s4918_s5, 2048, %s4162_s20, [#allocation11], %s4937_s30, %s4937_s30, %s4038_s0  }
  0x61   : > { %s4039_s15 = smov [#allocation13]   ;;  %s4040_s24 = smov [#allocation16]  }
  0x62   : > { %s428_s23 = sshll.u32 %s4039_s15, 4  ;;  %s454_s29 = sshll.u32 %s4040_s24, 4  ;;  %s429_s23 = int_to_ptr.vmem [resolvable:$true] %s428_s23  ;;  %s455_s29 = int_to_ptr.vmem [resolvable:$true] %s454_s29 }
  0x63   : > { %s3750_s17 = scalar_lea.hbm %s4920_s7, 512 }
  0x64   : > { %p3751_p13 = scmp.ne.s32.totalorder %s4920_s7, %s3750_s17  ;;  %p3757_p4 = scmp.lt.u32.totalorder %s3750_s17, %s4920_s7 }
  0x66   : > { %p3753_p0 = pnand %p3751_p13, %p4172_p7 }
  0x68   : > { %p3754_p2 = pneg %p3753_p0 }
  0x6a   : > { %p3759_p6 = pnand %p3757_p4, %p3754_p2 }
  0x6c   : > { %3762 = shalt.err (!%p3759_p6)
}
  0x6d   : > { %s3763_s20 = scalar_lea.vmem %s429_s23, 512  ;;  %p3771_p11 = scmp.lt.s32.totalorder %s429_s23, %s429_s23 }
  0x6e   : > { %p3764_p8 = scmp.ne.s32.totalorder %s429_s23, %s3763_s20  ;;  %p3772_p12 = scmp.lt.s32.totalorder %s3763_s20, %s3763_s20 }
  0x70   : > { %p3766_p9 = pnand %p3764_p8, %p4172_p7  ;;  %p3773_p1 = por %p3772_p12, %p3771_p11 }
  0x72   : > { %p3767_p10 = pneg %p3766_p9 }
  0x74   : > { %p3774_p3 = pnand %p3773_p1, %p3767_p10 }
  0x76   : > { %3777 = shalt.err (!%p3774_p3)
}
  0x77   : > { %3418 = dma.hbm_to_vmem [thread:$0]  (!%p4156_p5), %s4920_s7, 512, %s429_s23, [#allocation14], %s4937_s30, %s4937_s30, %s4038_s0  }
  0x78   : > { %s3778_s11 = scalar_lea.hbm %s4922_s9, 1024 }
  0x79   : > { %p3779_p1 = scmp.ne.s32.totalorder %s4922_s9, %s3778_s11  ;;  %p3785_p0 = scmp.lt.u32.totalorder %s3778_s11, %s4922_s9 }
  0x7b   : > { %p3781_p3 = pnand %p3779_p1, %p4172_p7 }
  0x7d   : > { %p3782_p13 = pneg %p3781_p3 }
  0x7f   : > { %p3787_p2 = pnand %p3785_p0, %p3782_p13 }
  0x81   : > { %3790 = shalt.err (!%p3787_p2)
}
  0x82   : > { %s3791_s21 = scalar_lea.vmem %s455_s29, 1024  ;;  %p3799_p9 = scmp.lt.s32.totalorder %s455_s29, %s455_s29 }
  0x83   : > { %p3792_p4 = scmp.ne.s32.totalorder %s455_s29, %s3791_s21  ;;  %p3800_p10 = scmp.lt.s32.totalorder %s3791_s21, %s3791_s21 }
  0x85   : > { %p3794_p6 = pnand %p3792_p4, %p4172_p7  ;;  %p3801_p11 = por %p3800_p10, %p3799_p9 }
  0x87   : > { %p3795_p8 = pneg %p3794_p6 }
  0x89   : > { %p3802_p12 = pnand %p3801_p11, %p3795_p8 }
  0x8b   : > { %3805 = shalt.err (!%p3802_p12)
}
  0x8c   : > { %3424 = dma.hbm_to_vmem [thread:$0]  (!%p4156_p5), %s4922_s9, 1024, %s455_s29, [#allocation17], %s4937_s30, %s4937_s30, %s4038_s0  }
  0x8d   : > { %s4041_s20 = smov [#allocation6]   ;;  %s4042_s3 = smov [#allocation9]  }
  0x8e   : > { %s365_s1 = sshll.u32 %s4041_s20, 4  ;;  %s392_s22 = sshll.u32 %s4042_s3, 4  ;;  %s366_s1 = int_to_ptr.vmem [resolvable:$true] %s365_s1  ;;  %s393_s22 = int_to_ptr.vmem [resolvable:$true] %s392_s22 }
  0x8f   : > { %s3806_s12 = scalar_lea.hbm %s4915_s2, 2048 }
  0x90   : > { %p3807_p1 = scmp.ne.s32.totalorder %s4915_s2, %s3806_s12  ;;  %p3813_p0 = scmp.lt.u32.totalorder %s3806_s12, %s4915_s2 }
  0x92   : > { %p3809_p3 = pnand %p3807_p1, %p4172_p7 }
  0x94   : > { %p3810_p13 = pneg %p3809_p3 }
  0x96   : > { %p3815_p2 = pnand %p3813_p0, %p3810_p13 }
  0x98   : > { %3818 = shalt.err (!%p3815_p2)
}
  0x99   : > { %s3819_s29 = scalar_lea.vmem %s366_s1, 2048  ;;  %p3827_p9 = scmp.lt.s32.totalorder %s366_s1, %s366_s1 }
  0x9a   : > { %p3820_p4 = scmp.ne.s32.totalorder %s366_s1, %s3819_s29  ;;  %p3828_p10 = scmp.lt.s32.totalorder %s3819_s29, %s3819_s29 }
  0x9c   : > { %p3822_p6 = pnand %p3820_p4, %p4172_p7  ;;  %p3829_p11 = por %p3828_p10, %p3827_p9 }
  0x9e   : > { %p3823_p8 = pneg %p3822_p6 }
  0xa0   : > { %p3830_p12 = pnand %p3829_p11, %p3823_p8 }
  0xa2   : > { %3833 = shalt.err (!%p3830_p12)
}
  0xa3   : > { %s4951_s23 = smov 8   ;;  %s4952_s17 = smov 128  }
  0xa4   : > { %3403 = dma.hbm_to_vmem [thread:$0]  (!%p4156_p5), %s4915_s2, 2048, %s366_s1, [#allocation5], %s4952_s17, %s4952_s17, %s4951_s23  }
  0xa5   : > { %s3834_s12 = scalar_lea.hbm %s4917_s4, 32 }
  0xa6   : > { %p3835_p1 = scmp.ne.s32.totalorder %s4917_s4, %s3834_s12  ;;  %p3841_p0 = scmp.lt.u32.totalorder %s3834_s12, %s4917_s4 }
  0xa8   : > { %p3837_p3 = pnand %p3835_p1, %p4172_p7 }
  0xaa   : > { %p3838_p13 = pneg %p3837_p3 }
  0xac   : > { %p3843_p2 = pnand %p3841_p0, %p3838_p13 }
  0xae   : > { %3846 = shalt.err (!%p3843_p2)
}
  0xaf   : > { %s3847_s29 = scalar_lea.vmem %s393_s22, 32  ;;  %p3855_p9 = scmp.lt.s32.totalorder %s393_s22, %s393_s22 }
  0xb0   : > { %p3848_p4 = scmp.ne.s32.totalorder %s393_s22, %s3847_s29  ;;  %p3856_p10 = scmp.lt.s32.totalorder %s3847_s29, %s3847_s29 }
  0xb2   : > { %p3850_p6 = pnand %p3848_p4, %p4172_p7  ;;  %p3857_p11 = por %p3856_p10, %p3855_p9 }
  0xb4   : > { %p3851_p8 = pneg %p3850_p6 }
  0xb6   : > { %p3858_p12 = pnand %p3857_p11, %p3851_p8 }
  0xb8   : > { %3861 = shalt.err (!%p3858_p12)
}
  0xb9   : > { %3409 = dma.hbm_to_vmem [thread:$0]  (!%p4156_p5), %s4917_s4, 32, %s393_s22, [#allocation8]  }
  0xba   : > { %s4043_s3 = smov [#allocation12]   ;;  %s4044_s11 = smov [#allocation15]  }
  0xbb   : > { %s415_s13 = sshll.u32 %s4043_s3, 4  ;;  %s441_s12 = sshll.u32 %s4044_s11, 4  ;;  %s416_s13 = int_to_ptr.vmem [resolvable:$true] %s415_s13  ;;  %s442_s12 = int_to_ptr.vmem [resolvable:$true] %s441_s12 }
  0xbc   : > { %s3862_s19 = scalar_lea.hbm %s4919_s6, 2048 }
  0xbd   : > { %p3863_p1 = scmp.ne.s32.totalorder %s4919_s6, %s3862_s19  ;;  %p3869_p0 = scmp.lt.u32.totalorder %s3862_s19, %s4919_s6 }
  0xbf   : > { %p3865_p3 = pnand %p3863_p1, %p4172_p7 }
  0xc1   : > { %p3866_p13 = pneg %p3865_p3 }
  0xc3   : > { %p3871_p2 = pnand %p3869_p0, %p3866_p13 }
  0xc5   : > { %3874 = shalt.err (!%p3871_p2)
}
  0xc6   : > { %s3875_s22 = scalar_lea.vmem %s416_s13, 2048  ;;  %p3883_p9 = scmp.lt.s32.totalorder %s416_s13, %s416_s13 }
  0xc7   : > { %p3876_p4 = scmp.ne.s32.totalorder %s416_s13, %s3875_s22  ;;  %p3884_p10 = scmp.lt.s32.totalorder %s3875_s22, %s3875_s22 }
  0xc9   : > { %p3878_p6 = pnand %p3876_p4, %p4172_p7  ;;  %p3885_p11 = por %p3884_p10, %p3883_p9 }
  0xcb   : > { %p3879_p8 = pneg %p3878_p6 }
  0xcd   : > { %p3886_p12 = pnand %p3885_p11, %p3879_p8 }
  0xcf   : > { %3889 = shalt.err (!%p3886_p12)
}
  0xd0   : > { %s4953_s20 = smov 64   ;;  %s3890_s24 = scalar_lea.hbm %s4921_s8, 1024 }
  0xd1   : > { %3415 = dma.hbm_to_vmem [thread:$0]  (!%p4156_p5), %s4919_s6, 2048, %s416_s13, [#allocation11], %s4953_s20, %s4953_s20, %s4038_s0  }
  0xd2   : > { %p3891_p1 = scmp.ne.s32.totalorder %s4921_s8, %s3890_s24  ;;  %p3897_p0 = scmp.lt.u32.totalorder %s3890_s24, %s4921_s8 }
  0xd4   : > { %p3893_p3 = pnand %p3891_p1, %p4172_p7 }
  0xd6   : > { %p3894_p13 = pneg %p3893_p3 }
  0xd8   : > { %p3899_p2 = pnand %p3897_p0, %p3894_p13 }
  0xda   : > { %3902 = shalt.err (!%p3899_p2)
}
  0xdb   : > { %s3903_s22 = scalar_lea.vmem %s442_s12, 1024  ;;  %p3911_p9 = scmp.lt.s32.totalorder %s442_s12, %s442_s12 }
  0xdc   : > { %p3904_p4 = scmp.ne.s32.totalorder %s442_s12, %s3903_s22  ;;  %p3912_p10 = scmp.lt.s32.totalorder %s3903_s22, %s3903_s22 }
  0xde   : > { %p3906_p6 = pnand %p3904_p4, %p4172_p7  ;;  %p3913_p11 = por %p3912_p10, %p3911_p9 }
  0xe0   : > { %p3907_p8 = pneg %p3906_p6 }
  0xe2   : > { %p3914_p12 = pnand %p3913_p11, %p3907_p8 }
  0xe4   : > { %3917 = shalt.err (!%p3914_p12)
}
  0xe5   : > { %3421 = dma.hbm_to_vmem [thread:$0]  (!%p4156_p5), %s4921_s8, 1024, %s442_s12, [#allocation14], %s4953_s20, %s4953_s20, %s4038_s0  }
  0xe6   : > { %s4045_s3 = smov [#allocation18]   ;;  %s3918_s19 = scalar_lea.hbm %s4923_s10, 16 }
  0xe7   : > { %s468_s11 = sshll.u32 %s4045_s3, 4  ;;  %p3919_p1 = scmp.ne.s32.totalorder %s4923_s10, %s3918_s19  ;;  %s469_s11 = int_to_ptr.vmem [resolvable:$true] %s468_s11 }
  0xe8   : > { %p3925_p0 = scmp.lt.u32.totalorder %s3918_s19, %s4923_s10 }
  0xe9   : > { %p3921_p3 = pnand %p3919_p1, %p4172_p7 }
  0xeb   : > { %p3922_p13 = pneg %p3921_p3 }
  0xed   : > { %p3927_p2 = pnand %p3925_p0, %p3922_p13 }
  0xef   : > { %3930 = shalt.err (!%p3927_p2)
}
  0xf0   : > { %s3931_s0 = scalar_lea.vmem %s469_s11, 16  ;;  %s3938_s12 = scalar_lea.vmem %s469_s11, 32 }
  0xf1   : > { %p3932_p4 = scmp.ne.s32.totalorder %s469_s11, %s3931_s0  ;;  %p3939_p9 = scmp.lt.s32.totalorder %s469_s11, %s469_s11 }
  0xf2   : > { %p3940_p10 = scmp.lt.s32.totalorder %s3938_s12, %s3931_s0 }
  0xf3   : > { %p3934_p6 = pnand %p3932_p4, %p4172_p7 }
  0xf4   : > { %p3941_p11 = por %p3940_p10, %p3939_p9 }
  0xf5   : > { %p3935_p8 = pneg %p3934_p6 }
  0xf7   : > { %p3942_p12 = pnand %p3941_p11, %p3935_p8 }
  0xf9   : > { %3945 = shalt.err (!%p3942_p12)
}
  0xfa   : > { %3427 = dma.hbm_to_vmem [thread:$0]  (!%p4156_p5), %s4923_s10, 16, %s469_s11, [#allocation17]  }
  0xfb   : > { %s4390_s16 = sadd.s32 1, %s4030_s28   ;;  %s38_s18 = sadd.s32 1, %s4026_s27 }
  0xfc   : > { %s35_s30 = ssub.s32 %s4030_s28, %s4390_s16  ;;  %p45_p7 = scmp.ne.s32.totalorder %s4026_s27, %s4022_s26 }
  0xfd   : > { %p36_p1 = scmp.eq.s32.totalorder %s35_s30, 0  ;;  %p46_p3 = scmp.eq.s32.totalorder %s4030_s28, 0 }
  0xfe   : > { %p51_p13 = scmp.ne.s32.totalorder %s4022_s26, %s4018_s25  ;;  %p3442_p0 = scmp.lt.s32.totalorder %s4030_s28, 2 }
  0xff   : > { %s4402_s3 = scalar_select %p36_p1, %s4026_s27, %s38_s18  }
 0x100   : > { %p47_p2 = por %p46_p3, %p45_p7  ;;  %p4954_p4 = scmp.eq.s32.totalorder %s4141_s14, 0 }
 0x101   : > { %s485_s24 = sand.u32 1, %s4026_s27   ;;  %s2923_s11 = sshll.u32 %s4030_s28, 12 }
 0x102   : > { %p4406_p6 = por %p4954_p4, %p51_p13  ;;  %s2767_s19 = sshll.u32 %s485_s24, 8 }
 0x103   : > { %s4956_s1 = sld [smem:[#allocation26_spill]]  ;;  %s489_s25 = scalar_lea.vmem [#allocation2], %s2767_s19 }
 0x104   : > { %s496_s0 = sshll.u32 %s489_s25, 4  ;;  %p4417_p5 = pnand %p3442_p0, %p47_p2  ;;  %s4421_s0 = int_to_ptr.vmem [resolvable:$true] %s496_s0 }
 0x105   : > { %s4423_s28 = scalar_lea.sflag [#allocation3], %s485_s24 }
 0x106   : > { %p3948_p9 = pneg %p4417_p5 }
 0x109   : > { %s4415_s22 = scalar_lea.hbm %s4956_s1, %s2923_s11  ;;  %s3951_s30 = scalar_lea.hbm %s4956_s1, 8192 }
 0x10a   : > { %s3946_s20 = scalar_lea.hbm %s4415_s22, 4096  ;;  %p3952_p12 = scmp.lt.u32.totalorder %s4415_s22, %s4956_s1 }
 0x10b   : > { %p3947_p8 = scmp.ne.s32.totalorder %s4415_s22, %s3946_s20  ;;  %p3953_p7 = scmp.lt.u32.totalorder %s3951_s30, %s3946_s20 }
 0x10c   : > { %p3955_p3 = scmp.lt.u32.totalorder %s3946_s20, %s4415_s22 }
 0x10d   : > { %p3949_p10 = pnand %p3948_p9, %p3947_p8  ;;  %p3954_p1 = por %p3953_p7, %p3952_p12 }
 0x10f   : > { %p3950_p11 = pneg %p3949_p10  ;;  %p3956_p13 = por %p3955_p3, %p3954_p1 }
 0x111   : > { %p3957_p0 = pnand %p3956_p13, %p3950_p11 }
 0x113   : > { %3960 = shalt.err (!%p3957_p0)
}
 0x114   : > { %s3961_s24 = scalar_lea.vmem %s4421_s0, 4096  ;;  %s4046_s21 = smov [#allocation2]  }
 0x115   : > { %p3962_p2 = scmp.ne.s32.totalorder %s4421_s0, %s3961_s24  ;;  %s3966_s29 = sshll.u32 %s4046_s21, 4  ;;  %s3967_s29 = int_to_ptr.vmem [resolvable:$false] %s3966_s29 }
 0x116   : > { %s3968_s25 = scalar_lea.vmem %s3967_s29, 8192  ;;  %p3969_p10 = scmp.lt.s32.totalorder %s4421_s0, %s3967_s29 }
 0x117   : > { %p3964_p4 = pnand %p3962_p2, %p3948_p9  ;;  %p3970_p12 = scmp.lt.s32.totalorder %s3968_s25, %s3961_s24 }
 0x119   : > { %p3965_p8 = pneg %p3964_p4  ;;  %p3971_p7 = por %p3970_p12, %p3969_p10 }
 0x11b   : > { %p3972_p1 = pnand %p3971_p7, %p3965_p8 }
 0x11d   : > { %3975 = shalt.err (!%p3972_p1)
}
 0x11e   : > { %3431 = dma.hbm_to_vmem [thread:$0]  (!%p4417_p5), %s4415_s22, 4096, %s4421_s0, %s4423_s28, %s4952_s17, %s4952_s17, %s4951_s23  }
 0x11f   : > { %s4958_s20 = sld [smem:[#allocation25_spill]] }
 0x125   : > { %p4959_p9 = scmp.ne.s32.totalorder %s4958_s20, 0 }
 0x126   : > { %s510_s13 = sand.u32 (!%p4959_p9), 1, %s4022_s26  }
 0x127   : > { %508 = sbr.rel (%p4959_p9) target bundleno = 1869 (0x74d), region = 72  ;;  %s2771_s18 = sshll.u32 (!%p4959_p9), %s510_s13, 8 }
 0x128   : > { %s511_s30 = scalar_lea.sflag (!%p4959_p9), [#allocation3], %s510_s13  ;;  %s4457_s11 = scalar_lea.vmem (!%p4959_p9), [#allocation2], %s2771_s18 }
 0x12e   : > { %3993 = dma.done.wait (%p4406_p6), %s511_s30, 4096  }
 0x12f   : > { %3995 = vsyncadd (%p4406_p6), %s511_s30, 4294963200  ;;  %p4960_p11 = scmp.eq.s32.totalorder %s4141_s14, 0 }
 0x131   : > { %3997 = dma.done.wait (%p4960_p11), [#allocation5], 6144   ;;  %p4961_p5 = pmov %p4960_p11 }
 0x133   : > { %3999 = vsyncadd (%p4961_p5), [#allocation5], 4294961152  ;;  %p4962_p3 = pmov %p4961_p5 }
 0x135   : > { %4001 = dma.done.wait (%p4962_p3), [#allocation8], 2080   ;;  %p4963_p13 = pmov %p4962_p3 }
 0x136   : > { %p4964_p0 = pmov %p4962_p3 }
 0x137   : > { %4003 = vsyncadd (%p4963_p13), [#allocation8], 4294965216 }
 0x138   : > { %4005 = dma.done.wait (%p4964_p0), [#allocation11], 4096   ;;  %p4965_p2 = pmov %p4964_p0 }
 0x139   : > { %p4966_p6 = pmov %p4964_p0 }
 0x13a   : > { %4007 = vsyncadd (%p4965_p2), [#allocation11], 4294963200 }
 0x13b   : > { %4009 = dma.done.wait (%p4966_p6), [#allocation14], 1536   ;;  %p4967_p4 = pmov %p4964_p0 }
 0x13c   : > { %p4968_p8 = pmov %p4964_p0 }
 0x13d   : > { %4011 = vsyncadd (%p4967_p4), [#allocation14], 4294965760 }
 0x13e   : > { %4013 = dma.done.wait (%p4968_p8), [#allocation17], 1040   ;;  %p4969_p10 = pmov %p4964_p0 }
 0x13f   : > { %v619_v0 = vld [vmem:[%s4457_s11 + $0x80] sm:$0xff]  ;;  %v620_v1 = vld [vmem:[%s4457_s11 + $0x88] sm:$0xff]  ;;  %v621_v5 = vld [vmem:[%s4457_s11 + $0x90] sm:$0xff]  ;;  %vm1990_vm0 = vcmask 523264   ;;  %vm4049_vm1 = vmmov 0   ;;  %s4970_s15 = sld [smem:[#allocation29_spill]] }
 0x140   : > { %4015 = vsyncadd (%p4969_p10), [#allocation17], 4294966256  ;;  %v603_v2 = vld [vmem:[%s4457_s11] sm:$0xff]  ;;  %v643_v3 = vpack.c.bf16 %v620_v1, %v619_v0  ;;  %v604_v4 = vld [vmem:[%s4457_s11 + $0x8] sm:$0xff]  ;;  %s4971_s19 = sld [smem:[#allocation30_spill]]  ;;  %p597_p12 = scmp.lt.s32.totalorder %s4141_s14, 1 }
 0x141   : > { %v622_v6 = vld [vmem:[%s4457_s11 + $0x98] sm:$0xff]  ;;  %v635_v7 = vpack.c.bf16 %v604_v4, %v603_v2  ;;  %v605_v9 = vld [vmem:[%s4457_s11 + $0x10] sm:$0xff]  ;;  %v623_v11 = vld [vmem:[%s4457_s11 + $0xa0] sm:$0xff]  ;;  %s4972_s28 = sld [smem:[#allocation31_spill]] }
 0x142   : > { %v644_v8 = vpack.c.bf16 %v622_v6, %v621_v5  ;;  %v606_v10 = vld [vmem:[%s4457_s11 + $0x18] sm:$0xff]  ;;  %2925 = vmatprep.subr.bf16.mxu0 %v643_v3  ;;  %v624_v12 = vld [vmem:[%s4457_s11 + $0xa8] sm:$0xff]  ;;  %v607_v15 = vld [vmem:[%s4457_s11 + $0x20] sm:$0xff]  ;;  %s4978_s14 = smov (!%p597_p12, %s4141_s14), 1 }
 0x143   : > { %2926 = vmatpush3.bf16.msra.mxu0 %v635_v7  ;;  %v636_v13 = vpack.c.bf16 %v606_v10, %v605_v9  ;;  %v645_v14 = vpack.c.bf16 %v624_v12, %v623_v11  ;;  %v608_v16 = vld [vmem:[%s4457_s11 + $0x28] sm:$0xff]  ;;  %v625_v17 = vld [vmem:[%s4457_s11 + $0xb0] sm:$0xff]  ;;  %v626_v18 = vld [vmem:[%s4457_s11 + $0xb8] sm:$0xff]  ;;  %s2924_s22 = sshll.u32 %s4978_s14, 4 }
 0x144   : > { %2927 = vmatprep.subr.bf16.mxu0 %v644_v8  ;;  %v637_v19 = vpack.c.bf16 %v608_v16, %v607_v15  ;;  %v646_v20 = vpack.c.bf16 %v626_v18, %v625_v17  ;;  %v609_v21 = vld [vmem:[%s4457_s11 + $0x30] sm:$0xff]  ;;  %v610_v22 = vld [vmem:[%s4457_s11 + $0x38] sm:$0xff]  ;;  %v627_v23 = vld [vmem:[%s4457_s11 + $0xc0] sm:$0xff] }
 0x145   : > { %v628_v24 = vld [vmem:[%s4457_s11 + $0xc8] sm:$0xff]  ;;  %v638_v26 = vpack.c.bf16 %v610_v22, %v609_v21  ;;  %v611_v27 = vld [vmem:[%s4457_s11 + $0x40] sm:$0xff]  ;;  %v629_v30 = vld [vmem:[%s4457_s11 + $0xd0] sm:$0xff] }
 0x146   : > { %v3504_v25 = vld [vmem:[#allocation4 + $0x4] ss:$8 sps:$4 sm:$0xff]   ;;  %v647_v28 = vpack.c.bf16 %v628_v24, %v627_v23  ;;  %v630_v31 = vld [vmem:[%s4457_s11 + $0xd8] sm:$0xff]  ;;  %v613_v33 = vld [vmem:[%s4457_s11 + $0x50] sm:$0xff] }
 0x147   : > { %2928 = vmatpush3.bf16.msra.mxu0 %v636_v13  ;;  %v612_v29 = vld [vmem:[%s4457_s11 + $0x48] sm:$0xff]  ;;  %875 = vmatprep.mubr.bf16.mxu0 %v3504_v25  ;;  %v648_v34 = vpack.c.bf16 %v630_v31, %v629_v30  ;;  %v614_v35 = vld [vmem:[%s4457_s11 + $0x58] sm:$0xff]  ;;  %v631_v36 = vld [vmem:[%s4457_s11 + $0xe0] sm:$0xff]  ;;  %s601_s24 = scalar_lea.vmem %s4972_s28, %s2924_s22 }
 0x148   : > { %2929 = vmatprep.subr.bf16.mxu0 %v645_v14  ;;  %v639_v32 = vpack.c.bf16 %v612_v29, %v611_v27  ;;  %v632_v37 = vld [vmem:[%s4457_s11 + $0xe8] sm:$0xff]  ;;  %v640_v38 = vpack.c.bf16 %v614_v35, %v613_v33  ;;  %v615_v39 = vld [vmem:[%s4457_s11 + $0x60] sm:$0xff]  ;;  %v633_v42 = vld [vmem:[%s4457_s11 + $0xf0] sm:$0xff]  ;;  %v4047_v33 = vmov 0  }
 0x149   : > { %v649_v40 = vpack.c.bf16 %v632_v37, %v631_v36  ;;  %v616_v41 = vld [vmem:[%s4457_s11 + $0x68] sm:$0xff]  ;;  %v634_v43 = vld [vmem:[%s4457_s11 + $0xf8] sm:$0xff]  ;;  %v617_v45 = vld [vmem:[%s4457_s11 + $0x70] sm:$0xff]  ;;  %1164 = vmatprep.mubr.bf16.mxu1 %v4047_v33 }
 0x14a   : > { %v641_v44 = vpack.c.bf16 %v616_v41, %v615_v39  ;;  %v650_v46 = vpack.c.bf16 %v634_v43, %v633_v42  ;;  %v618_v47 = vld [vmem:[%s4457_s11 + $0x78] sm:$0xff]  ;;  %v3502_v49 = vld [vmem:[#allocation4] ss:$8 sps:$4 sm:$0xff]   ;;  %v3508_v52 = vld [vmem:[#allocation4 + $0x24] ss:$8 sps:$4 sm:$0xff]  }
 0x14b   : > { %2930 = vmatpush3.bf16.msra.mxu0 %v637_v19  ;;  %v642_v48 = vpack.c.bf16 %v618_v47, %v617_v45  ;;  %v3505_v50 = vld [vmem:[#allocation4 + $0x14] ss:$8 sps:$4 sm:$0xff]   ;;  %v3507_v51 = vld [vmem:[#allocation4 + $0x10] ss:$8 sps:$4 sm:$0xff]   ;;  %v3510_v53 = vld [vmem:[#allocation4 + $0x20] ss:$8 sps:$4 sm:$0xff]  }
 0x14c   : > { %2931 = vmatprep.subr.bf16.mxu0 %v646_v20  ;;  %v3511_v54 = vld [vmem:[#allocation4 + $0x34] ss:$8 sps:$4 sm:$0xff]   ;;  %v3513_v55 = vld [vmem:[#allocation4 + $0x30] ss:$8 sps:$4 sm:$0xff]   ;;  %v3514_v56 = vld [vmem:[#allocation4 + $0x44] ss:$8 sps:$4 sm:$0xff]  }
 0x14d   : > { %v3516_v57 = vld [vmem:[#allocation4 + $0x40] ss:$8 sps:$4 sm:$0xff]   ;;  %v3517_v58 = vld [vmem:[#allocation4 + $0x54] ss:$8 sps:$4 sm:$0xff]   ;;  %v3519_v59 = vld [vmem:[#allocation4 + $0x50] ss:$8 sps:$4 sm:$0xff]  }
 0x14e   : > { %v3520_v60 = vld [vmem:[#allocation4 + $0x64] ss:$8 sps:$4 sm:$0xff]   ;;  %v3522_v61 = vld [vmem:[#allocation4 + $0x60] ss:$8 sps:$4 sm:$0xff]   ;;  %v3523_v62 = vld [vmem:[#allocation4 + $0x74] ss:$8 sps:$4 sm:$0xff]  }
 0x14f   : > { %2932 = vmatpush3.bf16.msra.mxu0 %v638_v26  ;;  %v3525_v63 = vld [vmem:[#allocation4 + $0x70] ss:$8 sps:$4 sm:$0xff]   ;;  %v3526_v0 = vld [vmem:[#allocation4 + $0x84] ss:$8 sps:$4 sm:$0xff]   ;;  %v3528_v1 = vld [vmem:[#allocation4 + $0x80] ss:$8 sps:$4 sm:$0xff]  }
 0x150   : > { %2933 = vmatprep.subr.bf16.mxu0 %v647_v28  ;;  %v3529_v2 = vld [vmem:[#allocation4 + $0x94] ss:$8 sps:$4 sm:$0xff]   ;;  %v3531_v3 = vld [vmem:[#allocation4 + $0x90] ss:$8 sps:$4 sm:$0xff]   ;;  %v3532_v4 = vld [vmem:[#allocation4 + $0xa4] ss:$8 sps:$4 sm:$0xff]  }
 0x151   : > { %v3534_v5 = vld [vmem:[#allocation4 + $0xa0] ss:$8 sps:$4 sm:$0xff]   ;;  %v3535_v6 = vld [vmem:[#allocation4 + $0xb4] ss:$8 sps:$4 sm:$0xff]   ;;  %v3537_v7 = vld [vmem:[#allocation4 + $0xb0] ss:$8 sps:$4 sm:$0xff]  }
 0x152   : > { %v3538_v8 = vld [vmem:[#allocation4 + $0xc4] ss:$8 sps:$4 sm:$0xff]   ;;  %v4517_v10 = vld [vmem:[#allocation7] ss:$8 sps:$4 sm:$0xff]   ;;  %v3541_v12 = vld [vmem:[#allocation4 + $0xd4] ss:$8 sps:$4 sm:$0xff]  }
 0x153   : > { %2934 = vmatpush3.bf16.msra.mxu0 %v639_v32  ;;  %v4515_v9 = vld [vmem:[#allocation7 + $0x4] ss:$8 sps:$4 sm:$0xff]   ;;  %v3540_v11 = vld [vmem:[#allocation4 + $0xc0] ss:$8 sps:$4 sm:$0xff]   ;;  %v4521_v13 = vld [vmem:[#allocation7 + $0x14] ss:$8 sps:$4 sm:$0xff]  }
 0x154   : > { %2935 = vmatprep.subr.bf16.mxu0 %v648_v34  ;;  %1132 = vmatprep.subr.bf16.mxu1 %v4515_v9  ;;  %v4523_v14 = vld [vmem:[#allocation7 + $0x10] ss:$8 sps:$4 sm:$0xff]   ;;  %v4527_v15 = vld [vmem:[#allocation7 + $0x24] ss:$8 sps:$4 sm:$0xff]   ;;  %v4529_v16 = vld [vmem:[#allocation7 + $0x20] ss:$8 sps:$4 sm:$0xff]  }
 0x155   : > { %1133 = vmatpush1.bf16.msra.mxu1 %v4517_v10  ;;  %v3543_v17 = vld [vmem:[#allocation4 + $0xd0] ss:$8 sps:$4 sm:$0xff]   ;;  %v3544_v18 = vld [vmem:[#allocation4 + $0xe4] ss:$8 sps:$4 sm:$0xff]   ;;  %v4533_v19 = vld [vmem:[#allocation7 + $0x34] ss:$8 sps:$4 sm:$0xff]  }
 0x156   : > { %1134 = vmatprep.subr.bf16.mxu1 %v4521_v13  ;;  %v4535_v20 = vld [vmem:[#allocation7 + $0x30] ss:$8 sps:$4 sm:$0xff]   ;;  %v4539_v21 = vld [vmem:[#allocation7 + $0x44] ss:$8 sps:$4 sm:$0xff]   ;;  %v4541_v22 = vld [vmem:[#allocation7 + $0x40] ss:$8 sps:$4 sm:$0xff]  }
 0x157   : > { %2936 = vmatpush3.bf16.msra.mxu0 %v640_v38  ;;  %v3546_v23 = vld [vmem:[#allocation4 + $0xe0] ss:$8 sps:$4 sm:$0xff]   ;;  %v3547_v24 = vld [vmem:[#allocation4 + $0xf4] ss:$8 sps:$4 sm:$0xff]   ;;  %v4547_v26 = vld [vmem:[#allocation7 + $0x50] ss:$8 sps:$4 sm:$0xff]  }
 0x158   : > { %2937 = vmatprep.subr.bf16.mxu0 %v649_v40  ;;  %v4545_v25 = vld [vmem:[#allocation7 + $0x54] ss:$8 sps:$4 sm:$0xff]   ;;  %v4551_v27 = vld [vmem:[#allocation7 + $0x64] ss:$8 sps:$4 sm:$0xff]   ;;  %v4553_v28 = vld [vmem:[#allocation7 + $0x60] ss:$8 sps:$4 sm:$0xff]  }
 0x159   : > { %1135 = vmatpush1.bf16.msra.mxu1 %v4523_v14  ;;  %v3549_v29 = vld [vmem:[#allocation4 + $0xf0] ss:$8 sps:$4 sm:$0xff]   ;;  %v4557_v30 = vld [vmem:[#allocation7 + $0x74] ss:$8 sps:$4 sm:$0xff]   ;;  %v4563_v32 = vld [vmem:[#allocation6 + $0x4] ss:$8 sps:$4 sm:$0xff]  }
 0x15a   : > { %1136 = vmatprep.subr.bf16.mxu1 %v4527_v15  ;;  %v4559_v31 = vld [vmem:[#allocation7 + $0x70] ss:$8 sps:$4 sm:$0xff]  }
 0x15b   : > { %2938 = vmatpush3.bf16.msra.mxu0 %v641_v44 }
 0x15c   : > { %2939 = vmatprep.subr.bf16.mxu0 %v650_v46 }
 0x15d   : > { %1137 = vmatpush1.bf16.msra.mxu1 %v4529_v16 }
 0x15e   : > { %1138 = vmatprep.subr.bf16.mxu1 %v4533_v19 }
 0x15f   : > { %2940 = vmatpush3.bf16.msra.mxu0 %v642_v48 }
 0x161   : > { %1139 = vmatpush1.bf16.msra.mxu1 %v4535_v20 }
 0x162   : > { %876 = vmatmul.mubr.bf16.vlgmr.msra.gmra.mrb[0].mxu0 %v3502_v49  ;;  %1140 = vmatprep.subr.bf16.mxu1 %v4539_v21 }
 0x163   : > { %883 = vmatprep.mubr.bf16.mxu0 %v3505_v50 }
 0x165   : > { %1141 = vmatpush1.bf16.msra.mxu1 %v4541_v22 }
 0x166   : > { %1142 = vmatprep.subr.bf16.mxu1 %v4545_v25 }
 0x169   : > { %1143 = vmatpush1.bf16.msra.mxu1 %v4547_v26 }
 0x16a   : > { %884 = vmatmul.mubr.bf16.gmra.mrb[4].mxu0 %v3507_v51  ;;  %1144 = vmatprep.subr.bf16.mxu1 %v4551_v27 }
 0x16b   : > { %891 = vmatprep.mubr.bf16.mxu0 %v3508_v52 }
 0x16d   : > { %1145 = vmatpush1.bf16.msra.mxu1 %v4553_v28 }
 0x16e   : > { %1146 = vmatprep.subr.bf16.mxu1 %v4557_v30 }
 0x171   : > { %1147 = vmatpush1.bf16.msra.mxu1 %v4559_v31 }
 0x172   : > { %892 = vmatmul.mubr.bf16.gmra.mrb[8].mxu0 %v3510_v53  ;;  %1285 = vmatprep.subr.bf16.mxu1 %v4563_v32 }
 0x173   : > { %899 = vmatprep.mubr.bf16.mxu0 %v3511_v54 }
 0x17a   : > { %900 = vmatmul.mubr.bf16.gmra.mrb[12].mxu0 %v3513_v55 }
 0x17b   : > { %907 = vmatprep.mubr.bf16.mxu0 %v3514_v56 }
 0x182   : > { %908 = vmatmul.mubr.bf16.gmra.mrb[16].mxu0 %v3516_v57 }
 0x183   : > { %915 = vmatprep.mubr.bf16.mxu0 %v3517_v58 }
 0x18a   : > { %916 = vmatmul.mubr.bf16.gmra.mrb[20].mxu0 %v3519_v59 }
 0x18b   : > { %923 = vmatprep.mubr.bf16.mxu0 %v3520_v60 }
 0x192   : > { %924 = vmatmul.mubr.bf16.gmra.mrb[24].mxu0 %v3522_v61 }
 0x193   : > { %931 = vmatprep.mubr.bf16.mxu0 %v3523_v62 }
 0x19a   : > { %932 = vmatmul.mubr.bf16.gmra.mrb[28].mxu0 %v3525_v63  ;;  %v3598_v63 = vld [vmem:[#allocation10 + $0x40] sm:$0xff]  }
 0x19b   : > { %939 = vmatprep.mubr.bf16.mxu0 %v3526_v0  ;;  %v3599_v0 = vld [vmem:[#allocation10] sm:$0xff]   ;;  %3037 = vmatprep.subr.bf16.mxu0 %v3598_v63 }
 0x19c   : > { %3038 = vmatpush3.bf16.msra.mxu0 %v3599_v0  ;;  %v4616_v63 = vld [vmem:[#allocation6 + $0x40] ss:$8 sps:$4 sm:$0xff]  }
 0x1a2   : > { %940 = vmatmul.mubr.bf16.gmra.mrb[32].mxu0 %v3528_v1  ;;  %v3600_v1 = vld [vmem:[#allocation10 + $0x48] sm:$0xff]  }
 0x1a3   : > { %947 = vmatprep.mubr.bf16.mxu0 %v3529_v2  ;;  %3039 = vmatprep.subr.bf16.mxu0 %v3600_v1  ;;  %v4619_v1 = vld [vmem:[#allocation6 + $0x54] ss:$8 sps:$4 sm:$0xff]  }
 0x1aa   : > { %948 = vmatmul.mubr.bf16.gmra.mrb[36].mxu0 %v3531_v3 }
 0x1ab   : > { %955 = vmatprep.mubr.bf16.mxu0 %v3532_v4 }
 0x1b2   : > { %956 = vmatmul.mubr.bf16.gmra.mrb[40].mxu0 %v3534_v5 }
 0x1b3   : > { %963 = vmatprep.mubr.bf16.mxu0 %v3535_v6  ;;  %v3601_v6 = vld [vmem:[#allocation10 + $0x8] sm:$0xff]  }
 0x1b4   : > { %3040 = vmatpush3.bf16.msra.mxu0 %v3601_v6 }
 0x1ba   : > { %964 = vmatmul.mubr.bf16.gmra.mrb[44].mxu0 %v3537_v7 }
 0x1bb   : > { %971 = vmatprep.mubr.bf16.mxu0 %v3538_v8  ;;  %v3602_v8 = vld [vmem:[#allocation10 + $0x50] sm:$0xff]  }
 0x1bc   : > { %3041 = vmatprep.subr.bf16.mxu0 %v3602_v8 }
 0x1c2   : > { %972 = vmatmul.mubr.bf16.gmra.mrb[48].mxu0 %v3540_v11  ;;  %v4591_v11 = vld [vmem:[#allocation6] ss:$8 sps:$4 sm:$0xff]  }
 0x1c3   : > { %979 = vmatprep.mubr.bf16.mxu0 %v3541_v12 }
 0x1ca   : > { %980 = vmatmul.mubr.bf16.gmra.mrb[52].mxu0 %v3543_v17  ;;  %v4593_v17 = vld [vmem:[#allocation6 + $0x14] ss:$8 sps:$4 sm:$0xff]  }
 0x1cb   : > { %987 = vmatprep.mubr.bf16.mxu0 %v3544_v18  ;;  %v3603_v18 = vld [vmem:[#allocation10 + $0x10] sm:$0xff]  }
 0x1cc   : > { %3042 = vmatpush3.bf16.msra.mxu0 %v3603_v18  ;;  %v4629_v18 = vld [vmem:[#allocation6 + $0x60] ss:$8 sps:$4 sm:$0xff]  }
 0x1d2   : > { %988 = vmatmul.mubr.bf16.gmra.mrb[56].mxu0 %v3546_v23 }
 0x1d3   : > { %995 = vmatprep.mubr.bf16.mxu0 %v3547_v24  ;;  %v3604_v24 = vld [vmem:[#allocation10 + $0x58] sm:$0xff]  }
 0x1d4   : > { %3043 = vmatprep.subr.bf16.mxu0 %v3604_v24  ;;  %v4632_v24 = vld [vmem:[#allocation6 + $0x74] ss:$8 sps:$4 sm:$0xff]  }
 0x1da   : > { %996 = vmatmul.mubr.bf16.gmra.mrb[60].mxu0 %v3549_v29 }
 0x235   : > { %v2941_v34 = vpop.f32.mrb[0].mxu0 }
 0x236   : > { %v2942_v35 = vpop.f32.mrb[1].mxu0 }
 0x237   : > { %v4567_v36 = vadd.f32 %v2942_v35, %v2941_v34  ;;  %v2944_v37 = vpop.f32.mrb[2].mxu0  ;;  %v4596_v34 = vld [vmem:[#allocation6 + $0x10] ss:$8 sps:$4 sm:$0xff]  }
 0x238   : > { %v2945_v38 = vpop.f32.mrb[3].mxu0 }
 0x239   : > { %v4569_v39 = vadd.f32 %v2945_v38, %v2944_v37  ;;  %v4600_v38 = vld [vmem:[#allocation6 + $0x24] ss:$8 sps:$4 sm:$0xff]  }
 0x23b   : > { %v1004_v40 = vpack.c.bf16 %v4569_v39, %v4567_v36 }
 0x23d   : > { %v2947_v41 = vpop.f32.mrb[4].mxu0 }
 0x23e   : > { %v2948_v42 = vpop.f32.mrb[5].mxu0 }
 0x23f   : > { %v4573_v43 = vadd.f32 %v2948_v42, %v2947_v41  ;;  %v2950_v44 = vpop.f32.mrb[6].mxu0 }
 0x240   : > { %v2951_v45 = vpop.f32.mrb[7].mxu0 }
 0x241   : > { %v4575_v46 = vadd.f32 %v2951_v45, %v2950_v44  ;;  %v4603_v44 = vld [vmem:[#allocation6 + $0x20] ss:$8 sps:$4 sm:$0xff]  }
 0x243   : > { %v1005_v47 = vpack.c.bf16 %v4575_v46, %v4573_v43 }
 0x245   : > { %v2953_v48 = vpop.f32.mrb[8].mxu0 }
 0x246   : > { %v2954_v49 = vpop.f32.mrb[9].mxu0 }
 0x247   : > { %v4579_v50 = vadd.f32 %v2954_v49, %v2953_v48  ;;  %v2956_v51 = vpop.f32.mrb[10].mxu0  ;;  %v4606_v48 = vld [vmem:[#allocation6 + $0x34] ss:$8 sps:$4 sm:$0xff]  }
 0x248   : > { %v2957_v52 = vpop.f32.mrb[11].mxu0 }
 0x249   : > { %v4581_v53 = vadd.f32 %v2957_v52, %v2956_v51  ;;  %v4609_v52 = vld [vmem:[#allocation6 + $0x30] ss:$8 sps:$4 sm:$0xff]  }
 0x24b   : > { %v1006_v54 = vpack.c.bf16 %v4581_v53, %v4579_v50 }
 0x24d   : > { %v2959_v55 = vpop.f32.mrb[12].mxu0 }
 0x24e   : > { %v2960_v56 = vpop.f32.mrb[13].mxu0 }
 0x24f   : > { %v4585_v57 = vadd.f32 %v2960_v56, %v2959_v55  ;;  %v2962_v58 = vpop.f32.mrb[14].mxu0 }
 0x250   : > { %v2963_v59 = vpop.f32.mrb[15].mxu0 }
 0x251   : > { %v4587_v60 = vadd.f32 %v2963_v59, %v2962_v58  ;;  %v4613_v58 = vld [vmem:[#allocation6 + $0x44] ss:$8 sps:$4 sm:$0xff]  }
 0x253   : > { %v1007_v61 = vpack.c.bf16 %v4587_v60, %v4585_v57 }
 0x255   : > { %v2965_v62 = vpop.f32.mrb[16].mxu0 }
 0x256   : > { %v2966_v2 = vpop.f32.mrb[17].mxu0 }
 0x257   : > { %v2967_v3 = vadd.f32 %v2966_v2, %v2965_v62  ;;  %v2968_v4 = vpop.f32.mrb[18].mxu0 }
 0x258   : > { %v2969_v5 = vpop.f32.mrb[19].mxu0 }
 0x259   : > { %v2970_v7 = vadd.f32 %v2969_v5, %v2968_v4  ;;  %v4622_v4 = vld [vmem:[#allocation6 + $0x50] ss:$8 sps:$4 sm:$0xff]  }
 0x25b   : > { %v1008_v12 = vpack.c.bf16 %v2970_v7, %v2967_v3  ;;  %v4626_v7 = vld [vmem:[#allocation6 + $0x64] ss:$8 sps:$4 sm:$0xff]  }
 0x25d   : > { %v2971_v23 = vpop.f32.mrb[20].mxu0  ;;  %1165 = vmatmul.mubr.bf16.vlgmr.msra.gmra.mrb[0].mxu1 %v1008_v12 }
 0x25e   : > { %v2972_v29 = vpop.f32.mrb[21].mxu0  ;;  %1286 = vmatpush1.bf16.msra.mxu1 %v4591_v11  ;;  %1174 = vmatprep.mubr.bf16.mxu1 %v4047_v33 }
 0x25f   : > { %v2973_v35 = vadd.f32 %v2972_v29, %v2971_v23  ;;  %v2974_v37 = vpop.f32.mrb[22].mxu0  ;;  %1287 = vmatprep.subr.bf16.mxu1 %v4593_v17 }
 0x260   : > { %v2975_v41 = vpop.f32.mrb[23].mxu0 }
 0x261   : > { %v2976_v42 = vadd.f32 %v2975_v41, %v2974_v37  ;;  %v4635_v37 = vld [vmem:[#allocation6 + $0x70] ss:$8 sps:$4 sm:$0xff]  }
 0x262   : > { %1288 = vmatpush1.bf16.msra.mxu1 %v4596_v34 }
 0x263   : > { %v1009_v45 = vpack.c.bf16 %v2976_v42, %v2973_v35  ;;  %1289 = vmatprep.subr.bf16.mxu1 %v4600_v38 }
 0x265   : > { %v2977_v49 = vpop.f32.mrb[24].mxu0  ;;  %1175 = vmatmul.mubr.bf16.gmra.mrb[4].mxu1 %v1009_v45 }
 0x266   : > { %v2978_v51 = vpop.f32.mrb[25].mxu0  ;;  %1290 = vmatpush1.bf16.msra.mxu1 %v4603_v44  ;;  %1184 = vmatprep.mubr.bf16.mxu1 %v4047_v33 }
 0x267   : > { %v2979_v55 = vadd.f32 %v2978_v51, %v2977_v49  ;;  %v2980_v56 = vpop.f32.mrb[26].mxu0  ;;  %1291 = vmatprep.subr.bf16.mxu1 %v4606_v48 }
 0x268   : > { %v2981_v59 = vpop.f32.mrb[27].mxu0 }
 0x269   : > { %v2982_v62 = vadd.f32 %v2981_v59, %v2980_v56 }
 0x26a   : > { %1292 = vmatpush1.bf16.msra.mxu1 %v4609_v52 }
 0x26b   : > { %v1010_v0 = vpack.c.bf16 %v2982_v62, %v2979_v55  ;;  %1293 = vmatprep.subr.bf16.mxu1 %v4613_v58 }
 0x26d   : > { %v2983_v2 = vpop.f32.mrb[28].mxu0  ;;  %1185 = vmatmul.mubr.bf16.gmra.mrb[8].mxu1 %v1010_v0 }
 0x26e   : > { %v2984_v3 = vpop.f32.mrb[29].mxu0  ;;  %1294 = vmatpush1.bf16.msra.mxu1 %v4616_v63  ;;  %1194 = vmatprep.mubr.bf16.mxu1 %v4047_v33 }
 0x26f   : > { %v2985_v5 = vadd.f32 %v2984_v3, %v2983_v2  ;;  %v2986_v6 = vpop.f32.mrb[30].mxu0  ;;  %1295 = vmatprep.subr.bf16.mxu1 %v4619_v1 }
 0x270   : > { %v2987_v8 = vpop.f32.mrb[31].mxu0 }
 0x271   : > { %v2988_v12 = vadd.f32 %v2987_v8, %v2986_v6 }
 0x272   : > { %1296 = vmatpush1.bf16.msra.mxu1 %v4622_v4 }
 0x273   : > { %v1011_v23 = vpack.c.bf16 %v2988_v12, %v2985_v5  ;;  %1297 = vmatprep.subr.bf16.mxu1 %v4626_v7 }
 0x275   : > { %v2989_v29 = vpop.f32.mrb[32].mxu0  ;;  %1195 = vmatmul.mubr.bf16.gmra.mrb[12].mxu1 %v1011_v23 }
 0x276   : > { %v2990_v35 = vpop.f32.mrb[33].mxu0  ;;  %1298 = vmatpush1.bf16.msra.mxu1 %v4629_v18  ;;  %1317 = vmatprep.mubr.bf16.mxu1 %v4047_v33 }
 0x277   : > { %v4638_v41 = vadd.f32 %v2990_v35, %v2989_v29  ;;  %v2992_v42 = vpop.f32.mrb[34].mxu0  ;;  %1299 = vmatprep.subr.bf16.mxu1 %v4632_v24 }
 0x278   : > { %v2993_v45 = vpop.f32.mrb[35].mxu0 }
 0x279   : > { %v4641_v49 = vadd.f32 %v2993_v45, %v2992_v42  ;;  %v3616_v42 = vld [vmem:[#allocation12 + $0x50] sm:$0xff]   ;;  %v3622_v45 = vld [vmem:[#allocation10 + $0x78] sm:$0xff]  }
 0x27a   : > { %1300 = vmatpush1.bf16.msra.mxu1 %v4635_v37 }
 0x27b   : > { %v1012_v51 = vpack.c.bf16 %v4641_v49, %v4638_v41  ;;  %1358 = vmatprep.subr.bf16.mxu1 %v4515_v9  ;;  %v3615_v41 = vld [vmem:[#allocation12 + $0x8] sm:$0xff]   ;;  %v3617_v49 = vld [vmem:[#allocation12 + $0x10] sm:$0xff]  }
 0x27d   : > { %v2995_v55 = vpop.f32.mrb[36].mxu0  ;;  %1318 = vmatmul.mubr.bf16.vlgmr.msra.gmra.mrb[0].mxu1 %v1004_v40 }
 0x27e   : > { %v2996_v56 = vpop.f32.mrb[37].mxu0  ;;  %1359 = vmatpush1.bf16.msra.mxu1 %v4517_v10  ;;  %1327 = vmatprep.mubr.bf16.mxu1 %v4047_v33 }
 0x27f   : > { %v4652_v59 = vadd.f32 %v2996_v56, %v2995_v55  ;;  %v2998_v62 = vpop.f32.mrb[38].mxu0  ;;  %1360 = vmatprep.subr.bf16.mxu1 %v4521_v13  ;;  %v3619_v55 = vld [vmem:[#allocation12 + $0x18] sm:$0xff]   ;;  %v3620_v56 = vld [vmem:[#allocation12 + $0x60] sm:$0xff]  }
 0x280   : > { %v2999_v0 = vpop.f32.mrb[39].mxu0 }
 0x281   : > { %v4655_v2 = vadd.f32 %v2999_v0, %v2998_v62  ;;  %v3623_v62 = vld [vmem:[#allocation12 + $0x68] sm:$0xff]  }
 0x282   : > { %1361 = vmatpush1.bf16.msra.mxu1 %v4523_v14  ;;  %v3625_v0 = vld [vmem:[#allocation12 + $0x28] sm:$0xff]  }
 0x283   : > { %v1013_v9 = vpack.c.bf16 %v4655_v2, %v4652_v59  ;;  %1362 = vmatprep.subr.bf16.mxu1 %v4527_v15  ;;  %v3621_v59 = vld [vmem:[#allocation12 + $0x20] sm:$0xff]   ;;  %v3626_v2 = vld [vmem:[#allocation12 + $0x70] sm:$0xff]  }
 0x285   : > { %v3001_v36 = vpop.f32.mrb[40].mxu0  ;;  %1328 = vmatmul.mubr.bf16.gmra.mrb[4].mxu1 %v1005_v47 }
 0x286   : > { %v3002_v10 = vpop.f32.mrb[41].mxu0  ;;  %1363 = vmatpush1.bf16.msra.mxu1 %v4529_v16  ;;  %1337 = vmatprep.mubr.bf16.mxu1 %v4047_v33 }
 0x287   : > { %v4666_v13 = vadd.f32 %v3002_v10, %v3001_v36  ;;  %v3004_v39 = vpop.f32.mrb[42].mxu0  ;;  %1364 = vmatprep.subr.bf16.mxu1 %v4533_v19  ;;  %v3624_v36 = vld [vmem:[#allocation10 + $0x38] sm:$0xff]  }
 0x288   : > { %v3005_v14 = vpop.f32.mrb[43].mxu0  ;;  %v3628_v10 = vld [vmem:[#allocation12 + $0x78] sm:$0xff]  }
 0x289   : > { %v4669_v40 = vadd.f32 %v3005_v14, %v3004_v39 }
 0x28a   : > { %1365 = vmatpush1.bf16.msra.mxu1 %v4535_v20 }
 0x28b   : > { %v1014_v15 = vpack.c.bf16 %v4669_v40, %v4666_v13  ;;  %1366 = vmatprep.subr.bf16.mxu1 %v4539_v21  ;;  %v3629_v13 = vld [vmem:[#allocation12 + $0x38] sm:$0xff]  }
 0x28d   : > { %v3007_v43 = vpop.f32.mrb[44].mxu0  ;;  %1338 = vmatmul.mubr.bf16.gmra.mrb[8].mxu1 %v1006_v54 }
 0x28e   : > { %v3008_v16 = vpop.f32.mrb[45].mxu0  ;;  %1367 = vmatpush1.bf16.msra.mxu1 %v4541_v22  ;;  %1347 = vmatprep.mubr.bf16.mxu1 %v4047_v33 }
 0x28f   : > { %v4680_v19 = vadd.f32 %v3008_v16, %v3007_v43  ;;  %v3010_v46 = vpop.f32.mrb[46].mxu0  ;;  %1368 = vmatprep.subr.bf16.mxu1 %v4545_v25 }
 0x290   : > { %v3011_v20 = vpop.f32.mrb[47].mxu0 }
 0x291   : > { %v4683_v47 = vadd.f32 %v3011_v20, %v3010_v46 }
 0x292   : > { %1369 = vmatpush1.bf16.msra.mxu1 %v4547_v26 }
 0x293   : > { %v1015_v21 = vpack.c.bf16 %v4683_v47, %v4680_v19  ;;  %1370 = vmatprep.subr.bf16.mxu1 %v4551_v27 }
 0x295   : > { %v3013_v50 = vpop.f32.mrb[48].mxu0  ;;  %1348 = vmatmul.mubr.bf16.gmra.mrb[12].mxu1 %v1007_v61 }
 0x296   : > { %v3014_v22 = vpop.f32.mrb[49].mxu0  ;;  %1371 = vmatpush1.bf16.msra.mxu1 %v4553_v28  ;;  %1390 = vmatprep.mubr.bf16.mxu1 %v4047_v33 }
 0x297   : > { %v3015_v25 = vadd.f32 %v3014_v22, %v3013_v50  ;;  %v3016_v53 = vpop.f32.mrb[50].mxu0  ;;  %1372 = vmatprep.subr.bf16.mxu1 %v4557_v30 }
 0x298   : > { %v3017_v26 = vpop.f32.mrb[51].mxu0 }
 0x299   : > { %v3018_v54 = vadd.f32 %v3017_v26, %v3016_v53 }
 0x29a   : > { %1373 = vmatpush1.bf16.msra.mxu1 %v4559_v31 }
 0x29b   : > { %v1016_v3 = vpack.c.bf16 %v3018_v54, %v3015_v25  ;;  %1431 = vmatprep.subr.bf16.mxu1 %v4563_v32  ;;  %v1522_v54 = vlaneseq }
 0x29d   : > { %v3019_v27 = vpop.f32.mrb[52].mxu0  ;;  %1391 = vmatmul.mubr.bf16.vlgmr.msra.gmra.mrb[16].mxu1 %v1016_v3  ;;  %v1523_v3 = vshrl.u32 %v1522_v54, 7 }
 0x29e   : > { %v3020_v57 = vpop.f32.mrb[53].mxu0  ;;  %1432 = vmatpush1.bf16.msra.mxu1 %v4591_v11  ;;  %1400 = vmatprep.mubr.bf16.mxu1 %v4047_v33 }
 0x29f   : > { %v3021_v28 = vadd.f32 %v3020_v57, %v3019_v27  ;;  %v3022_v60 = vpop.f32.mrb[54].mxu0  ;;  %1433 = vmatprep.subr.bf16.mxu1 %v4593_v17  ;;  %v1524_v27 = vsub.s32 0, %v1523_v3  ;;  %v1520_v57 = vld [vmem:[#allocation9] sm:$0x3] }
 0x2a0   : > { %v3023_v61 = vpop.f32.mrb[55].mxu0 }
 0x2a1   : > { %v3024_v30 = vadd.f32 %v3023_v61, %v3022_v60 }
 0x2a2   : > { %1434 = vmatpush1.bf16.msra.mxu1 %v4596_v34 }
 0x2a3   : > { %v1017_v5 = vpack.c.bf16 %v3024_v30, %v3021_v28  ;;  %1435 = vmatprep.subr.bf16.mxu1 %v4600_v38  ;;  %v1528_v28 = vsub.s32 1, %v1523_v3  ;;  %v4739_v30 = vrot.slane %v1520_v57, %v1524_v27  ;;  %v4048_v27 = vmov 0.0  }
 0x2a5   : > { %v3025_v31 = vpop.f32.mrb[56].mxu0  ;;  %1401 = vmatmul.mubr.bf16.gmra.mrb[20].mxu1 %v1017_v5 }
 0x2a6   : > { %v3026_v32 = vpop.f32.mrb[57].mxu0  ;;  %1436 = vmatpush1.bf16.msra.mxu1 %v4603_v44  ;;  %1410 = vmatprep.mubr.bf16.mxu1 %v4047_v33 }
 0x2a7   : > { %v3027_v11 = vadd.f32 %v3026_v32, %v3025_v31  ;;  %v3028_v6 = vpop.f32.mrb[58].mxu0  ;;  %1437 = vmatprep.subr.bf16.mxu1 %v4606_v48  ;;  %v1529_v32 = vrot.slane %v1520_v57, %v1528_v28  ;;  %v4762_v57 = vld [vmem:[#allocation16 + $0x10] sm:$0xff]   ;;  %v4766_v28 = vld [vmem:[#allocation16 + $0x18] sm:$0xff]  }
 0x2a8   : > { %v3029_v8 = vpop.f32.mrb[59].mxu0 }
 0x2a9   : > { %v3030_v17 = vadd.f32 %v3029_v8, %v3028_v6 }
 0x2aa   : > { %1438 = vmatpush1.bf16.msra.mxu1 %v4609_v52  ;;  %v3605_v52 = vld [vmem:[#allocation10 + $0x18] sm:$0xff]  }
 0x2ab   : > { %v1018_v12 = vpack.c.bf16 %v3030_v17, %v3027_v11  ;;  %1439 = vmatprep.subr.bf16.mxu1 %v4613_v58  ;;  %3044 = vmatpush3.bf16.msra.mxu0 %v3605_v52  ;;  %v3606_v58 = vld [vmem:[#allocation10 + $0x60] sm:$0xff]  }
 0x2ac   : > { %3045 = vmatprep.subr.bf16.mxu0 %v3606_v58 }
 0x2ad   : > { %v3031_v34 = vpop.f32.mrb[60].mxu0  ;;  %1411 = vmatmul.mubr.bf16.gmra.mrb[24].mxu1 %v1018_v12 }
 0x2ae   : > { %v3032_v38 = vpop.f32.mrb[61].mxu0  ;;  %1440 = vmatpush1.bf16.msra.mxu1 %v4616_v63  ;;  %1420 = vmatprep.mubr.bf16.mxu1 %v4047_v33  ;;  %v3607_v63 = vld [vmem:[#allocation10 + $0x20] sm:$0xff]  }
 0x2af   : > { %v3033_v44 = vadd.f32 %v3032_v38, %v3031_v34  ;;  %v3034_v23 = vpop.f32.mrb[62].mxu0  ;;  %1441 = vmatprep.subr.bf16.mxu1 %v4619_v1  ;;  %3046 = vmatpush3.bf16.msra.mxu0 %v3607_v63  ;;  %v3608_v1 = vld [vmem:[#allocation10 + $0x68] sm:$0xff]  }
 0x2b0   : > { %v3035_v29 = vpop.f32.mrb[63].mxu0  ;;  %3047 = vmatprep.subr.bf16.mxu0 %v3608_v1 }
 0x2b1   : > { %v3036_v48 = vadd.f32 %v3035_v29, %v3034_v23 }
 0x2b2   : > { %1442 = vmatpush1.bf16.msra.mxu1 %v4622_v4  ;;  %v3609_v4 = vld [vmem:[#allocation10 + $0x28] sm:$0xff]  }
 0x2b3   : > { %v1019_v35 = vpack.c.bf16 %v3036_v48, %v3033_v44  ;;  %1443 = vmatprep.subr.bf16.mxu1 %v4626_v7  ;;  %v3610_v7 = vld [vmem:[#allocation12 + $0x40] sm:$0xff]   ;;  %3048 = vmatpush3.bf16.msra.mxu0 %v3609_v4 }
 0x2b5   : > { %1421 = vmatmul.mubr.bf16.gmra.mrb[28].mxu1 %v1019_v35 }
 0x2b6   : > { %1444 = vmatpush1.bf16.msra.mxu1 %v4629_v18  ;;  %1463 = vmatprep.mubr.bf16.mxu1 %v4047_v33  ;;  %v3611_v18 = vld [vmem:[#allocation12] sm:$0xff]  }
 0x2b7   : > { %1445 = vmatprep.subr.bf16.mxu1 %v4632_v24  ;;  %v3612_v24 = vld [vmem:[#allocation10 + $0x70] sm:$0xff]  }
 0x2b8   : > { %3049 = vmatprep.subr.bf16.mxu0 %v3612_v24 }
 0x2ba   : > { %1446 = vmatpush1.bf16.msra.mxu1 %v4635_v37  ;;  %v3613_v37 = vld [vmem:[#allocation12 + $0x48] sm:$0xff]  }
 0x2bb   : > { %3077 = vmatprep.subr.bf16.mxu1 %v3610_v7 }
 0x2bd   : > { %1464 = vmatmul.mubr.bf16.vlgmr.msra.gmra.mrb[16].mxu1 %v1012_v51  ;;  %v3618_v51 = vld [vmem:[#allocation12 + $0x58] sm:$0xff]  }
 0x2be   : > { %1473 = vmatprep.mubr.bf16.mxu1 %v4047_v33  ;;  %3078 = vmatpush3.bf16.msra.mxu1 %v3611_v18 }
 0x2bf   : > { %3079 = vmatprep.subr.bf16.mxu1 %v3613_v37 }
 0x2c2   : > { %3080 = vmatpush3.bf16.msra.mxu1 %v3615_v41 }
 0x2c3   : > { %3081 = vmatprep.subr.bf16.mxu1 %v3616_v42 }
 0x2c5   : > { %1474 = vmatmul.mubr.bf16.gmra.mrb[20].mxu1 %v1013_v9  ;;  %v3627_v9 = vld [vmem:[#allocation12 + $0x30] sm:$0xff]  }
 0x2c6   : > { %1483 = vmatprep.mubr.bf16.mxu1 %v4047_v33  ;;  %3082 = vmatpush3.bf16.msra.mxu1 %v3617_v49 }
 0x2c7   : > { %3083 = vmatprep.subr.bf16.mxu1 %v3618_v51 }
 0x2ca   : > { %3084 = vmatpush3.bf16.msra.mxu1 %v3619_v55 }
 0x2cb   : > { %3085 = vmatprep.subr.bf16.mxu1 %v3620_v56 }
 0x2cd   : > { %1484 = vmatmul.mubr.bf16.gmra.mrb[24].mxu1 %v1014_v15 }
 0x2ce   : > { %1493 = vmatprep.mubr.bf16.mxu1 %v4047_v33  ;;  %v3614_v33 = vld [vmem:[#allocation10 + $0x30] sm:$0xff]   ;;  %3086 = vmatpush3.bf16.msra.mxu1 %v3621_v59 }
 0x2cf   : > { %3050 = vmatpush3.bf16.msra.mxu0 %v3614_v33  ;;  %3087 = vmatprep.subr.bf16.mxu1 %v3623_v62 }
 0x2d0   : > { %3051 = vmatprep.subr.bf16.mxu0 %v3622_v45 }
 0x2d2   : > { %3088 = vmatpush3.bf16.msra.mxu1 %v3625_v0 }
 0x2d3   : > { %3089 = vmatprep.subr.bf16.mxu1 %v3626_v2  ;;  %3052 = vmatpush3.bf16.msra.mxu0 %v3624_v36 }
 0x2d5   : > { %1494 = vmatmul.mubr.bf16.gmra.mrb[28].mxu1 %v1015_v21 }
 0x2d6   : > { %3090 = vmatpush3.bf16.msra.mxu1 %v3627_v9 }
 0x2d7   : > { %3091 = vmatprep.subr.bf16.mxu1 %v3628_v10 }
 0x2da   : > { %3092 = vmatpush3.bf16.msra.mxu1 %v3629_v13 }
 0x2db   : > { %3195 = vmatprep.subr.bf16.mxu1 %v4048_v27 }
 0x350   : > { %v1319_v39 = vpop.f32.mrb[0].mxu1 }
 0x351   : > { %v1321_v14 = vpop.f32.mrb[1].mxu1 }
 0x352   : > { %v1323_v40 = vpop.f32.mrb[2].mxu1 }
 0x353   : > { %v1325_v15 = vpop.f32.mrb[3].mxu1 }
 0x358   : > { %v1329_v43 = vpop.f32.mrb[4].mxu1 }
 0x359   : > { %v1331_v16 = vpop.f32.mrb[5].mxu1 }
 0x35a   : > { %v1333_v19 = vpop.f32.mrb[6].mxu1 }
 0x35b   : > { %v1335_v46 = vpop.f32.mrb[7].mxu1 }
 0x360   : > { %v1339_v20 = vpop.f32.mrb[8].mxu1 }
 0x361   : > { %v1341_v47 = vpop.f32.mrb[9].mxu1 }
 0x362   : > { %v1343_v21 = vpop.f32.mrb[10].mxu1 }
 0x363   : > { %v1345_v50 = vpop.f32.mrb[11].mxu1 }
 0x368   : > { %v4731_v22 = vpop.f32.mrb[12].mxu1 }
 0x369   : > { %v4733_v25 = vpop.f32.mrb[13].mxu1 }
 0x36a   : > { %v4735_v53 = vpop.f32.mrb[14].mxu1 }
 0x36b   : > { %v4737_v26 = vpop.f32.mrb[15].mxu1 }
 0x390   : > { %v1465_v60 = vpop.f32.mrb[16].mxu1 }
 0x391   : > { %v1504_v61 = vmax.f32 %v1319_v39, %v1465_v60  ;;  %v1467_v5 = vpop.f32.mrb[17].mxu1  ;;  %v4770_v60 = vld [vmem:[#allocation16 + $0x20] sm:$0xff]  }
 0x392   : > { %v1505_v31 = vmax.f32 %v1321_v14, %v1467_v5  ;;  %v1469_v11 = vpop.f32.mrb[18].mxu1 }
 0x393   : > { %v1506_v6 = vmax.f32 %v1323_v40, %v1469_v11  ;;  %v1471_v8 = vpop.f32.mrb[19].mxu1  ;;  %v1532_v12 = vadd.f32 %v4739_v30, %v1504_v61  ;;  %v4774_v61 = vld [vmem:[#allocation16 + $0x28] sm:$0xff]  }
 0x394   : > { %v1507_v17 = vmax.f32 %v1325_v15, %v1471_v8  ;;  %v1533_v38 = vadd.f32 %v1529_v32, %v1505_v31 }
 0x395   : > { %v1534_v34 = vadd.f32 %v4739_v30, %v1506_v6 }
 0x396   : > { %v1535_v44 = vadd.f32 %v1529_v32, %v1507_v17 }
 0x397   : > { %v1548_v23 = vpack.c.bf16 %v1534_v34, %v1532_v12 }
 0x398   : > { %v1475_v29 = vpop.f32.mrb[20].mxu1  ;;  %v1549_v48 = vpack.c.bf16 %v1535_v44, %v1533_v38 }
 0x399   : > { %v1508_v35 = vmax.f32 %v1329_v43, %v1475_v29  ;;  %v1477_v52 = vpop.f32.mrb[21].mxu1 }
 0x39a   : > { %v1509_v58 = vmax.f32 %v1331_v16, %v1477_v52  ;;  %v1479_v63 = vpop.f32.mrb[22].mxu1  ;;  %1716 = vmatprep.mubr.bf16.mxu0 %v1549_v48  ;;  %1909 = vmatprep.mubr.bf16.mxu1 %v1549_v48 }
 0x39b   : > { %v1510_v1 = vmax.f32 %v1333_v19, %v1479_v63  ;;  %v1481_v4 = vpop.f32.mrb[23].mxu1  ;;  %1717 = vmatmul.mubr.bf16.vlgmr.msra.gmra.mrb[64].mxu0 %v1548_v23  ;;  %1910 = vmatmul.mubr.bf16.vlgmr.msra.gmra.mrb[32].mxu1 %v1548_v23  ;;  %v1536_v18 = vadd.f32 %v4739_v30, %v1508_v35 }
 0x39c   : > { %v1511_v7 = vmax.f32 %v1335_v46, %v1481_v4  ;;  %v1537_v37 = vadd.f32 %v1529_v32, %v1509_v58 }
 0x39d   : > { %v1538_v24 = vadd.f32 %v4739_v30, %v1510_v1 }
 0x39e   : > { %v1539_v33 = vadd.f32 %v1529_v32, %v1511_v7 }
 0x39f   : > { %v1550_v41 = vpack.c.bf16 %v1538_v24, %v1536_v18 }
 0x3a0   : > { %v1485_v42 = vpop.f32.mrb[24].mxu1  ;;  %v1551_v45 = vpack.c.bf16 %v1539_v33, %v1537_v37 }
 0x3a1   : > { %v1512_v49 = vmax.f32 %v1339_v20, %v1485_v42  ;;  %v1487_v51 = vpop.f32.mrb[25].mxu1 }
 0x3a2   : > { %v1513_v55 = vmax.f32 %v1341_v47, %v1487_v51  ;;  %v1489_v56 = vpop.f32.mrb[26].mxu1  ;;  %1724 = vmatprep.mubr.bf16.mxu0 %v1551_v45  ;;  %1917 = vmatprep.mubr.bf16.mxu1 %v1551_v45 }
 0x3a3   : > { %v1514_v59 = vmax.f32 %v1343_v21, %v1489_v56  ;;  %v1491_v62 = vpop.f32.mrb[27].mxu1  ;;  %1725 = vmatmul.mubr.bf16.gmra.mrb[68].mxu0 %v1550_v41  ;;  %1918 = vmatmul.mubr.bf16.gmra.mrb[36].mxu1 %v1550_v41  ;;  %v1540_v2 = vadd.f32 %v4739_v30, %v1512_v49 }
 0x3a4   : > { %v1515_v0 = vmax.f32 %v1345_v50, %v1491_v62  ;;  %v1541_v36 = vadd.f32 %v1529_v32, %v1513_v55 }
 0x3a5   : > { %v1542_v9 = vadd.f32 %v4739_v30, %v1514_v59 }
 0x3a6   : > { %v1543_v10 = vadd.f32 %v1529_v32, %v1515_v0 }
 0x3a7   : > { %v1552_v13 = vpack.c.bf16 %v1542_v9, %v1540_v2 }
 0x3a8   : > { %v1495_v39 = vpop.f32.mrb[28].mxu1  ;;  %v1553_v14 = vpack.c.bf16 %v1543_v10, %v1541_v36 }
 0x3a9   : > { %v1516_v40 = vmax.f32 %v4731_v22, %v1495_v39  ;;  %v1497_v15 = vpop.f32.mrb[29].mxu1 }
 0x3aa   : > { %v1517_v43 = vmax.f32 %v4733_v25, %v1497_v15  ;;  %v1499_v16 = vpop.f32.mrb[30].mxu1  ;;  %1732 = vmatprep.mubr.bf16.mxu0 %v1553_v14  ;;  %1925 = vmatprep.mubr.bf16.mxu1 %v1553_v14  ;;  %v3630_v25 = vld [vmem:[#allocation13] sm:$0xff]  }
 0x3ab   : > { %v1518_v19 = vmax.f32 %v4735_v53, %v1499_v16  ;;  %v1501_v46 = vpop.f32.mrb[31].mxu1  ;;  %1733 = vmatmul.mubr.bf16.gmra.mrb[72].mxu0 %v1552_v13  ;;  %1926 = vmatmul.mubr.bf16.gmra.mrb[40].mxu1 %v1552_v13  ;;  %v1544_v47 = vadd.f32 %v4739_v30, %v1516_v40  ;;  %v4754_v53 = vld [vmem:[#allocation16] sm:$0xff]  }
 0x3ac   : > { %v1519_v20 = vmax.f32 %v4737_v26, %v1501_v46  ;;  %v1545_v50 = vadd.f32 %v1529_v32, %v1517_v43  ;;  %3196 = vmatpush3.bf16.msra.mxu1 %v4754_v53  ;;  %v4758_v26 = vld [vmem:[#allocation16 + $0x8] sm:$0xff]  }
 0x3ad   : > { %v1546_v21 = vadd.f32 %v4739_v30, %v1518_v19  ;;  %3197 = vmatprep.subr.bf16.mxu1 %v4048_v27  ;;  %v4778_v30 = vld [vmem:[#allocation16 + $0x30] sm:$0xff]  }
 0x3ae   : > { %v1547_v54 = vadd.f32 %v1529_v32, %v1519_v20 }
 0x3af   : > { %v1554_v22 = vpack.c.bf16 %v1546_v21, %v1544_v47 }
 0x3b0   : > { %v1555_v3 = vpack.c.bf16 %v1547_v54, %v1545_v50  ;;  %3198 = vmatpush3.bf16.msra.mxu1 %v4758_v26 }
 0x3b1   : > { %3199 = vmatprep.subr.bf16.mxu1 %v4048_v27 }
 0x3b2   : > { %1740 = vmatprep.mubr.bf16.mxu0 %v1555_v3  ;;  %1933 = vmatprep.mubr.bf16.mxu1 %v1555_v3 }
 0x3b3   : > { %1741 = vmatmul.mubr.bf16.gmra.mrb[76].mxu0 %v1554_v22  ;;  %1934 = vmatmul.mubr.bf16.gmra.mrb[44].mxu1 %v1554_v22 }
 0x3b4   : > { %3187 = vmatprep.mubr.msk.bf16.mxu0 %vm1990_vm0, %v3630_v25  ;;  %3200 = vmatpush3.bf16.msra.mxu1 %v4762_v57 }
 0x3b5   : > { %3201 = vmatprep.subr.bf16.mxu1 %v4048_v27  ;;  %3211 = vmatprep.mubr.msk.bf16.mxu1 %vm4049_vm1, %v4048_v27 }
 0x3b8   : > { %3202 = vmatpush3.bf16.msra.mxu1 %v4766_v28 }
 0x3b9   : > { %3203 = vmatprep.subr.bf16.mxu1 %v4048_v27 }
 0x3bc   : > { %3204 = vmatpush3.bf16.msra.mxu1 %v4770_v60 }
 0x3bd   : > { %3205 = vmatprep.subr.bf16.mxu1 %v4048_v27 }
 0x3c0   : > { %3206 = vmatpush3.bf16.msra.mxu1 %v4774_v61 }
 0x3c1   : > { %3207 = vmatprep.subr.bf16.mxu1 %v4048_v27 }
 0x3c4   : > { %3208 = vmatpush3.bf16.msra.mxu1 %v4778_v30 }
 0x3c5   : > { %3209 = vmatprep.subr.bf16.mxu1 %v4048_v27 }
 0x46e   : > { %v3053_v5 = vpop.f32.mrb[64].mxu0  ;;  %v3093_v31 = vpop.f32.mrb[32].mxu1 }
 0x46f   : > { %v3054_v32 = vpop.f32.mrb[65].mxu0  ;;  %v3094_v11 = vpop.f32.mrb[33].mxu1 }
 0x470   : > { %v3055_v6 = vadd.f32 %v3054_v32, %v3053_v5  ;;  %v3095_v8 = vadd.f32 %v3094_v11, %v3093_v31  ;;  %v3056_v17 = vpop.f32.mrb[66].mxu0  ;;  %v3096_v12 = vpop.f32.mrb[34].mxu1 }
 0x471   : > { %v3057_v34 = vpop.f32.mrb[67].mxu0  ;;  %v3097_v38 = vpop.f32.mrb[35].mxu1 }
 0x472   : > { %v1942_v44 = vmax.f32 %v3055_v6, %v3095_v8  ;;  %v3058_v23 = vadd.f32 %v3057_v34, %v3056_v17  ;;  %v3098_v29 = vadd.f32 %v3097_v38, %v3096_v12 }
 0x474   : > { %v1943_v48 = vmax.f32 %v3058_v23, %v3098_v29  ;;  %v1950_v35 = vmax.f32 %v1942_v44, 0.0  ;;  %v3631_v29 = vld [vmem:[#allocation13 + $0x8] sm:$0xff]  }
 0x476   : > { %v1951_v52 = vmax.f32 %v1943_v48, 0.0  ;;  %v3059_v58 = vpop.f32.mrb[68].mxu0  ;;  %v3099_v63 = vpop.f32.mrb[36].mxu1  ;;  %v3632_v48 = vld [vmem:[#allocation13 + $0x10] sm:$0xff]  }
 0x477   : > { %v3060_v1 = vpop.f32.mrb[69].mxu0  ;;  %v3100_v4 = vpop.f32.mrb[37].mxu1 }
 0x478   : > { %v3061_v7 = vadd.f32 %v3060_v1, %v3059_v58  ;;  %v3101_v18 = vadd.f32 %v3100_v4, %v3099_v63  ;;  %v3062_v24 = vpop.f32.mrb[70].mxu0  ;;  %v3102_v37 = vpop.f32.mrb[38].mxu1  ;;  %v1958_v33 = vpack.c.bf16 %v1951_v52, %v1950_v35  ;;  %v3633_v35 = vld [vmem:[#allocation13 + $0x18] sm:$0xff]   ;;  %v3643_v58 = vld [vmem:[#allocation15 + $0x8] sm:$0xff]  }
 0x479   : > { %v3063_v41 = vpop.f32.mrb[71].mxu0  ;;  %v3103_v42 = vpop.f32.mrb[39].mxu1 }
 0x47a   : > { %v1944_v45 = vmax.f32 %v3061_v7, %v3101_v18  ;;  %v3064_v49 = vadd.f32 %v3063_v41, %v3062_v24  ;;  %v3104_v51 = vadd.f32 %v3103_v42, %v3102_v37  ;;  %3179 = vmatprep.subr.bf16.mxu0 %v1958_v33  ;;  %v3644_v7 = vld [vmem:[#allocation15 + $0x10] sm:$0xff]   ;;  %v3646_v41 = vld [vmem:[#allocation15 + $0x20] sm:$0xff]   ;;  %v3647_v42 = vld [vmem:[#allocation15 + $0x28] sm:$0xff]  }
 0x47b   : > { %3180 = vmatpush3.bf16.msra.mxu0 %v1958_v33  ;;  %v3645_v33 = vld [vmem:[#allocation15 + $0x18] sm:$0xff]  }
 0x47c   : > { %v1945_v55 = vmax.f32 %v3064_v49, %v3104_v51  ;;  %v1952_v56 = vmax.f32 %v1944_v45, 0.0  ;;  %v3648_v45 = vld [vmem:[#allocation15 + $0x30] sm:$0xff]   ;;  %v3649_v49 = vld [vmem:[#allocation15 + $0x38] sm:$0xff]  }
 0x47d   : > { %v3650_v51 = vld [vmem:[%s4970_s15] sm:$0xff]  }
 0x47e   : > { %v1953_v59 = vmax.f32 %v1945_v55, 0.0  ;;  %v3065_v62 = vpop.f32.mrb[72].mxu0  ;;  %v3105_v0 = vpop.f32.mrb[40].mxu1  ;;  %v3652_v55 = vld [vmem:[%s4970_s15 + $0x8] sm:$0xff]  }
 0x47f   : > { %v3066_v2 = vpop.f32.mrb[73].mxu0  ;;  %v3106_v9 = vpop.f32.mrb[41].mxu1 }
 0x480   : > { %v3067_v36 = vadd.f32 %v3066_v2, %v3065_v62  ;;  %v3107_v10 = vadd.f32 %v3106_v9, %v3105_v0  ;;  %v3068_v13 = vpop.f32.mrb[74].mxu0  ;;  %v3108_v39 = vpop.f32.mrb[42].mxu1  ;;  %v1959_v14 = vpack.c.bf16 %v1953_v59, %v1952_v56  ;;  %v3651_v56 = vld [vmem:[%s4971_s19] sm:$0xff]   ;;  %v3654_v59 = vld [vmem:[%s4970_s15 + $0x10] sm:$0xff]   ;;  %v3653_v62 = vld [vmem:[%s4971_s19 + $0x8] sm:$0xff]  }
 0x481   : > { %v3069_v40 = vpop.f32.mrb[75].mxu0  ;;  %v3109_v15 = vpop.f32.mrb[43].mxu1  ;;  %v3656_v0 = vld [vmem:[%s4970_s15 + $0x18] sm:$0xff]   ;;  %v3655_v2 = vld [vmem:[%s4971_s19 + $0x10] sm:$0xff]  }
 0x482   : > { %v1946_v43 = vmax.f32 %v3067_v36, %v3107_v10  ;;  %v3070_v16 = vadd.f32 %v3069_v40, %v3068_v13  ;;  %v3110_v19 = vadd.f32 %v3109_v15, %v3108_v39  ;;  %3181 = vmatprep.subr.bf16.mxu0 %v1959_v14  ;;  %v3657_v9 = vld [vmem:[%s4971_s19 + $0x18] sm:$0xff]   ;;  %v3658_v36 = vld [vmem:[%s4970_s15 + $0x20] sm:$0xff]   ;;  %v3660_v13 = vld [vmem:[%s4970_s15 + $0x28] sm:$0xff]  }
 0x483   : > { %3182 = vmatpush3.bf16.msra.mxu0 %v1959_v14  ;;  %v3659_v10 = vld [vmem:[%s4971_s19 + $0x20] sm:$0xff]   ;;  %v3661_v39 = vld [vmem:[%s4971_s19 + $0x28] sm:$0xff]   ;;  %v3662_v14 = vld [vmem:[%s4970_s15 + $0x30] sm:$0xff]  }
 0x484   : > { %v1947_v46 = vmax.f32 %v3070_v16, %v3110_v19  ;;  %v1954_v20 = vmax.f32 %v1946_v43, 0.0  ;;  %v3663_v40 = vld [vmem:[%s4971_s19 + $0x30] sm:$0xff]   ;;  %v3664_v15 = vld [vmem:[%s4970_s15 + $0x38] sm:$0xff]  }
 0x485   : > { %v3665_v43 = vld [vmem:[%s4971_s19 + $0x38] sm:$0xff]  }
 0x486   : > { %v1955_v47 = vmax.f32 %v1947_v46, 0.0  ;;  %v3071_v21 = vpop.f32.mrb[76].mxu0  ;;  %v3111_v50 = vpop.f32.mrb[44].mxu1 }
 0x487   : > { %v3072_v54 = vpop.f32.mrb[77].mxu0  ;;  %v3112_v22 = vpop.f32.mrb[45].mxu1 }
 0x488   : > { %v3073_v3 = vadd.f32 %v3072_v54, %v3071_v21  ;;  %v3113_v25 = vadd.f32 %v3112_v22, %v3111_v50  ;;  %v3074_v5 = vpop.f32.mrb[78].mxu0  ;;  %v3114_v31 = vpop.f32.mrb[46].mxu1  ;;  %v1960_v32 = vpack.c.bf16 %v1955_v47, %v1954_v20 }
 0x489   : > { %v3075_v11 = vpop.f32.mrb[79].mxu0  ;;  %v3115_v6 = vpop.f32.mrb[47].mxu1 }
 0x48a   : > { %v1948_v8 = vmax.f32 %v3073_v3, %v3113_v25  ;;  %v3076_v17 = vadd.f32 %v3075_v11, %v3074_v5  ;;  %v3116_v12 = vadd.f32 %v3115_v6, %v3114_v31  ;;  %3183 = vmatprep.subr.bf16.mxu0 %v1960_v32 }
 0x48b   : > { %3184 = vmatpush3.bf16.msra.mxu0 %v1960_v32 }
 0x48c   : > { %v1949_v34 = vmax.f32 %v3076_v17, %v3116_v12  ;;  %v1956_v38 = vmax.f32 %v1948_v8, 0.0 }
 0x48e   : > { %v1957_v44 = vmax.f32 %v1949_v34, 0.0 }
 0x490   : > { %v1961_v23 = vpack.c.bf16 %v1957_v44, %v1956_v38 }
 0x492   : > { %3185 = vmatprep.subr.bf16.mxu0 %v1961_v23 }
 0x493   : > { %3186 = vmatpush3.bf16.msra.mxu0 %v1961_v23 }
 0x494   : > { %3235 = vmatprep.subr.bf16.mxu0 %v4048_v27 }
 0x496   : > { %3188 = vmatmul.mubr.msk.bf16.vlgmr.msra.gmra.mrb[80].mxu0 %vm1990_vm0, %v3631_v29 }
 0x497   : > { %3191 = vmatprep.mubr.msk.bf16.mxu0 %vm1990_vm0, %v3632_v48  ;;  %3236 = vmatpush3.bf16.msra.mxu0 %v4754_v53  ;;  %v3641_v53 = vld [vmem:[#allocation16 + $0x38] sm:$0xff]  }
 0x498   : > { %3237 = vmatprep.subr.bf16.mxu0 %v4048_v27  ;;  %3210 = vmatpush3.bf16.msra.mxu1 %v3641_v53 }
 0x499   : > { %3215 = vmatprep.subr.bf16.mxu1 %v4048_v27 }
 0x49b   : > { %3238 = vmatpush3.bf16.msra.mxu0 %v4758_v26 }
 0x49c   : > { %3239 = vmatprep.subr.bf16.mxu0 %v4048_v27 }
 0x49e   : > { %3192 = vmatmul.mubr.msk.bf16.gmra.mrb[84].mxu0 %vm1990_vm0, %v3633_v35 }
 0x49f   : > { %3240 = vmatpush3.bf16.msra.mxu0 %v4762_v57  ;;  %3251 = vmatprep.mubr.msk.bf16.mxu0 %vm4049_vm1, %v4048_v27 }
 0x4a0   : > { %3241 = vmatprep.subr.bf16.mxu0 %v4048_v27 }
 0x4a3   : > { %3242 = vmatpush3.bf16.msra.mxu0 %v4766_v28 }
 0x4a4   : > { %3243 = vmatprep.subr.bf16.mxu0 %v4048_v27 }
 0x4a7   : > { %3244 = vmatpush3.bf16.msra.mxu0 %v4770_v60  ;;  %v3642_v60 = vld [vmem:[#allocation15] sm:$0xff]  }
 0x4a8   : > { %3245 = vmatprep.subr.bf16.mxu0 %v4048_v27 }
 0x4ab   : > { %3246 = vmatpush3.bf16.msra.mxu0 %v4774_v61 }
 0x4ac   : > { %3247 = vmatprep.subr.bf16.mxu0 %v4048_v27 }
 0x4af   : > { %3248 = vmatpush3.bf16.msra.mxu0 %v4778_v30 }
 0x4b0   : > { %3249 = vmatprep.subr.bf16.mxu0 %v4048_v27 }
 0x4b3   : > { %3250 = vmatpush3.bf16.msra.mxu0 %v3641_v53 }
 0x4b4   : > { %3255 = vmatprep.subr.bf16.mxu0 %v4048_v27 }
 0x569   : > { %v3189_v26 = vpop.f32.mrb[80].mxu0 }
 0x56a   : > { %v2037_v57 = vpop.f32.mrb[81].mxu0 }
 0x56b   : > { %v3190_v28 = vpop.f32.mrb[82].mxu0 }
 0x56c   : > { %v2069_v61 = vpack.c.bf16 %v3190_v28, %v3189_v26  ;;  %v2040_v30 = vpop.f32.mrb[83].mxu0 }
 0x56d   : > { %v2068_v52 = vpack.c.bf16 %v2040_v30, %v2037_v57 }
 0x56e   : > { %3212 = vmatmul.mubr.bf16.vlgmr.msra.gmra.mrb[48].mxu1 %v2069_v61 }
 0x56f   : > { %3216 = vmatpush3.bf16.msra.mxu1 %v3642_v60  ;;  %3231 = vmatprep.mubr.msk.bf16.mxu1 %vm4049_vm1, %v4048_v27 }
 0x570   : > { %3217 = vmatprep.subr.bf16.mxu1 %v4048_v27 }
 0x571   : > { %v3193_v63 = vpop.f32.mrb[84].mxu0 }
 0x572   : > { %v2053_v1 = vpop.f32.mrb[85].mxu0 }
 0x573   : > { %3218 = vmatpush3.bf16.msra.mxu1 %v3643_v58  ;;  %v3194_v4 = vpop.f32.mrb[86].mxu0 }
 0x574   : > { %v2071_v18 = vpack.c.bf16 %v3194_v4, %v3193_v63  ;;  %3219 = vmatprep.subr.bf16.mxu1 %v4048_v27  ;;  %v2056_v24 = vpop.f32.mrb[87].mxu0 }
 0x575   : > { %v2070_v37 = vpack.c.bf16 %v2056_v24, %v2053_v1 }
 0x576   : > { %3252 = vmatmul.mubr.bf16.vlgmr.msra.gmra.mrb[88].mxu0 %v2071_v18 }
 0x577   : > { %3220 = vmatpush3.bf16.msra.mxu1 %v3644_v7  ;;  %3256 = vmatpush3.bf16.msra.mxu0 %v3642_v60 }
 0x578   : > { %3221 = vmatprep.subr.bf16.mxu1 %v4048_v27  ;;  %3257 = vmatprep.subr.bf16.mxu0 %v4048_v27 }
 0x579   : > { %3271 = vmatprep.mubr.msk.bf16.mxu0 %vm4049_vm1, %v4048_v27 }
 0x57b   : > { %3222 = vmatpush3.bf16.msra.mxu1 %v3645_v33  ;;  %3258 = vmatpush3.bf16.msra.mxu0 %v3643_v58 }
 0x57c   : > { %3223 = vmatprep.subr.bf16.mxu1 %v4048_v27  ;;  %3259 = vmatprep.subr.bf16.mxu0 %v4048_v27 }
 0x57f   : > { %3224 = vmatpush3.bf16.msra.mxu1 %v3646_v41  ;;  %3260 = vmatpush3.bf16.msra.mxu0 %v3644_v7 }
 0x580   : > { %3225 = vmatprep.subr.bf16.mxu1 %v4048_v27  ;;  %3261 = vmatprep.subr.bf16.mxu0 %v4048_v27 }
 0x583   : > { %3226 = vmatpush3.bf16.msra.mxu1 %v3647_v42  ;;  %3262 = vmatpush3.bf16.msra.mxu0 %v3645_v33 }
 0x584   : > { %3227 = vmatprep.subr.bf16.mxu1 %v4048_v27  ;;  %3263 = vmatprep.subr.bf16.mxu0 %v4048_v27 }
 0x587   : > { %3228 = vmatpush3.bf16.msra.mxu1 %v3648_v45  ;;  %3264 = vmatpush3.bf16.msra.mxu0 %v3646_v41 }
 0x588   : > { %3229 = vmatprep.subr.bf16.mxu1 %v4048_v27  ;;  %3265 = vmatprep.subr.bf16.mxu0 %v4048_v27 }
 0x58b   : > { %3230 = vmatpush3.bf16.msra.mxu1 %v3649_v49  ;;  %3266 = vmatpush3.bf16.msra.mxu0 %v3647_v42 }
 0x58c   : > { %3267 = vmatprep.subr.bf16.mxu0 %v4048_v27  ;;  %3275 = vmatprep.subr.bf16.mxu1 %v4048_v27 }
 0x58e   : > { %3232 = vmatmul.mubr.bf16.vlgmr.msra.gmra.mrb[48].mxu1 %v2068_v52 }
 0x58f   : > { %3268 = vmatpush3.bf16.msra.mxu0 %v3648_v45  ;;  %3276 = vmatpush3.bf16.msra.mxu1 %v3650_v51 }
 0x590   : > { %3269 = vmatprep.subr.bf16.mxu0 %v4048_v27  ;;  %3277 = vmatprep.subr.bf16.mxu1 %v4048_v27 }
 0x591   : > { %3291 = vmatprep.mubr.msk.bf16.mxu1 %vm4049_vm1, %v4048_v27 }
 0x593   : > { %3270 = vmatpush3.bf16.msra.mxu0 %v3649_v49  ;;  %3278 = vmatpush3.bf16.msra.mxu1 %v3652_v55 }
 0x594   : > { %3295 = vmatprep.subr.bf16.mxu0 %v4048_v27  ;;  %3279 = vmatprep.subr.bf16.mxu1 %v4048_v27 }
 0x596   : > { %3272 = vmatmul.mubr.bf16.vlgmr.msra.gmra.mrb[88].mxu0 %v2070_v37 }
 0x597   : > { %3296 = vmatpush3.bf16.msra.mxu0 %v3651_v56  ;;  %3280 = vmatpush3.bf16.msra.mxu1 %v3654_v59 }
 0x598   : > { %3297 = vmatprep.subr.bf16.mxu0 %v4048_v27  ;;  %3281 = vmatprep.subr.bf16.mxu1 %v4048_v27 }
 0x599   : > { %3311 = vmatprep.mubr.msk.bf16.mxu0 %vm4049_vm1, %v4048_v27 }
 0x59b   : > { %3298 = vmatpush3.bf16.msra.mxu0 %v3653_v62  ;;  %3282 = vmatpush3.bf16.msra.mxu1 %v3656_v0 }
 0x59c   : > { %3299 = vmatprep.subr.bf16.mxu0 %v4048_v27  ;;  %3283 = vmatprep.subr.bf16.mxu1 %v4048_v27 }
 0x59f   : > { %3300 = vmatpush3.bf16.msra.mxu0 %v3655_v2  ;;  %3284 = vmatpush3.bf16.msra.mxu1 %v3658_v36 }
 0x5a0   : > { %3301 = vmatprep.subr.bf16.mxu0 %v4048_v27  ;;  %3285 = vmatprep.subr.bf16.mxu1 %v4048_v27 }
 0x5a3   : > { %3302 = vmatpush3.bf16.msra.mxu0 %v3657_v9  ;;  %3286 = vmatpush3.bf16.msra.mxu1 %v3660_v13 }
 0x5a4   : > { %3303 = vmatprep.subr.bf16.mxu0 %v4048_v27  ;;  %3287 = vmatprep.subr.bf16.mxu1 %v4048_v27 }
 0x5a7   : > { %3304 = vmatpush3.bf16.msra.mxu0 %v3659_v10  ;;  %3288 = vmatpush3.bf16.msra.mxu1 %v3662_v14 }
 0x5a8   : > { %3305 = vmatprep.subr.bf16.mxu0 %v4048_v27  ;;  %3289 = vmatprep.subr.bf16.mxu1 %v4048_v27 }
 0x5ab   : > { %3306 = vmatpush3.bf16.msra.mxu0 %v3661_v39  ;;  %3290 = vmatpush3.bf16.msra.mxu1 %v3664_v15 }
 0x5ac   : > { %3307 = vmatprep.subr.bf16.mxu0 %v4048_v27 }
 0x5af   : > { %3308 = vmatpush3.bf16.msra.mxu0 %v3663_v40 }
 0x5b0   : > { %3309 = vmatprep.subr.bf16.mxu0 %v4048_v27  ;;  %v2904_v27 = vld [vmem:[#allocation18] ss:$0 sm:$0xff] }
 0x5b3   : > { %3310 = vmatpush3.bf16.msra.mxu0 %v3665_v43 }
 0x661   : > { %v2275_v16 = vpop.f32.mrb[48].mxu1 }
 0x662   : > { %v3233_v19 = vpop.f32.mrb[49].mxu1 }
 0x663   : > { %v2278_v46 = vpop.f32.mrb[50].mxu1 }
 0x664   : > { %v3234_v20 = vpop.f32.mrb[51].mxu1 }
 0x669   : > { %v2357_v47 = vpop.f32.mrb[88].mxu0 }
 0x66a   : > { %v2364_v21 = vmax.f32 %v2275_v16, %v2357_v47  ;;  %v3273_v50 = vpop.f32.mrb[89].mxu0 }
 0x66b   : > { %v2360_v54 = vpop.f32.mrb[90].mxu0 }
 0x66c   : > { %v2365_v22 = vmax.f32 %v2278_v46, %v2360_v54  ;;  %v3274_v3 = vpop.f32.mrb[91].mxu0  ;;  %v2373_v25 = vadd.f32 %v2904_v27, %v2364_v21 }
 0x66e   : > { %v2374_v5 = vadd.f32 %v2904_v27, %v2365_v22 }
 0x670   : > { %v2375_v31 = vpack.c.bf16 %v2374_v5, %v2373_v25 }
 0x672   : > { %3292 = vmatmul.mubr.bf16.vlgmr.msra.gmra.mrb[52].mxu1 %v2375_v31  ;;  %3312 = vmatmul.mubr.bf16.vlgmr.msra.gmra.mrb[92].mxu0 %v2375_v31 }
 0x745   : > { %v2474_v32 = vpop.f32.mrb[52].mxu1  ;;  %v2579_v11 = vpop.f32.mrb[92].mxu0 }
 0x746   : > { %v2586_v6 = vmax.f32 %v2474_v32, %v2579_v11  ;;  %v3293_v8 = vpop.f32.mrb[53].mxu1  ;;  %v3313_v17 = vpop.f32.mrb[93].mxu0 }
 0x747   : > { %v2477_v12 = vpop.f32.mrb[54].mxu1  ;;  %v2582_v34 = vpop.f32.mrb[94].mxu0 }
 0x748   : > { %v2588_v38 = vmax.f32 %v2586_v6, 0.0  ;;  %v2587_v44 = vmax.f32 %v2477_v12, %v2582_v34  ;;  %v3294_v23 = vpop.f32.mrb[55].mxu1  ;;  %v3314_v29 = vpop.f32.mrb[95].mxu0 }
 0x74a   : > { %2590 = vst.msk [vmem:[%s601_s24] sm:$0xff] %vm1990_vm0, %v2588_v38  ;;  %v2589_v48 = vmax.f32 %v2587_v44, 0.0 }
 0x74c   : > { %2591 = vst.msk [vmem:[%s601_s24 + $0x8] sm:$0xff] %vm1990_vm0, %v2589_v48 }
 0x74d PF: > { %p28_p7 = scmp.ge.s32.totalorder %s4390_s16, 4   ;;  %s4973_s25 = smov %s4022_s26 }
 0x74e   : > { %s4974_s26 = smov %s4026_s27  ;;  %s4975_s27 = smov %s4402_s3 }
 0x74f   : > { %s4976_s28 = smov %s4390_s16  ;;  %30 = sbr.rel (!%p28_p7) target bundleno = 15 (0xf), region = 152 }
 0x756   :  { %2613 = vsyncpa [#allocation3], 1 }
 0x757   :  { %2615 = vsyncpa [#allocation3 + $0x1], 1 }
 0x758   :  { %2616 = vsyncpa [#allocation5], 1 }
 0x759   :  { %2617 = vsyncpa [#allocation8], 1 }
 0x75a   :  { %2618 = vsyncpa [#allocation11], 1 }
 0x75b   :  { %2619 = vsyncpa [#allocation14], 1 }
 0x75c   :  { %2620 = vsyncpa [#allocation17], 1 }

// kernel: feature_net_forward.3
= control target key start
LH: loop header
LB: loop body
LE: loop exit
PB: predicated region body
PF: predicated region fallthrough
CT: control target
= control target key end

     0   :  { %v48_v3 = vlaneseq  ;;  %v5922_v8 = vmov 1983009808   ;;  %vm86_vm0 = vcmask 1041408   ;;  %s7894_s0 = inlined_call_operand.vmem [shape: f32[2,1024], index: 0, kind: input, shape index: {}]   ;;  %s7895_s1 = inlined_call_operand.vmem [shape: f32[1024,8], index: 1, kind: input, shape index: {}]   ;;  %s7896_s2 = inlined_call_operand.vmem [shape: f32[8,1024], index: 2, kind: input, shape index: {}]   ;;  %s7897_s3 = inlined_call_operand.vmem [shape: f32[1,1024], index: 3, kind: input, shape index: {}]   ;;  %s7898_s4 = inlined_call_operand.vmem [shape: f32[1,1024], index: 4, kind: input, shape index: {}]   ;;  %s7899_s5 = inlined_call_operand.vmem [shape: bf16[1024,512], index: 5, kind: input, shape index: {}]   ;;  %s7900_s6 = inlined_call_operand.vmem [shape: f32[1,512], index: 6, kind: input, shape index: {}]   ;;  %s7901_s7 = inlined_call_operand.vmem [shape: bf16[512,256], index: 7, kind: input, shape index: {}]   ;;  %s7902_s8 = inlined_call_operand.vmem [shape: f32[1,256], index: 8, kind: input, shape index: {}]   ;;  %s7903_s9 = inlined_call_operand.vmem [shape: bf16[256,10], index: 9, kind: input, shape index: {}]   ;;  %s7904_s10 = inlined_call_operand.vmem [shape: f32[1,10], index: 10, kind: input, shape index: {}]   ;;  %s7905_s11 = inlined_call_operand.hbm [shape: f32[2,10], index: 11, kind: output, shape index: {}]  }
   0x1   :  { %v159_v0 = vld [vmem:[%s7895_s1 + $0x80] sm:$0xff]  ;;  %v160_v1 = vld [vmem:[%s7895_s1 + $0x88] sm:$0xff]  ;;  %v161_v6 = vld [vmem:[%s7895_s1 + $0x90] sm:$0xff]  ;;  %v46_v9 = vunpack.c.l.s4 %v5922_v8 }
   0x2   :  { %v143_v2 = vld [vmem:[%s7895_s1] sm:$0xff]  ;;  %v5994_v4 = vpack.c.bf16 %v160_v1, %v159_v0  ;;  %v144_v5 = vld [vmem:[%s7895_s1 + $0x8] sm:$0xff]  ;;  %v162_v7 = vld [vmem:[%s7895_s1 + $0x98] sm:$0xff]  ;;  %v6022_v17 = vshrl.u32 %v48_v3, 7 }
   0x3   :  { %v6005_v10 = vpack.c.bf16 %v144_v5, %v143_v2  ;;  %v6007_v11 = vpack.c.bf16 %v162_v7, %v161_v6  ;;  %v145_v12 = vld [vmem:[%s7895_s1 + $0x10] sm:$0xff]  ;;  %v146_v13 = vld [vmem:[%s7895_s1 + $0x18] sm:$0xff]  ;;  %v163_v14 = vld [vmem:[%s7895_s1 + $0xa0] sm:$0xff]  ;;  %v47_v16 = vunpack.c.0.s8 %v46_v9 }
   0x4   :  { %5100 = vmatprep.subr.bf16.mxu1 %v5994_v4  ;;  %v164_v15 = vld [vmem:[%s7895_s1 + $0xa8] sm:$0xff]  ;;  %v6025_v18 = vpack.c.bf16 %v146_v13, %v145_v12  ;;  %v147_v20 = vld [vmem:[%s7895_s1 + $0x20] sm:$0xff]  ;;  %v165_v22 = vld [vmem:[%s7895_s1 + $0xb0] sm:$0xff] }
   0x5   :  { %5102 = vmatpush3.bf16.msra.mxu1 %v6005_v10  ;;  %v6028_v19 = vpack.c.bf16 %v164_v15, %v163_v14  ;;  %v148_v21 = vld [vmem:[%s7895_s1 + $0x28] sm:$0xff]  ;;  %v166_v23 = vld [vmem:[%s7895_s1 + $0xb8] sm:$0xff]  ;;  %v6043_v24 = vsub.s32 %v47_v16, %v6022_v17  ;;  %v149_v27 = vld [vmem:[%s7895_s1 + $0x30] sm:$0xff] }
   0x6   :  { %5104 = vmatprep.subr.bf16.mxu1 %v6007_v11  ;;  %v6046_v25 = vpack.c.bf16 %v148_v21, %v147_v20  ;;  %v6049_v26 = vpack.c.bf16 %v166_v23, %v165_v22  ;;  %v150_v28 = vld [vmem:[%s7895_s1 + $0x38] sm:$0xff]  ;;  %v167_v29 = vld [vmem:[%s7895_s1 + $0xc0] sm:$0xff]  ;;  %v168_v30 = vld [vmem:[%s7895_s1 + $0xc8] sm:$0xff] }
   0x7   :  { %v40_v31 = vld [vmem:[%s7894_s0] sm:$0xff]  ;;  %v6071_v35 = vpack.c.bf16 %v150_v28, %v149_v27  ;;  %v152_v36 = vld [vmem:[%s7895_s1 + $0x48] sm:$0xff]  ;;  %v6083_v39 = vpack.c.bf16 %v168_v30, %v167_v29  ;;  %v169_v45 = vld [vmem:[%s7895_s1 + $0xd0] sm:$0xff] }
   0x8   :  { %v151_v32 = vld [vmem:[%s7895_s1 + $0x40] sm:$0xff]  ;;  %v44_v33 = vcombine.high %v40_v31, %v40_v31  ;;  %v51_v34 = vrot.slane %v40_v31, %v6043_v24  ;;  %v224_v38 = vld [vmem:[%s7895_s1 + $0x288] sm:$0xff]  ;;  %v170_v46 = vld [vmem:[%s7895_s1 + $0xd8] sm:$0xff] }
   0x9   :  { %5106 = vmatpush3.bf16.msra.mxu1 %v6025_v18  ;;  %v223_v37 = vld [vmem:[%s7895_s1 + $0x280] sm:$0xff]  ;;  %v208_v44 = vld [vmem:[%s7895_s1 + $0x208] sm:$0xff]  ;;  %v6105_v50 = vpack.c.bf16 %v152_v36, %v151_v32  ;;  %v225_v52 = vld [vmem:[%s7895_s1 + $0x290] sm:$0xff]  ;;  %v6134_v62 = vpack.c.bf16 %v170_v46, %v169_v45 }
   0xa   :  { %5108 = vmatprep.subr.bf16.mxu1 %v6028_v19  ;;  %v59_v40 = vcombine.high %v51_v34, %v51_v34  ;;  %v87_v41 = vsel %vm86_vm0, %v51_v34, 0.0  ;;  %v6086_v42 = vpack.c.bf16 %v224_v38, %v223_v37  ;;  %v207_v43 = vld [vmem:[%s7895_s1 + $0x200] sm:$0xff]  ;;  %v6103_v49 = vrot.slane %v44_v33, %v6043_v24  ;;  %v226_v53 = vld [vmem:[%s7895_s1 + $0x298] sm:$0xff]  ;;  %v209_v54 = vld [vmem:[%s7895_s1 + $0x210] sm:$0xff] }
   0xb   :  { %v88_v47 = vrot.slane %v87_v41, 4  ;;  %v6100_v48 = vpack.c.bf16 %v208_v44, %v207_v43  ;;  %v153_v55 = vld [vmem:[%s7895_s1 + $0x50] sm:$0xff]  ;;  %v154_v56 = vld [vmem:[%s7895_s1 + $0x58] sm:$0xff]  ;;  %v6126_v59 = vpack.c.bf16 %v226_v53, %v225_v52  ;;  %v171_v63 = vld [vmem:[%s7895_s1 + $0xe0] sm:$0xff] }
   0xc   :  { %v94_v51 = vsel %vm86_vm0, %v59_v40, 0.0  ;;  %5164 = vmatprep.subr.bf16.mxu0 %v6086_v42  ;;  %v210_v60 = vld [vmem:[%s7895_s1 + $0x218] sm:$0xff]  ;;  %v60_v61 = vcombine.high %v6103_v49, %v6103_v49  ;;  %v172_v0 = vld [vmem:[%s7895_s1 + $0xe8] sm:$0xff]  ;;  %v227_v2 = vld [vmem:[%s7895_s1 + $0x2a0] sm:$0xff]  ;;  %v6161_v14 = vpack.c.bf16 %v154_v56, %v153_v55 }
   0xd   :  { %5110 = vmatpush3.bf16.msra.mxu1 %v6046_v25  ;;  %v95_v57 = vrot.slane %v94_v51, 4  ;;  %v89_v58 = vadd.f32 %v88_v47, %v87_v41  ;;  %5166 = vmatpush3.bf16.msra.mxu0 %v6100_v48  ;;  %v6142_v1 = vpack.c.bf16 %v210_v60, %v209_v54  ;;  %v228_v5 = vld [vmem:[%s7895_s1 + $0x2a8] sm:$0xff]  ;;  %v211_v6 = vld [vmem:[%s7895_s1 + $0x220] sm:$0xff]  ;;  %v229_v20 = vld [vmem:[%s7895_s1 + $0x2b0] sm:$0xff]  ;;  %v6173_v22 = vpack.c.bf16 %v172_v0, %v171_v63 }
   0xe   :  { %5112 = vmatprep.subr.bf16.mxu1 %v6049_v26  ;;  %5168 = vmatprep.subr.bf16.mxu0 %v6126_v59  ;;  %v212_v7 = vld [vmem:[%s7895_s1 + $0x228] sm:$0xff]  ;;  %v108_v8 = vsel %vm86_vm0, %v60_v61, 0.0  ;;  %v6158_v12 = vpack.c.bf16 %v228_v5, %v227_v2  ;;  %v230_v21 = vld [vmem:[%s7895_s1 + $0x2b8] sm:$0xff]  ;;  %v155_v23 = vld [vmem:[%s7895_s1 + $0x60] sm:$0xff] }
   0xf   :  { %v96_v3 = vadd.f32 %v95_v57, %v94_v51  ;;  %v90_v9 = vrot.slane %v89_v58, 2  ;;  %v109_v13 = vrot.slane %v108_v8, 4  ;;  %v6164_v16 = vpack.c.bf16 %v212_v7, %v211_v6  ;;  %v156_v27 = vld [vmem:[%s7895_s1 + $0x68] sm:$0xff]  ;;  %v173_v28 = vld [vmem:[%s7895_s1 + $0xf0] sm:$0xff]  ;;  %v174_v31 = vld [vmem:[%s7895_s1 + $0xf8] sm:$0xff] }
  0x10   :  { %v6185_v29 = vpack.c.bf16 %v230_v21, %v229_v20  ;;  %v213_v33 = vld [vmem:[%s7895_s1 + $0x230] sm:$0xff]  ;;  %v214_v34 = vld [vmem:[%s7895_s1 + $0x238] sm:$0xff]  ;;  %v231_v37 = vld [vmem:[%s7895_s1 + $0x2c0] sm:$0xff]  ;;  %v6203_v41 = vpack.c.bf16 %v156_v27, %v155_v23  ;;  %v6207_v44 = vpack.c.bf16 %v174_v31, %v173_v28 }
  0x11   :  { %5114 = vmatpush3.bf16.msra.mxu1 %v6071_v35  ;;  %v97_v15 = vrot.slane %v96_v3, 2  ;;  %5170 = vmatpush3.bf16.msra.mxu0 %v6142_v1  ;;  %v110_v30 = vadd.f32 %v109_v13, %v108_v8  ;;  %v91_v36 = vadd.f32 %v90_v9, %v89_v58  ;;  %v232_v38 = vld [vmem:[%s7895_s1 + $0x2c8] sm:$0xff]  ;;  %v157_v45 = vld [vmem:[%s7895_s1 + $0x70] sm:$0xff]  ;;  %v158_v46 = vld [vmem:[%s7895_s1 + $0x78] sm:$0xff]  ;;  %v6219_v51 = vpack.c.bf16 %v214_v34, %v213_v33 }
  0x12   :  { %5116 = vmatprep.subr.bf16.mxu1 %v6083_v39  ;;  %5172 = vmatprep.subr.bf16.mxu0 %v6158_v12  ;;  %v191_v47 = vld [vmem:[%s7895_s1 + $0x180] sm:$0xff]  ;;  %v192_v54 = vld [vmem:[%s7895_s1 + $0x188] sm:$0xff]  ;;  %v6224_v55 = vpack.c.bf16 %v232_v38, %v231_v37  ;;  %v233_v60 = vld [vmem:[%s7895_s1 + $0x2d0] sm:$0xff]  ;;  %v6239_v63 = vpack.c.bf16 %v158_v46, %v157_v45 }
  0x13   :  { %v98_v32 = vadd.f32 %v97_v15, %v96_v3  ;;  %v111_v40 = vrot.slane %v110_v30, 2  ;;  %v215_v56 = vld [vmem:[%s7895_s1 + $0x240] sm:$0xff]  ;;  %v216_v57 = vld [vmem:[%s7895_s1 + $0x248] sm:$0xff]  ;;  %v92_v58 = vrot.slane %v91_v36, 1  ;;  %v234_v61 = vld [vmem:[%s7895_s1 + $0x2d8] sm:$0xff]  ;;  %v6242_v2 = vpack.c.bf16 %v192_v54, %v191_v47 }
  0x14   :  { %v175_v3 = vld [vmem:[%s7895_s1 + $0x100] sm:$0xff]  ;;  %v176_v5 = vld [vmem:[%s7895_s1 + $0x108] sm:$0xff]  ;;  %v193_v6 = vld [vmem:[%s7895_s1 + $0x190] sm:$0xff]  ;;  %v6254_v7 = vpack.c.bf16 %v216_v57, %v215_v56  ;;  %v6260_v9 = vpack.c.bf16 %v234_v61, %v233_v60 }
  0x15   :  { %5118 = vmatpush3.bf16.msra.mxu1 %v6105_v50  ;;  %v99_v43 = vrot.slane %v98_v32, 1  ;;  %5174 = vmatpush3.bf16.msra.mxu0 %v6164_v16  ;;  %v112_v52 = vadd.f32 %v111_v40, %v110_v30  ;;  %v194_v8 = vld [vmem:[%s7895_s1 + $0x198] sm:$0xff]  ;;  %v217_v13 = vld [vmem:[%s7895_s1 + $0x250] sm:$0xff]  ;;  %v93_v20 = vadd.f32 %v92_v58, %v91_v36  ;;  %v235_v21 = vld [vmem:[%s7895_s1 + $0x2e0] sm:$0xff]  ;;  %v6275_v27 = vpack.c.bf16 %v176_v5, %v175_v3 }
  0x16   :  { %5120 = vmatprep.subr.bf16.mxu1 %v6134_v62  ;;  %5176 = vmatprep.subr.bf16.mxu0 %v6185_v29  ;;  %v218_v15 = vld [vmem:[%s7895_s1 + $0x258] sm:$0xff]  ;;  %v236_v23 = vld [vmem:[%s7895_s1 + $0x2e8] sm:$0xff]  ;;  %v177_v28 = vld [vmem:[%s7895_s1 + $0x110] sm:$0xff]  ;;  %v6281_v31 = vpack.c.bf16 %v194_v8, %v193_v6 }
  0x17   :  { %v100_v53 = vadd.f32 %v99_v43, %v98_v32  ;;  %v113_v0 = vrot.slane %v112_v52, 1  ;;  %v178_v32 = vld [vmem:[%s7895_s1 + $0x118] sm:$0xff]  ;;  %v195_v33 = vld [vmem:[%s7895_s1 + $0x1a0] sm:$0xff]  ;;  %v6290_v34 = vpack.c.bf16 %v218_v15, %v217_v13  ;;  %v41_v36 = vld [vmem:[%s7894_s0 + $0x8] sm:$0xff]  ;;  %v6299_v38 = vpack.c.bf16 %v236_v23, %v235_v21 }
  0x18   :  { %v196_v37 = vld [vmem:[%s7895_s1 + $0x1a8] sm:$0xff]  ;;  %v219_v40 = vld [vmem:[%s7895_s1 + $0x260] sm:$0xff]  ;;  %v61_v45 = vcombine.high %v41_v36, %v41_v36  ;;  %v68_v46 = vrot.slane %v41_v36, %v6043_v24  ;;  %v237_v47 = vld [vmem:[%s7895_s1 + $0x2f0] sm:$0xff] }
  0x19   :  { %5122 = vmatpush3.bf16.msra.mxu1 %v6161_v14  ;;  %335 = vmatprep.mubr.f32.mxu1 %v100_v53  ;;  %v114_v30 = vadd.f32 %v113_v0, %v112_v52  ;;  %v220_v43 = vld [vmem:[%s7895_s1 + $0x268] sm:$0xff]  ;;  %v238_v52 = vld [vmem:[%s7895_s1 + $0x2f8] sm:$0xff]  ;;  %v6315_v53 = vpack.c.bf16 %v178_v32, %v177_v28  ;;  %v179_v54 = vld [vmem:[%s7895_s1 + $0x120] sm:$0xff]  ;;  %v6322_v58 = vpack.c.bf16 %v196_v37, %v195_v33  ;;  %v101_v33 = vsel %vm86_vm0, %v6103_v49, 0.0 }
  0x1a   :  { %5124 = vmatprep.subr.bf16.mxu1 %v6173_v22  ;;  %5178 = vmatpush3.bf16.msra.mxu0 %v6219_v51  ;;  %v76_v56 = vcombine.high %v68_v46, %v68_v46  ;;  %v115_v57 = vsel %vm86_vm0, %v68_v46, 0.0  ;;  %v180_v60 = vld [vmem:[%s7895_s1 + $0x128] sm:$0xff]  ;;  %v197_v61 = vld [vmem:[%s7895_s1 + $0x1b0] sm:$0xff]  ;;  %v198_v0 = vld [vmem:[%s7895_s1 + $0x1b8] sm:$0xff]  ;;  %v6334_v3 = vpack.c.bf16 %v220_v43, %v219_v40  ;;  %v6337_v6 = vrot.slane %v61_v45, %v6043_v24 }
  0x1b   :  { %5180 = vmatprep.subr.bf16.mxu0 %v6224_v55  ;;  %v116_v5 = vrot.slane %v115_v57, 4  ;;  %v6340_v8 = vpack.c.bf16 %v238_v52, %v237_v47  ;;  %v221_v13 = vld [vmem:[%s7895_s1 + $0x270] sm:$0xff]  ;;  %v222_v15 = vld [vmem:[%s7895_s1 + $0x278] sm:$0xff]  ;;  %v6354_v32 = vpack.c.bf16 %v198_v0, %v197_v61  ;;  %v199_v49 = vld [vmem:[%s7895_s1 + $0x1c0] sm:$0xff] }
  0x1c   :  { %v77_v28 = vcombine.high %v6337_v6, %v6337_v6  ;;  %v181_v36 = vld [vmem:[%s7895_s1 + $0x130] sm:$0xff]  ;;  %v182_v37 = vld [vmem:[%s7895_s1 + $0x138] sm:$0xff]  ;;  %v6366_v40 = vpack.c.bf16 %v222_v15, %v221_v13  ;;  %v200_v47 = vld [vmem:[%s7895_s1 + $0x1c8] sm:$0xff] }
  0x1d   :  { %5126 = vmatpush3.bf16.msra.mxu1 %v6203_v41  ;;  %v117_v23 = vadd.f32 %v116_v5, %v115_v57  ;;  %v183_v52 = vld [vmem:[%s7895_s1 + $0x140] sm:$0xff]  ;;  %v6383_v61 = vpack.c.bf16 %v182_v37, %v181_v36  ;;  %v201_v0 = vld [vmem:[%s7895_s1 + $0x1d0] sm:$0xff]  ;;  %v202_v5 = vld [vmem:[%s7895_s1 + $0x1d8] sm:$0xff]  ;;  %v6392_v15 = vpack.c.bf16 %v200_v47, %v199_v49 }
  0x1e   :  { %5128 = vmatprep.subr.bf16.mxu1 %v6207_v44  ;;  %5182 = vmatpush3.bf16.msra.mxu0 %v6254_v7  ;;  %7914 = vst [vmem:[#allocation5_spill] sm:$0xff] %v6366_v40  ;;  %v136_v46 = vsel %vm86_vm0, %v77_v28, 0.0  ;;  %v186_v28 = vld [vmem:[%s7895_s1 + $0x158] sm:$0xff] }
  0x1f   :  { %5184 = vmatprep.subr.bf16.mxu0 %v6260_v9  ;;  %v118_v45 = vrot.slane %v117_v23, 2  ;;  %v137_v13 = vrot.slane %v136_v46, 4 }
  0x21   :  { %5130 = vmatpush3.bf16.msra.mxu1 %v6239_v63  ;;  %v138_v47 = vadd.f32 %v137_v13, %v136_v46  ;;  %v205_v46 = vld [vmem:[%s7895_s1 + $0x1f0] sm:$0xff] }
  0x22   :  { %5132 = vmatprep.subr.bf16.mxu1 %v6242_v2  ;;  %5186 = vmatpush3.bf16.msra.mxu0 %v6290_v34  ;;  %v189_v13 = vld [vmem:[%s7895_s1 + $0x170] sm:$0xff] }
  0x23   :  { %5188 = vmatprep.subr.bf16.mxu0 %v6299_v38 }
  0x24   :  { %336 = vmatmul.mubr.f32.vlgmr.msra.gmra.mrb[0].mxu1 %v93_v20  ;;  %v122_v20 = vsel %vm86_vm0, %v76_v56, 0.0  ;;  %v102_v56 = vrot.slane %v101_v33, 4 }
  0x25   :  { %5134 = vmatpush3.bf16.msra.mxu1 %v6275_v27  ;;  %405 = vmatprep.mubr.f32.mxu1 %v114_v30  ;;  %v123_v21 = vrot.slane %v122_v20, 4  ;;  %v6352_v30 = vpack.c.bf16 %v180_v60, %v179_v54  ;;  %v184_v54 = vld [vmem:[%s7895_s1 + $0x148] sm:$0xff]  ;;  %v119_v60 = vadd.f32 %v118_v45, %v117_v23  ;;  %v185_v23 = vld [vmem:[%s7895_s1 + $0x150] sm:$0xff] }
  0x26   :  { %5136 = vmatprep.subr.bf16.mxu1 %v6281_v31  ;;  %5190 = vmatpush3.bf16.msra.mxu0 %v6334_v3  ;;  %v103_v36 = vadd.f32 %v102_v56, %v101_v33  ;;  %v6403_v45 = vpack.c.bf16 %v184_v54, %v183_v52  ;;  %v187_v52 = vld [vmem:[%s7895_s1 + $0x160] sm:$0xff]  ;;  %v188_v54 = vld [vmem:[%s7895_s1 + $0x168] sm:$0xff] }
  0x27   :  { %v124_v43 = vadd.f32 %v123_v21, %v122_v20  ;;  %5192 = vmatprep.subr.bf16.mxu0 %v6340_v8  ;;  %v120_v21 = vrot.slane %v119_v60, 1 }
  0x28   :  { %v104_v56 = vrot.slane %v103_v36, 2 }
  0x29   :  { %5138 = vmatpush3.bf16.msra.mxu1 %v6315_v53  ;;  %v125_v57 = vrot.slane %v124_v43, 2  ;;  %v121_v49 = vadd.f32 %v120_v21, %v119_v60  ;;  %v206_v60 = vld [vmem:[%s7895_s1 + $0x1f8] sm:$0xff] }
  0x2a   :  { %5140 = vmatprep.subr.bf16.mxu1 %v6322_v58  ;;  %5194 = vmatpush3.bf16.msra.mxu0 %v6366_v40  ;;  %v6421_v40 = vpack.c.bf16 %v186_v28, %v185_v23  ;;  %v105_v21 = vadd.f32 %v104_v56, %v103_v36  ;;  %v6441_v23 = vpack.c.bf16 %v188_v54, %v187_v52  ;;  %v255_v28 = vld [vmem:[%s7895_s1 + $0x380] sm:$0xff]  ;;  %v241_v54 = vld [vmem:[%s7895_s1 + $0x310] sm:$0xff]  ;;  %v242_v56 = vld [vmem:[%s7895_s1 + $0x318] sm:$0xff] }
  0x2b   :  { %v126_v20 = vadd.f32 %v125_v57, %v124_v43  ;;  %5228 = vmatprep.subr.bf16.mxu0 %v5994_v4  ;;  %v203_v43 = vld [vmem:[%s7895_s1 + $0x1e0] sm:$0xff]  ;;  %v204_v4 = vld [vmem:[%s7895_s1 + $0x1e8] sm:$0xff]  ;;  %v6412_v57 = vpack.c.bf16 %v202_v5, %v201_v0  ;;  %v139_v0 = vrot.slane %v138_v47, 2 }
  0x2c   :  { %v6430_v5 = vpack.c.bf16 %v204_v4, %v203_v43  ;;  %v106_v36 = vrot.slane %v105_v21, 1  ;;  %v239_v43 = vld [vmem:[%s7895_s1 + $0x300] sm:$0xff]  ;;  %v240_v4 = vld [vmem:[%s7895_s1 + $0x308] sm:$0xff] }
  0x2d   :  { %5142 = vmatpush3.bf16.msra.mxu1 %v6352_v30  ;;  %v127_v37 = vrot.slane %v126_v20, 1 }
  0x2e   :  { %5144 = vmatprep.subr.bf16.mxu1 %v6354_v32  ;;  %v107_v52 = vadd.f32 %v106_v36, %v105_v21  ;;  %v6501_v21 = vpack.c.bf16 %v242_v56, %v241_v54  ;;  %v249_v54 = vld [vmem:[%s7895_s1 + $0x350] sm:$0xff]  ;;  %v250_v56 = vld [vmem:[%s7895_s1 + $0x358] sm:$0xff] }
  0x2f   :  { %v128_v33 = vadd.f32 %v127_v37, %v126_v20  ;;  %v190_v20 = vld [vmem:[%s7895_s1 + $0x178] sm:$0xff]  ;;  %v6450_v37 = vpack.c.bf16 %v206_v60, %v205_v46  ;;  %v6481_v46 = vpack.c.bf16 %v240_v4, %v239_v43  ;;  %v259_v60 = vld [vmem:[%s7895_s1 + $0x3a0] sm:$0xff] }
  0x30   :  { %v263_v43 = vld [vmem:[%s7895_s1 + $0x3c0] sm:$0xff] }
  0x31   :  { %5146 = vmatpush3.bf16.msra.mxu1 %v6383_v61  ;;  %475 = vmatprep.mubr.f32.mxu0 %v128_v33 }
  0x32   :  { %5148 = vmatprep.subr.bf16.mxu1 %v6392_v15  ;;  %476 = vmatmul.mubr.f32.vlgmr.msra.gmra.mrb[0].mxu0 %v121_v49  ;;  %v6461_v49 = vpack.c.bf16 %v190_v20, %v189_v13  ;;  %v243_v13 = vld [vmem:[%s7895_s1 + $0x320] sm:$0xff]  ;;  %v244_v20 = vld [vmem:[%s7895_s1 + $0x328] sm:$0xff] }
  0x33   :  { %5230 = vmatpush3.bf16.msra.mxu0 %v6005_v10  ;;  %v256_v10 = vld [vmem:[%s7895_s1 + $0x388] sm:$0xff]  ;;  %v6521_v36 = vpack.c.bf16 %v244_v20, %v243_v13  ;;  %v251_v13 = vld [vmem:[%s7895_s1 + $0x360] sm:$0xff] }
  0x34   :  { %5232 = vmatprep.subr.bf16.mxu0 %v6007_v11  ;;  %v140_v11 = vadd.f32 %v139_v0, %v138_v47  ;;  %v257_v47 = vld [vmem:[%s7895_s1 + $0x390] sm:$0xff]  ;;  %v6470_v33 = vpack.c.bf16 %v256_v10, %v255_v28  ;;  %v252_v20 = vld [vmem:[%s7895_s1 + $0x368] sm:$0xff] }
  0x35   :  { %5150 = vmatpush3.bf16.msra.mxu1 %v6403_v45  ;;  %v261_v28 = vld [vmem:[%s7895_s1 + $0x3b0] sm:$0xff] }
  0x36   :  { %5152 = vmatprep.subr.bf16.mxu1 %v6412_v57  ;;  %v245_v10 = vld [vmem:[%s7895_s1 + $0x330] sm:$0xff] }
  0x37   :  { %5234 = vmatpush3.bf16.msra.mxu0 %v6025_v18  ;;  %v258_v18 = vld [vmem:[%s7895_s1 + $0x398] sm:$0xff] }
  0x38   :  { %5236 = vmatprep.subr.bf16.mxu0 %v6028_v19  ;;  %v141_v19 = vrot.slane %v140_v11, 1  ;;  %v6490_v0 = vpack.c.bf16 %v258_v18, %v257_v47  ;;  %v247_v47 = vld [vmem:[%s7895_s1 + $0x340] sm:$0xff]  ;;  %v248_v18 = vld [vmem:[%s7895_s1 + $0x348] sm:$0xff] }
  0x39   :  { %5154 = vmatpush3.bf16.msra.mxu1 %v6421_v40 }
  0x3a   :  { %5156 = vmatprep.subr.bf16.mxu1 %v6430_v5 }
  0x3b   :  { %5238 = vmatpush3.bf16.msra.mxu0 %v6046_v25  ;;  %v260_v25 = vld [vmem:[%s7895_s1 + $0x3a8] sm:$0xff] }
  0x3c   :  { %5240 = vmatprep.subr.bf16.mxu0 %v6049_v26  ;;  %v142_v26 = vadd.f32 %v141_v19, %v140_v11  ;;  %v246_v11 = vld [vmem:[%s7895_s1 + $0x338] sm:$0xff] }
  0x3d   :  { %5158 = vmatpush3.bf16.msra.mxu1 %v6441_v23 }
  0x3e   :  { %5160 = vmatprep.subr.bf16.mxu1 %v6450_v37 }
  0x3f   :  { %5242 = vmatpush3.bf16.msra.mxu0 %v6071_v35  ;;  %v262_v35 = vld [vmem:[%s7895_s1 + $0x3b8] sm:$0xff] }
  0x40   :  { %5244 = vmatprep.subr.bf16.mxu0 %v6083_v39  ;;  %v6510_v39 = vpack.c.bf16 %v260_v25, %v259_v60  ;;  %v6532_v4 = vpack.c.bf16 %v262_v35, %v261_v28  ;;  %v6563_v25 = vpack.c.bf16 %v248_v18, %v247_v47  ;;  %v6583_v35 = vpack.c.bf16 %v250_v56, %v249_v54 }
  0x41   :  { %5162 = vmatpush3.bf16.msra.mxu1 %v6461_v49 }
  0x42   :  { %5196 = vmatprep.subr.bf16.mxu1 %v6470_v33 }
  0x43   :  { %5246 = vmatpush3.bf16.msra.mxu0 %v6105_v50  ;;  %v264_v50 = vld [vmem:[%s7895_s1 + $0x3c8] sm:$0xff] }
  0x44   :  { %406 = vmatmul.mubr.f32.vlgmr.msra.gmra.mrb[2].mxu1 %v107_v52  ;;  %5248 = vmatprep.subr.bf16.mxu0 %v6134_v62  ;;  %v129_v62 = vsel %vm86_vm0, %v6337_v6, 0.0  ;;  %v6543_v6 = vpack.c.bf16 %v246_v11, %v245_v10  ;;  %v265_v52 = vld [vmem:[%s7895_s1 + $0x3d0] sm:$0xff] }
  0x45   :  { %5198 = vmatpush3.bf16.msra.mxu1 %v6481_v46  ;;  %545 = vmatprep.mubr.f32.mxu1 %v142_v26  ;;  %v130_v19 = vrot.slane %v129_v62, 4  ;;  %v267_v26 = vld [vmem:[%s7895_s1 + $0x3e0] sm:$0xff]  ;;  %v269_v10 = vld [vmem:[%s7895_s1 + $0x3f0] sm:$0xff] }
  0x46   :  { %5200 = vmatprep.subr.bf16.mxu1 %v6490_v0  ;;  %v253_v11 = vld [vmem:[%s7895_s1 + $0x370] sm:$0xff] }
  0x47   :  { %5250 = vmatpush3.bf16.msra.mxu0 %v6161_v14  ;;  %v266_v14 = vld [vmem:[%s7895_s1 + $0x3d8] sm:$0xff]  ;;  %v131_v60 = vadd.f32 %v130_v19, %v129_v62  ;;  %v6601_v62 = vpack.c.bf16 %v252_v20, %v251_v13 }
  0x48   :  { %5252 = vmatprep.subr.bf16.mxu0 %v6173_v22  ;;  %v6552_v22 = vpack.c.bf16 %v264_v50, %v263_v43  ;;  %v254_v43 = vld [vmem:[%s7895_s1 + $0x378] sm:$0xff] }
  0x49   :  { %5202 = vmatpush3.bf16.msra.mxu1 %v6501_v21  ;;  %v132_v28 = vrot.slane %v131_v60, 2  ;;  %v6607_v19 = vpack.c.bf16 %v254_v43, %v253_v11 }
  0x4a   :  { %5204 = vmatprep.subr.bf16.mxu1 %v6510_v39 }
  0x4b   :  { %5254 = vmatpush3.bf16.msra.mxu0 %v6203_v41  ;;  %v268_v41 = vld [vmem:[%s7895_s1 + $0x3e8] sm:$0xff]  ;;  %v133_v50 = vadd.f32 %v132_v28, %v131_v60  ;;  %7916 = vst [vmem:[#allocation7_spill] sm:$0xff] %v6607_v19 }
  0x4c   :  { %5256 = vmatprep.subr.bf16.mxu0 %v6207_v44  ;;  %v6572_v44 = vpack.c.bf16 %v266_v14, %v265_v52 }
  0x4d   :  { %5206 = vmatpush3.bf16.msra.mxu1 %v6521_v36  ;;  %v134_v18 = vrot.slane %v133_v50, 1 }
  0x4e   :  { %5208 = vmatprep.subr.bf16.mxu1 %v6532_v4 }
  0x4f   :  { %5258 = vmatpush3.bf16.msra.mxu0 %v6239_v63  ;;  %v6592_v63 = vpack.c.bf16 %v268_v41, %v267_v26  ;;  %v135_v52 = vadd.f32 %v134_v18, %v133_v50 }
  0x50   :  { %5292 = vmatprep.subr.bf16.mxu0 %v6086_v42  ;;  %v270_v42 = vld [vmem:[%s7895_s1 + $0x3f8] sm:$0xff] }
  0x51   :  { %5210 = vmatpush3.bf16.msra.mxu1 %v6543_v6  ;;  %v6604_v47 = vpack.c.bf16 %v270_v42, %v269_v10 }
  0x52   :  { %5212 = vmatprep.subr.bf16.mxu1 %v6552_v22 }
  0x53   :  { %7915 = vst [vmem:[#allocation6_spill] sm:$0xff] %v6604_v47 }
  0x55   :  { %5214 = vmatpush3.bf16.msra.mxu1 %v6563_v25 }
  0x56   :  { %5216 = vmatprep.subr.bf16.mxu1 %v6572_v44 }
  0x59   :  { %5218 = vmatpush3.bf16.msra.mxu1 %v6583_v35 }
  0x5a   :  { %5220 = vmatprep.subr.bf16.mxu1 %v6592_v63 }
  0x5d   :  { %5222 = vmatpush3.bf16.msra.mxu1 %v6601_v62 }
  0x5e   :  { %5224 = vmatprep.subr.bf16.mxu1 %v6604_v47 }
  0x61   :  { %5226 = vmatpush3.bf16.msra.mxu1 %v6607_v19 }
  0x64   :  { %546 = vmatmul.mubr.f32.vlgmr.msra.gmra.mrb[4].mxu1 %v135_v52 }
  0x65   :  { %16 = vsyncpa [#allocation3], 0  ;;  %v6614_v14 = vld [vmem:[%s7896_s2 + $0x8] sm:$0xff]  ;;  %v6620_v54 = vld [vmem:[%s7896_s2] sm:$0xff]  ;;  %v7911_v60 = vmov 0.0   ;;  %vm561_vm1 = vcmask 64512  }
  0x66   :  { %7917 = vst [vmem:[#allocation8_spill] sm:$0xff] %v6614_v14  ;;  %565 = vmatprep.subr.mxu1 %v6614_v14  ;;  %7918 = vst [vmem:[#allocation9_spill] sm:$0xff] %v6620_v54  ;;  %v6625_v56 = vld [vmem:[%s7896_s2 + $0x18] sm:$0xff]  ;;  %629 = vmatprep.mubr.f32.mxu1 %v7911_v60  ;;  %v6633_v60 = vld [vmem:[%s7896_s2 + $0x10] sm:$0xff]  ;;  %vm4424_vm2 = vcmask 74752  }
  0x67   :  { %566 = vmatpush1.msra.mxu1 %v6620_v54 }
  0x68   :  { %636 = vmatprep.subr.mxu1 %v6625_v56 }
  0xf7   :  { %v4829_v26 = vpop.f32.mrb[0].mxu1 }
  0xf8   :  { %v4830_v41 = vpop.f32.mrb[1].mxu1 }
  0xf9   :  { %v4831_v13 = vadd.f32 %v4830_v41, %v4829_v26  ;;  %v6638_v26 = vld [vmem:[%s7896_s2 + $0x28] sm:$0xff]  ;;  %v7919_v41 = vmov 0.0  }
 0x105   :  { %v4899_v20 = vpop.f32.mrb[0].mxu0 }
 0x106   :  { %v4900_v28 = vpop.f32.mrb[1].mxu0 }
 0x107   :  { %v4901_v10 = vadd.f32 %v4900_v28, %v4899_v20 }
 0x117   :  { %v4864_v42 = vpop.f32.mrb[2].mxu1 }
 0x118   :  { %v4865_v11 = vpop.f32.mrb[3].mxu1 }
 0x119   :  { %v4866_v43 = vadd.f32 %v4865_v11, %v4864_v42  ;;  %v5896_v42 = vld [vmem:[%s7894_s0] sm:$0xff] }
 0x11b   :  { %v408_v50 = vadd.f32 %v4866_v43, %v4831_v13 }
 0x11d   :  { %v478_v18 = vadd.f32 %v4901_v10, %v408_v50 }
 0x137   :  { %v4934_v52 = vpop.f32.mrb[4].mxu1 }
 0x138   :  { %v4935_v14 = vpop.f32.mrb[5].mxu1 }
 0x139   :  { %v4936_v19 = vadd.f32 %v4935_v14, %v4934_v52  ;;  %v6652_v14 = vld [vmem:[%s7896_s2 + $0x38] sm:$0xff] }
 0x13b   :  { %v548_v54 = vadd.f32 %v4936_v19, %v478_v18  ;;  %v6647_v19 = vld [vmem:[%s7896_s2 + $0x20] sm:$0xff] }
 0x13d   :  { %v552_v47 = vmul.f32 0.00390625, %v548_v54  ;;  %v6661_v54 = vld [vmem:[%s7896_s2 + $0x30] sm:$0xff] }
 0x13f   :  { %4452 = vmatmul.mubr.msk.f32.vlgmr.msra.gmra.mrb[6].mxu1 %vm561_vm1, %v552_v47 }
 0x140   :  { %637 = vmatpush1.msra.mxu1 %v6633_v60  ;;  %700 = vmatprep.mubr.f32.mxu1 %v7919_v41 }
 0x141   :  { %707 = vmatprep.subr.mxu1 %v6638_v26 }
 0x143   :  { %4453 = vmatmul.mubr.msk.f32.vlgmr.msra.gmra.mrb[8].mxu1 %vm561_vm1, %v552_v47 }
 0x144   :  { %708 = vmatpush1.msra.mxu1 %v6647_v19  ;;  %771 = vmatprep.mubr.f32.mxu1 %v7919_v41 }
 0x145   :  { %778 = vmatprep.subr.mxu1 %v6652_v14 }
 0x147   :  { %4454 = vmatmul.mubr.msk.f32.vlgmr.msra.gmra.mrb[10].mxu1 %vm561_vm1, %v552_v47 }
 0x148   :  { %779 = vmatpush1.msra.mxu1 %v6661_v54  ;;  %842 = vmatprep.mubr.f32.mxu1 %v7919_v41 }
 0x149   :  { %5260 = vmatprep.subr.bf16.mxu1 %v6242_v2  ;;  %v6685_v2 = vsub.s32 0, %v6022_v17 }
 0x14b   :  { %4455 = vmatmul.mubr.msk.f32.vlgmr.msra.gmra.mrb[12].mxu1 %vm561_vm1, %v552_v47 }
 0x14c   :  { %5262 = vmatpush3.bf16.msra.mxu1 %v6275_v27 }
 0x14d   :  { %5264 = vmatprep.subr.bf16.mxu1 %v6281_v31 }
 0x150   :  { %5266 = vmatpush3.bf16.msra.mxu1 %v6315_v53 }
 0x151   :  { %5268 = vmatprep.subr.bf16.mxu1 %v6322_v58 }
 0x154   :  { %5270 = vmatpush3.bf16.msra.mxu1 %v6352_v30 }
 0x155   :  { %5272 = vmatprep.subr.bf16.mxu1 %v6354_v32 }
 0x158   :  { %5274 = vmatpush3.bf16.msra.mxu1 %v6383_v61 }
 0x159   :  { %5276 = vmatprep.subr.bf16.mxu1 %v6392_v15 }
 0x15c   :  { %5278 = vmatpush3.bf16.msra.mxu1 %v6403_v45 }
 0x15d   :  { %5280 = vmatprep.subr.bf16.mxu1 %v6412_v57 }
 0x160   :  { %5282 = vmatpush3.bf16.msra.mxu1 %v6421_v40 }
 0x161   :  { %5284 = vmatprep.subr.bf16.mxu1 %v6430_v5 }
 0x164   :  { %5286 = vmatpush3.bf16.msra.mxu1 %v6441_v23 }
 0x165   :  { %5288 = vmatprep.subr.bf16.mxu1 %v6450_v37 }
 0x168   :  { %5290 = vmatpush3.bf16.msra.mxu1 %v6461_v49 }
 0x169   :  { %5324 = vmatprep.subr.bf16.mxu1 %v6470_v33 }
 0x212   :  { %v631_v27 = vpop.f32.mrb[6].mxu1 }
 0x213   :  { %v852_v31 = vrot.slane %v631_v27, %v6685_v2  ;;  %v633_v53 = vpop.f32.mrb[7].mxu1 }
 0x214   :  { %v856_v58 = vrot.slane %v633_v53, %v6685_v2 }
 0x216   :  { %v889_v30 = vcombine.low %v852_v31, %v856_v58  ;;  %v702_v32 = vpop.f32.mrb[8].mxu1 }
 0x217   :  { %v860_v40 = vrot.slane %v702_v32, %v6685_v2  ;;  %v704_v61 = vpop.f32.mrb[9].mxu1 }
 0x218   :  { %v864_v15 = vrot.slane %v704_v61, %v6685_v2  ;;  %v897_v37 = vrot.slane %v889_v30, %v6043_v24 }
 0x21a   :  { %v890_v45 = vcombine.low %v860_v40, %v864_v15  ;;  %v773_v57 = vpop.f32.mrb[10].mxu1  ;;  %v5897_v15 = vld [vmem:[%s7894_s0 + $0x8] sm:$0xff] }
 0x21b   :  { %v868_v5 = vrot.slane %v773_v57, %v6685_v2  ;;  %v775_v23 = vpop.f32.mrb[11].mxu1 }
 0x21c   :  { %v904_v49 = vrot.slane %v890_v45, %v6043_v24  ;;  %v872_v33 = vrot.slane %v775_v23, %v6685_v2 }
 0x21e   :  { %v905_v47 = vcombine.low %v897_v37, %v904_v49  ;;  %v906_v13 = vcombine.low %v868_v5, %v872_v33  ;;  %v844_v20 = vpop.f32.mrb[12].mxu1 }
 0x21f   :  { %v876_v28 = vrot.slane %v844_v20, %v6685_v2  ;;  %v846_v10 = vpop.f32.mrb[13].mxu1 }
 0x220   :  { %v6699_v11 = vsub.f32 %v5896_v42, %v905_v47  ;;  %v880_v43 = vrot.slane %v846_v10, %v6685_v2  ;;  %v914_v31 = vrot.slane %v906_v13, %v6043_v24 }
 0x222   :  { %v927_v50 = vmul.f32 %v6699_v11, %v6699_v11  ;;  %v907_v18 = vcombine.low %v876_v28, %v880_v43 }
 0x224   :  { %v931_v52 = vcombine.high %v927_v50, %v927_v50  ;;  %v938_v27 = vrot.slane %v927_v50, %v6043_v24  ;;  %v921_v53 = vrot.slane %v907_v18, %v6043_v24 }
 0x226   :  { %v922_v58 = vcombine.low %v914_v31, %v921_v53  ;;  %v946_v30 = vcombine.high %v938_v27, %v938_v27  ;;  %v973_v32 = vsel %vm86_vm0, %v938_v27, 0.0  ;;  %v945_v40 = vrot.slane %v931_v52, %v6043_v24 }
 0x227   :  { %v974_v61 = vrot.slane %v973_v32, 4 }
 0x228   :  { %v6712_v45 = vsub.f32 %v5897_v15, %v922_v58  ;;  %v980_v57 = vsel %vm86_vm0, %v946_v30, 0.0  ;;  %v947_v5 = vcombine.high %v945_v40, %v945_v40  ;;  %v987_v23 = vsel %vm86_vm0, %v945_v40, 0.0 }
 0x229   :  { %v981_v37 = vrot.slane %v980_v57, 4  ;;  %v975_v49 = vadd.f32 %v974_v61, %v973_v32  ;;  %v988_v33 = vrot.slane %v987_v23, 4 }
 0x22a   :  { %7920 = vst [vmem:[#allocation10_spill] sm:$0xff] %v6712_v45  ;;  %v928_v47 = vmul.f32 %v6712_v45, %v6712_v45  ;;  %v994_v13 = vsel %vm86_vm0, %v947_v5, 0.0 }
 0x22b   :  { %v982_v20 = vadd.f32 %v981_v37, %v980_v57  ;;  %v976_v28 = vrot.slane %v975_v49, 2  ;;  %v995_v10 = vrot.slane %v994_v13, 4  ;;  %v989_v42 = vadd.f32 %v988_v33, %v987_v23 }
 0x22c   :  { %v948_v43 = vcombine.high %v928_v47, %v928_v47  ;;  %v955_v50 = vrot.slane %v928_v47, %v6043_v24 }
 0x22d   :  { %v983_v18 = vrot.slane %v982_v20, 2  ;;  %v977_v52 = vadd.f32 %v976_v28, %v975_v49  ;;  %v996_v27 = vadd.f32 %v995_v10, %v994_v13  ;;  %v990_v31 = vrot.slane %v989_v42, 2 }
 0x22e   :  { %v963_v53 = vcombine.high %v955_v50, %v955_v50  ;;  %v962_v58 = vrot.slane %v948_v43, %v6043_v24 }
 0x22f   :  { %v984_v30 = vadd.f32 %v983_v18, %v982_v20  ;;  %v997_v32 = vrot.slane %v996_v27, 2  ;;  %v991_v40 = vadd.f32 %v990_v31, %v989_v42  ;;  %v978_v61 = vrot.slane %v977_v52, 1 }
 0x230   :  { %v1008_v15 = vsel %vm86_vm0, %v963_v53, 0.0  ;;  %v964_v57 = vcombine.high %v962_v58, %v962_v58 }
 0x231   :  { %v985_v5 = vrot.slane %v984_v30, 1  ;;  %v998_v37 = vadd.f32 %v997_v32, %v996_v27  ;;  %v992_v23 = vrot.slane %v991_v40, 1  ;;  %v1009_v33 = vrot.slane %v1008_v15, 4 }
 0x232   :  { %v1022_v47 = vsel %vm86_vm0, %v964_v57, 0.0  ;;  %v979_v28 = vadd.f32 %v978_v61, %v977_v52  ;;  %v1001_v32 = vsel %vm86_vm0, %v955_v50, 0.0  ;;  %v5418_v50 = vld [vmem:[%s7899_s5 + $0x80] ss:$16 sps:$4 sm:$0xff]   ;;  %v5432_v61 = vld [vmem:[%s7899_s5 + $0xc4] ss:$16 sps:$4 sm:$0xff]  }
 0x233   :  { %v986_v45 = vadd.f32 %v985_v5, %v984_v30  ;;  %v999_v49 = vrot.slane %v998_v37, 1  ;;  %v1023_v13 = vrot.slane %v1022_v47, 4  ;;  %v1010_v10 = vadd.f32 %v1009_v33, %v1008_v15  ;;  %v5430_v15 = vld [vmem:[%s7899_s5 + $0xc0] ss:$16 sps:$4 sm:$0xff]   ;;  %v5438_v57 = vld [vmem:[%s7899_s5 + $0xe4] ss:$16 sps:$4 sm:$0xff]  }
 0x234   :  { %v993_v42 = vadd.f32 %v992_v23, %v991_v40  ;;  %v5424_v40 = vld [vmem:[%s7899_s5 + $0xa0] ss:$16 sps:$4 sm:$0xff]   ;;  %v5450_v33 = vld [vmem:[%s7899_s5 + $0x124] ss:$16 sps:$4 sm:$0xff]  }
 0x235   :  { %1093 = vmatprep.mubr.f32.mxu0 %v986_v45  ;;  %v1000_v43 = vadd.f32 %v999_v49, %v998_v37  ;;  %v1024_v20 = vadd.f32 %v1023_v13, %v1022_v47  ;;  %v1011_v18 = vrot.slane %v1010_v10, 2  ;;  %v5436_v5 = vld [vmem:[%s7899_s5 + $0xe0] ss:$16 sps:$4 sm:$0xff]   ;;  %v5444_v37 = vld [vmem:[%s7899_s5 + $0x104] ss:$16 sps:$4 sm:$0xff]  }
 0x236   :  { %1094 = vmatmul.mubr.f32.vlgmr.msra.gmra.mrb[2].mxu0 %v979_v28  ;;  %v5442_v23 = vld [vmem:[%s7899_s5 + $0x100] ss:$16 sps:$4 sm:$0xff]  }
 0x237   :  { %5294 = vmatpush3.bf16.msra.mxu0 %v6100_v48  ;;  %1163 = vmatprep.mubr.f32.mxu1 %v1000_v43  ;;  %v1025_v31 = vrot.slane %v1024_v20, 2  ;;  %v1012_v27 = vadd.f32 %v1011_v18, %v1010_v10  ;;  %v5448_v47 = vld [vmem:[%s7899_s5 + $0x120] ss:$16 sps:$4 sm:$0xff]  }
 0x238   :  { %1164 = vmatmul.mubr.f32.vlgmr.msra.gmra.mrb[14].mxu1 %v993_v42  ;;  %5296 = vmatprep.subr.bf16.mxu0 %v6126_v59  ;;  %v1015_v59 = vsel %vm86_vm0, %v962_v58, 0.0  ;;  %v5426_v58 = vld [vmem:[%s7899_s5 + $0xa4] ss:$16 sps:$4 sm:$0xff]  }
 0x239   :  { %5326 = vmatpush3.bf16.msra.mxu1 %v6481_v46  ;;  %v1026_v53 = vadd.f32 %v1025_v31, %v1024_v20  ;;  %v1013_v52 = vrot.slane %v1012_v27, 1 }
 0x23a   :  { %5328 = vmatprep.subr.bf16.mxu1 %v6490_v0 }
 0x23b   :  { %5298 = vmatpush3.bf16.msra.mxu0 %v6142_v1  ;;  %v1027_v45 = vrot.slane %v1026_v53, 1  ;;  %v1014_v30 = vadd.f32 %v1013_v52, %v1012_v27  ;;  %v1002_v1 = vrot.slane %v1001_v32, 4 }
 0x23c   :  { %5300 = vmatprep.subr.bf16.mxu0 %v6158_v12  ;;  %v1016_v12 = vrot.slane %v1015_v59, 4 }
 0x23d   :  { %5330 = vmatpush3.bf16.msra.mxu1 %v6501_v21  ;;  %v1028_v48 = vadd.f32 %v1027_v45, %v1026_v53  ;;  %1233 = vmatprep.mubr.f32.mxu0 %v1014_v30  ;;  %v1003_v46 = vadd.f32 %v1002_v1, %v1001_v32 }
 0x23e   :  { %5332 = vmatprep.subr.bf16.mxu1 %v6510_v39  ;;  %v7922_v39 = vld [vmem:[#allocation5_spill] sm:$0xff] }
 0x23f   :  { %5302 = vmatpush3.bf16.msra.mxu0 %v6164_v16  ;;  %1303 = vmatprep.mubr.f32.mxu1 %v1028_v48  ;;  %v1017_v16 = vadd.f32 %v1016_v12, %v1015_v59  ;;  %v5399_v12 = vld [vmem:[%s7899_s5 + $0xc] ss:$16 sps:$4 sm:$0xff]  }
 0x240   :  { %5304 = vmatprep.subr.bf16.mxu0 %v6185_v29  ;;  %v1004_v29 = vrot.slane %v1003_v46, 2 }
 0x241   :  { %5334 = vmatpush3.bf16.msra.mxu1 %v6521_v36  ;;  %v1018_v0 = vrot.slane %v1017_v16, 2 }
 0x242   :  { %5336 = vmatprep.subr.bf16.mxu1 %v6532_v4  ;;  %v7924_v4 = vld [vmem:[#allocation8_spill] sm:$0xff] }
 0x243   :  { %5306 = vmatpush3.bf16.msra.mxu0 %v6219_v51  ;;  %v1005_v51 = vadd.f32 %v1004_v29, %v1003_v46  ;;  %v5415_v46 = vld [vmem:[%s7899_s5 + $0x68] ss:$16 sps:$4 sm:$0xff]  }
 0x244   :  { %5308 = vmatprep.subr.bf16.mxu0 %v6224_v55  ;;  %v1019_v55 = vadd.f32 %v1018_v0, %v1017_v16  ;;  %v5423_v16 = vld [vmem:[%s7899_s5 + $0x8c] ss:$16 sps:$4 sm:$0xff]   ;;  %v5421_v29 = vld [vmem:[%s7899_s5 + $0x88] ss:$16 sps:$4 sm:$0xff]  }
 0x245   :  { %5338 = vmatpush3.bf16.msra.mxu1 %v6543_v6  ;;  %v7925_v6 = vld [vmem:[#allocation9_spill] sm:$0xff]  ;;  %v5429_v0 = vld [vmem:[%s7899_s5 + $0xac] ss:$16 sps:$4 sm:$0xff]  }
 0x246   :  { %5340 = vmatprep.subr.bf16.mxu1 %v6552_v22  ;;  %v1020_v21 = vrot.slane %v1019_v55, 1  ;;  %v5402_v22 = vld [vmem:[%s7899_s5 + $0x24] ss:$16 sps:$4 sm:$0xff]  }
 0x247   :  { %5310 = vmatpush3.bf16.msra.mxu0 %v6254_v7  ;;  %v1006_v7 = vrot.slane %v1005_v51, 1 }
 0x248   :  { %5312 = vmatprep.subr.bf16.mxu0 %v6260_v9  ;;  %v7921_v9 = vld [vmem:[#allocation6_spill] sm:$0xff]  ;;  %v1021_v36 = vadd.f32 %v1020_v21, %v1019_v55 }
 0x249   :  { %5342 = vmatpush3.bf16.msra.mxu1 %v6563_v25  ;;  %v5400_v25 = vld [vmem:[%s7899_s5 + $0x20] ss:$16 sps:$4 sm:$0xff]   ;;  %v5435_v55 = vld [vmem:[%s7899_s5 + $0xcc] ss:$16 sps:$4 sm:$0xff]   ;;  %v5439_v21 = vld [vmem:[%s7899_s5 + $0xe8] ss:$16 sps:$4 sm:$0xff]  }
 0x24a   :  { %5344 = vmatprep.subr.bf16.mxu1 %v6572_v44  ;;  %v5408_v44 = vld [vmem:[%s7899_s5 + $0x44] ss:$16 sps:$4 sm:$0xff]  }
 0x24b   :  { %5314 = vmatpush3.bf16.msra.mxu0 %v6290_v34  ;;  %v1007_v34 = vadd.f32 %v1006_v7, %v1005_v51  ;;  %v5427_v51 = vld [vmem:[%s7899_s5 + $0xa8] ss:$16 sps:$4 sm:$0xff]  }
 0x24c   :  { %5316 = vmatprep.subr.bf16.mxu0 %v6299_v38  ;;  %v7923_v38 = vld [vmem:[#allocation7_spill] sm:$0xff] }
 0x24d   :  { %5346 = vmatpush3.bf16.msra.mxu1 %v6583_v35  ;;  %v5406_v35 = vld [vmem:[%s7899_s5 + $0x40] ss:$16 sps:$4 sm:$0xff]   ;;  %v5433_v7 = vld [vmem:[%s7899_s5 + $0xc8] ss:$16 sps:$4 sm:$0xff]  }
 0x24e   :  { %5348 = vmatprep.subr.bf16.mxu1 %v6592_v63  ;;  %v5414_v63 = vld [vmem:[%s7899_s5 + $0x64] ss:$16 sps:$4 sm:$0xff]  }
 0x24f   :  { %5318 = vmatpush3.bf16.msra.mxu0 %v6334_v3  ;;  %v5394_v3 = vld [vmem:[%s7899_s5] ss:$16 sps:$4 sm:$0xff]  }
 0x250   :  { %5320 = vmatprep.subr.bf16.mxu0 %v6340_v8  ;;  %v5396_v8 = vld [vmem:[%s7899_s5 + $0x4] ss:$16 sps:$4 sm:$0xff]  }
 0x251   :  { %5350 = vmatpush3.bf16.msra.mxu1 %v6601_v62  ;;  %v5412_v62 = vld [vmem:[%s7899_s5 + $0x60] ss:$16 sps:$4 sm:$0xff]  }
 0x252   :  { %5352 = vmatprep.subr.bf16.mxu1 %v7921_v9  ;;  %v5441_v9 = vld [vmem:[%s7899_s5 + $0xec] ss:$16 sps:$4 sm:$0xff]  }
 0x253   :  { %5322 = vmatpush3.bf16.msra.mxu0 %v7922_v39  ;;  %v5447_v39 = vld [vmem:[%s7899_s5 + $0x10c] ss:$16 sps:$4 sm:$0xff]  }
 0x254   :  { %3431 = vmatprep.subr.bf16.mxu0 %v5396_v8  ;;  %v5457_v8 = vld [vmem:[%s7899_s5 + $0x148] ss:$16 sps:$4 sm:$0xff]  }
 0x255   :  { %5354 = vmatpush3.bf16.msra.mxu1 %v7923_v38  ;;  %v5453_v38 = vld [vmem:[%s7899_s5 + $0x12c] ss:$16 sps:$4 sm:$0xff]  }
 0x256   :  { %1234 = vmatmul.mubr.f32.vlgmr.msra.gmra.mrb[4].mxu0 %v1007_v34  ;;  %1315 = vmatprep.subr.mxu1 %v7924_v4  ;;  %v5445_v34 = vld [vmem:[%s7899_s5 + $0x108] ss:$16 sps:$4 sm:$0xff]   ;;  %v5456_v4 = vld [vmem:[%s7899_s5 + $0x144] ss:$16 sps:$4 sm:$0xff]  }
 0x257   :  { %3432 = vmatpush1.bf16.msra.mxu0 %v5394_v3  ;;  %v5454_v3 = vld [vmem:[%s7899_s5 + $0x140] ss:$16 sps:$4 sm:$0xff]  }
 0x258   :  { %1304 = vmatmul.mubr.f32.vlgmr.msra.gmra.mrb[16].mxu1 %v1021_v36  ;;  %3433 = vmatprep.subr.bf16.mxu0 %v5402_v22  ;;  %v5451_v36 = vld [vmem:[%s7899_s5 + $0x128] ss:$16 sps:$4 sm:$0xff]   ;;  %v5462_v22 = vld [vmem:[%s7899_s5 + $0x164] ss:$16 sps:$4 sm:$0xff]  }
 0x259   :  { %1316 = vmatpush1.msra.mxu1 %v7925_v6  ;;  %1379 = vmatprep.mubr.f32.mxu1 %v7919_v41  ;;  %v5459_v6 = vld [vmem:[%s7899_s5 + $0x14c] ss:$16 sps:$4 sm:$0xff]  }
 0x25a   :  { %1386 = vmatprep.subr.mxu1 %v6625_v56  ;;  %v5420_v56 = vld [vmem:[%s7899_s5 + $0x84] ss:$16 sps:$4 sm:$0xff]  }
 0x25b   :  { %3434 = vmatpush1.bf16.msra.mxu0 %v5400_v25  ;;  %v5465_v25 = vld [vmem:[%s7899_s5 + $0x16c] ss:$16 sps:$4 sm:$0xff]  }
 0x25c   :  { %3435 = vmatprep.subr.bf16.mxu0 %v5408_v44  ;;  %v5460_v44 = vld [vmem:[%s7899_s5 + $0x160] ss:$16 sps:$4 sm:$0xff]  }
 0x25f   :  { %3436 = vmatpush1.bf16.msra.mxu0 %v5406_v35  ;;  %v5463_v35 = vld [vmem:[%s7899_s5 + $0x168] ss:$16 sps:$4 sm:$0xff]  }
 0x260   :  { %3437 = vmatprep.subr.bf16.mxu0 %v5414_v63  ;;  %v5468_v63 = vld [vmem:[%s7899_s5 + $0x184] ss:$16 sps:$4 sm:$0xff]  }
 0x263   :  { %3438 = vmatpush1.bf16.msra.mxu0 %v5412_v62  ;;  %v5471_v62 = vld [vmem:[%s7899_s5 + $0x18c] ss:$16 sps:$4 sm:$0xff]  }
 0x264   :  { %3439 = vmatprep.subr.bf16.mxu0 %v5420_v56  ;;  %v5466_v56 = vld [vmem:[%s7899_s5 + $0x180] ss:$16 sps:$4 sm:$0xff]  }
 0x267   :  { %3440 = vmatpush1.bf16.msra.mxu0 %v5418_v50  ;;  %v5469_v50 = vld [vmem:[%s7899_s5 + $0x188] ss:$16 sps:$4 sm:$0xff]  }
 0x268   :  { %3441 = vmatprep.subr.bf16.mxu0 %v5426_v58  ;;  %v5474_v58 = vld [vmem:[%s7899_s5 + $0x1a4] ss:$16 sps:$4 sm:$0xff]  }
 0x26b   :  { %3442 = vmatpush1.bf16.msra.mxu0 %v5424_v40  ;;  %v5477_v40 = vld [vmem:[%s7899_s5 + $0x1ac] ss:$16 sps:$4 sm:$0xff]  }
 0x26c   :  { %3443 = vmatprep.subr.bf16.mxu0 %v5432_v61  ;;  %v5472_v61 = vld [vmem:[%s7899_s5 + $0x1a0] ss:$16 sps:$4 sm:$0xff]  }
 0x26f   :  { %3444 = vmatpush1.bf16.msra.mxu0 %v5430_v15  ;;  %v5475_v15 = vld [vmem:[%s7899_s5 + $0x1a8] ss:$16 sps:$4 sm:$0xff]  }
 0x270   :  { %3445 = vmatprep.subr.bf16.mxu0 %v5438_v57  ;;  %v5480_v57 = vld [vmem:[%s7899_s5 + $0x1c4] ss:$16 sps:$4 sm:$0xff]  }
 0x273   :  { %3446 = vmatpush1.bf16.msra.mxu0 %v5436_v5  ;;  %v5483_v5 = vld [vmem:[%s7899_s5 + $0x1cc] ss:$16 sps:$4 sm:$0xff]  }
 0x274   :  { %3447 = vmatprep.subr.bf16.mxu0 %v5444_v37  ;;  %v5478_v37 = vld [vmem:[%s7899_s5 + $0x1c0] ss:$16 sps:$4 sm:$0xff]  }
 0x277   :  { %3448 = vmatpush1.bf16.msra.mxu0 %v5442_v23  ;;  %v5481_v23 = vld [vmem:[%s7899_s5 + $0x1c8] ss:$16 sps:$4 sm:$0xff]  }
 0x278   :  { %3449 = vmatprep.subr.bf16.mxu0 %v5450_v33  ;;  %v5486_v33 = vld [vmem:[%s7899_s5 + $0x1e4] ss:$16 sps:$4 sm:$0xff]  }
 0x27b   :  { %3450 = vmatpush1.bf16.msra.mxu0 %v5448_v47  ;;  %v5489_v47 = vld [vmem:[%s7899_s5 + $0x1ec] ss:$16 sps:$4 sm:$0xff]  }
 0x27c   :  { %3451 = vmatprep.subr.bf16.mxu0 %v5456_v4 }
 0x27f   :  { %3452 = vmatpush1.bf16.msra.mxu0 %v5454_v3 }
 0x280   :  { %3453 = vmatprep.subr.bf16.mxu0 %v5462_v22 }
 0x283   :  { %3454 = vmatpush1.bf16.msra.mxu0 %v5460_v44 }
 0x284   :  { %3455 = vmatprep.subr.bf16.mxu0 %v5468_v63 }
 0x287   :  { %3456 = vmatpush1.bf16.msra.mxu0 %v5466_v56 }
 0x288   :  { %3457 = vmatprep.subr.bf16.mxu0 %v5474_v58 }
 0x28b   :  { %3458 = vmatpush1.bf16.msra.mxu0 %v5472_v61 }
 0x28c   :  { %3459 = vmatprep.subr.bf16.mxu0 %v5480_v57 }
 0x28f   :  { %3460 = vmatpush1.bf16.msra.mxu0 %v5478_v37 }
 0x290   :  { %3461 = vmatprep.subr.bf16.mxu0 %v5486_v33 }
 0x309   :  { %v4969_v49 = vpop.f32.mrb[2].mxu0 }
 0x30a   :  { %v4970_v13 = vpop.f32.mrb[3].mxu0 }
 0x30b   :  { %v4971_v28 = vadd.f32 %v4970_v13, %v4969_v49  ;;  %v5004_v10 = vpop.f32.mrb[14].mxu1  ;;  %v5484_v49 = vld [vmem:[%s7899_s5 + $0x1e0] ss:$16 sps:$4 sm:$0xff]   ;;  %v5487_v13 = vld [vmem:[%s7899_s5 + $0x1e8] ss:$16 sps:$4 sm:$0xff]  }
 0x30c   :  { %v5005_v43 = vpop.f32.mrb[15].mxu1  ;;  %3462 = vmatpush1.bf16.msra.mxu0 %v5484_v49 }
 0x30d   :  { %v5006_v20 = vadd.f32 %v5005_v43, %v5004_v10  ;;  %v5495_v10 = vld [vmem:[%s7899_s5 + $0x20c] ss:$16 sps:$4 sm:$0xff]   ;;  %v6970_v43 = vsub.s32 1, %v6022_v17 }
 0x30f   :  { %v1166_v42 = vadd.f32 %v5006_v20, %v4971_v28  ;;  %v5492_v28 = vld [vmem:[%s7899_s5 + $0x204] ss:$16 sps:$4 sm:$0xff]   ;;  %v6973_v20 = vsub.s32 2, %v6022_v17 }
 0x310   :  { %3472 = vmatprep.subr.bf16.mxu0 %v5492_v28 }
 0x329   :  { %v5039_v18 = vpop.f32.mrb[4].mxu0 }
 0x32a   :  { %v5040_v31 = vpop.f32.mrb[5].mxu0 }
 0x32b   :  { %v5041_v27 = vadd.f32 %v5040_v31, %v5039_v18  ;;  %v5074_v53 = vpop.f32.mrb[16].mxu1  ;;  %v1677_v18 = vld [vmem:[%s7897_s3] sm:$0xff] }
 0x32c   :  { %v5075_v52 = vpop.f32.mrb[17].mxu1  ;;  %v1749_v31 = vld [vmem:[%s7898_s4] sm:$0xff] }
 0x32d   :  { %v1236_v45 = vadd.f32 %v5041_v27, %v1166_v42  ;;  %v5076_v30 = vadd.f32 %v5075_v52, %v5074_v53  ;;  %v6976_v42 = vsub.s32 3, %v6022_v17  ;;  %v1682_v27 = vrot.slane %v1677_v18, %v6685_v2 }
 0x32e   :  { %v1686_v53 = vrot.slane %v1677_v18, %v6970_v43  ;;  %v1690_v52 = vrot.slane %v1677_v18, %v6973_v20 }
 0x32f   :  { %v1306_v48 = vadd.f32 %v5076_v30, %v1236_v45  ;;  %v1694_v45 = vrot.slane %v1677_v18, %v6976_v42  ;;  %v1754_v30 = vrot.slane %v1749_v31, %v6685_v2 }
 0x331   :  { %v1309_v32 = vmul.f32 0.00390625, %v1306_v48  ;;  %v1758_v48 = vrot.slane %v1749_v31, %v6970_v43 }
 0x333   :  { %v1310_v59 = vadd.f32 1e-05, %v1309_v32  ;;  %v1762_v32 = vrot.slane %v1749_v31, %v6973_v20 }
 0x335   :  { %5890 = vrsqrt.f32 %v1310_v59  ;;  %v1766_v59 = vrot.slane %v1749_v31, %v6976_v42 }
 0x33f   :  { %v5891_v1 = vpop.eup %5890 }
 0x340   :  { %4456 = vmatmul.mubr.msk.f32.vlgmr.msra.gmra.mrb[18].mxu1 %vm561_vm1, %v5891_v1 }
 0x341   :  { %1387 = vmatpush1.msra.mxu1 %v6633_v60  ;;  %1450 = vmatprep.mubr.f32.mxu1 %v7919_v41  ;;  %v5397_v60 = vld [vmem:[%s7899_s5 + $0x8] ss:$16 sps:$4 sm:$0xff]  }
 0x342   :  { %1457 = vmatprep.subr.mxu1 %v6638_v26  ;;  %v5405_v26 = vld [vmem:[%s7899_s5 + $0x2c] ss:$16 sps:$4 sm:$0xff]  }
 0x344   :  { %4457 = vmatmul.mubr.msk.f32.vlgmr.msra.gmra.mrb[20].mxu1 %vm561_vm1, %v5891_v1 }
 0x345   :  { %1458 = vmatpush1.msra.mxu1 %v6647_v19  ;;  %1521 = vmatprep.mubr.f32.mxu1 %v7919_v41  ;;  %v5403_v19 = vld [vmem:[%s7899_s5 + $0x28] ss:$16 sps:$4 sm:$0xff]  }
 0x346   :  { %1528 = vmatprep.subr.mxu1 %v6652_v14  ;;  %v5409_v14 = vld [vmem:[%s7899_s5 + $0x48] ss:$16 sps:$4 sm:$0xff]  }
 0x348   :  { %4458 = vmatmul.mubr.msk.f32.vlgmr.msra.gmra.mrb[22].mxu1 %vm561_vm1, %v5891_v1 }
 0x349   :  { %1529 = vmatpush1.msra.mxu1 %v6661_v54  ;;  %1592 = vmatprep.mubr.f32.mxu1 %v7919_v41  ;;  %v5411_v41 = vld [vmem:[%s7899_s5 + $0x4c] ss:$16 sps:$4 sm:$0xff]  }
 0x34a   :  { %3595 = vmatprep.subr.bf16.mxu1 %v5399_v12  ;;  %v5417_v54 = vld [vmem:[%s7899_s5 + $0x6c] ss:$16 sps:$4 sm:$0xff]  }
 0x34c   :  { %4459 = vmatmul.mubr.msk.f32.vlgmr.msra.gmra.mrb[24].mxu1 %vm561_vm1, %v5891_v1 }
 0x34d   :  { %3596 = vmatpush1.bf16.msra.mxu1 %v5397_v60 }
 0x34e   :  { %3597 = vmatprep.subr.bf16.mxu1 %v5405_v26 }
 0x351   :  { %3598 = vmatpush1.bf16.msra.mxu1 %v5403_v19  ;;  %v1711_v19 = vcombine.low %v1682_v27, %v1686_v53 }
 0x352   :  { %3599 = vmatprep.subr.bf16.mxu1 %v5411_v41  ;;  %v1712_v41 = vcombine.low %v1690_v52, %v1694_v45 }
 0x355   :  { %3600 = vmatpush1.bf16.msra.mxu1 %v5409_v14  ;;  %v1783_v14 = vcombine.low %v1754_v30, %v1758_v48 }
 0x356   :  { %3601 = vmatprep.subr.bf16.mxu1 %v5417_v54  ;;  %v1784_v54 = vcombine.low %v1762_v32, %v1766_v59 }
 0x359   :  { %3602 = vmatpush1.bf16.msra.mxu1 %v5415_v46  ;;  %v1697_v46 = vsub.s32 4, %v6022_v17 }
 0x35a   :  { %3603 = vmatprep.subr.bf16.mxu1 %v5423_v16 }
 0x35b   :  { %v1698_v4 = vrot.slane %v1677_v18, %v1697_v46 }
 0x35d   :  { %3604 = vmatpush1.bf16.msra.mxu1 %v5421_v29 }
 0x35e   :  { %3605 = vmatprep.subr.bf16.mxu1 %v5429_v0  ;;  %v1701_v0 = vsub.s32 5, %v6022_v17 }
 0x360   :  { %v1774_v63 = vrot.slane %v1749_v31, %v1701_v0 }
 0x361   :  { %3606 = vmatpush1.bf16.msra.mxu1 %v5427_v51  ;;  %v1705_v51 = vsub.s32 6, %v6022_v17 }
 0x362   :  { %3607 = vmatprep.subr.bf16.mxu1 %v5435_v55  ;;  %v1709_v55 = vsub.s32 7, %v6022_v17 }
 0x363   :  { %v1706_v22 = vrot.slane %v1677_v18, %v1705_v51 }
 0x365   :  { %3608 = vmatpush1.bf16.msra.mxu1 %v5433_v7 }
 0x366   :  { %3609 = vmatprep.subr.bf16.mxu1 %v5441_v9 }
 0x369   :  { %3610 = vmatpush1.bf16.msra.mxu1 %v5439_v21 }
 0x36a   :  { %3611 = vmatprep.subr.bf16.mxu1 %v5447_v39  ;;  %v1719_v39 = vrot.slane %v1711_v19, %v6043_v24 }
 0x36d   :  { %3612 = vmatpush1.bf16.msra.mxu1 %v5445_v34  ;;  %v1726_v34 = vrot.slane %v1712_v41, %v6043_v24 }
 0x36e   :  { %3613 = vmatprep.subr.bf16.mxu1 %v5453_v38  ;;  %v1791_v38 = vrot.slane %v1783_v14, %v6043_v24 }
 0x36f   :  { %v1727_v61 = vcombine.low %v1719_v39, %v1726_v34  ;;  %v5496_v34 = vld [vmem:[%s7899_s5 + $0x220] ss:$16 sps:$4 sm:$0xff]  }
 0x371   :  { %3614 = vmatpush1.bf16.msra.mxu1 %v5451_v36  ;;  %v1798_v36 = vrot.slane %v1784_v54, %v6043_v24 }
 0x372   :  { %3615 = vmatprep.subr.bf16.mxu1 %v5459_v6 }
 0x375   :  { %3616 = vmatpush1.bf16.msra.mxu1 %v5457_v8  ;;  %v1702_v8 = vrot.slane %v1677_v18, %v1701_v0 }
 0x376   :  { %3617 = vmatprep.subr.bf16.mxu1 %v5465_v25  ;;  %v1710_v25 = vrot.slane %v1677_v18, %v1709_v55 }
 0x377   :  { %v1728_v37 = vcombine.low %v1698_v4, %v1702_v8  ;;  %v5507_v4 = vld [vmem:[%s7899_s5 + $0x24c] ss:$16 sps:$4 sm:$0xff]   ;;  %v5510_v8 = vld [vmem:[%s7899_s5 + $0x264] ss:$16 sps:$4 sm:$0xff]  }
 0x379   :  { %3618 = vmatpush1.bf16.msra.mxu1 %v5463_v35  ;;  %v1770_v35 = vrot.slane %v1749_v31, %v1697_v46 }
 0x37a   :  { %3619 = vmatprep.subr.bf16.mxu1 %v5471_v62  ;;  %v1778_v62 = vrot.slane %v1749_v31, %v1705_v51 }
 0x37b   :  { %v1800_v49 = vcombine.low %v1770_v35, %v1774_v63  ;;  %v5519_v35 = vld [vmem:[%s7899_s5 + $0x28c] ss:$16 sps:$4 sm:$0xff]   ;;  %v5514_v63 = vld [vmem:[%s7899_s5 + $0x280] ss:$16 sps:$4 sm:$0xff]  }
 0x37d   :  { %3620 = vmatpush1.bf16.msra.mxu1 %v5469_v50  ;;  %v1808_v45 = vrot.slane %v1800_v49, %v6043_v24  ;;  %v5540_v49 = vld [vmem:[%s7899_s5 + $0x304] ss:$16 sps:$4 sm:$0xff]  }
 0x37e   :  { %3621 = vmatprep.subr.bf16.mxu1 %v5477_v40  ;;  %v1782_v40 = vrot.slane %v1749_v31, %v1709_v55  ;;  %v1736_v31 = vrot.slane %v1728_v37, %v6043_v24  ;;  %v5534_v37 = vld [vmem:[%s7899_s5 + $0x2e4] ss:$16 sps:$4 sm:$0xff]  }
 0x380   :  { %v1801_v18 = vcombine.low %v1778_v62, %v1782_v40  ;;  %v5517_v62 = vld [vmem:[%s7899_s5 + $0x288] ss:$16 sps:$4 sm:$0xff]  }
 0x381   :  { %3622 = vmatpush1.bf16.msra.mxu1 %v5475_v15  ;;  %v5523_v40 = vld [vmem:[%s7899_s5 + $0x2a8] ss:$16 sps:$4 sm:$0xff]  }
 0x382   :  { %3623 = vmatprep.subr.bf16.mxu1 %v5483_v5  ;;  %v1815_v59 = vrot.slane %v1801_v18, %v6043_v24  ;;  %v5546_v18 = vld [vmem:[%s7899_s5 + $0x324] ss:$16 sps:$4 sm:$0xff]  }
 0x384   :  { %v1816_v54 = vcombine.low %v1808_v45, %v1815_v59  ;;  %v5555_v45 = vld [vmem:[%s7899_s5 + $0x34c] ss:$16 sps:$4 sm:$0xff]  }
 0x385   :  { %3624 = vmatpush1.bf16.msra.mxu1 %v5481_v23  ;;  %v1729_v23 = vcombine.low %v1706_v22, %v1710_v25  ;;  %v5513_v22 = vld [vmem:[%s7899_s5 + $0x26c] ss:$16 sps:$4 sm:$0xff]   ;;  %v5508_v25 = vld [vmem:[%s7899_s5 + $0x260] ss:$16 sps:$4 sm:$0xff]  }
 0x386   :  { %3625 = vmatprep.subr.bf16.mxu1 %v5489_v47  ;;  %v5561_v59 = vld [vmem:[%s7899_s5 + $0x36c] ss:$16 sps:$4 sm:$0xff]  }
 0x387   :  { %v1743_v52 = vrot.slane %v1729_v23, %v6043_v24  ;;  %v5537_v23 = vld [vmem:[%s7899_s5 + $0x2ec] ss:$16 sps:$4 sm:$0xff]  }
 0x389   :  { %3626 = vmatpush1.bf16.msra.mxu1 %v5487_v13 }
 0x38a   :  { %3636 = vmatprep.subr.bf16.mxu1 %v5495_v10  ;;  %v1799_v10 = vcombine.low %v1791_v38, %v1798_v36  ;;  %v5499_v38 = vld [vmem:[%s7899_s5 + $0x228] ss:$16 sps:$4 sm:$0xff]   ;;  %v5504_v36 = vld [vmem:[%s7899_s5 + $0x244] ss:$16 sps:$4 sm:$0xff]  }
 0x413   :  { %v1381_v1 = vpop.f32.mrb[18].mxu1 }
 0x414   :  { %v1602_v12 = vrot.slane %v1381_v1, %v6685_v2  ;;  %v1383_v60 = vpop.f32.mrb[19].mxu1 }
 0x415   :  { %v1606_v26 = vrot.slane %v1383_v60, %v6685_v2  ;;  %v1744_v60 = vcombine.low %v1736_v31, %v1743_v52  ;;  %v5547_v31 = vld [vmem:[%s7899_s5 + $0x328] ss:$16 sps:$4 sm:$0xff]   ;;  %v5552_v52 = vld [vmem:[%s7899_s5 + $0x344] ss:$16 sps:$4 sm:$0xff]  }
 0x417   :  { %v1639_v16 = vcombine.low %v1602_v12, %v1606_v26  ;;  %v1452_v29 = vpop.f32.mrb[20].mxu1  ;;  %v7926_v26 = vld [vmem:[#allocation10_spill] sm:$0xff] }
 0x418   :  { %v1610_v7 = vrot.slane %v1452_v29, %v6685_v2  ;;  %v1454_v9 = vpop.f32.mrb[21].mxu1  ;;  %v5493_v29 = vld [vmem:[%s7899_s5 + $0x208] ss:$16 sps:$4 sm:$0xff]  }
 0x419   :  { %v1614_v21 = vrot.slane %v1454_v9, %v6685_v2  ;;  %v1647_v56 = vrot.slane %v1639_v16, %v6043_v24  ;;  %v5490_v16 = vld [vmem:[%s7899_s5 + $0x200] ss:$16 sps:$4 sm:$0xff]   ;;  %v5498_v9 = vld [vmem:[%s7899_s5 + $0x224] ss:$16 sps:$4 sm:$0xff]  }
 0x41b   :  { %v1640_v6 = vcombine.low %v1610_v7, %v1614_v21  ;;  %v1523_v3 = vpop.f32.mrb[22].mxu1  ;;  %v5501_v21 = vld [vmem:[%s7899_s5 + $0x22c] ss:$16 sps:$4 sm:$0xff]  }
 0x41c   :  { %v1618_v17 = vrot.slane %v1523_v3, %v6685_v2  ;;  %v1525_v44 = vpop.f32.mrb[23].mxu1  ;;  %v5505_v3 = vld [vmem:[%s7899_s5 + $0x248] ss:$16 sps:$4 sm:$0xff]  }
 0x41d   :  { %v1654_v50 = vrot.slane %v1640_v6, %v6043_v24  ;;  %v1622_v58 = vrot.slane %v1525_v44, %v6685_v2  ;;  %v5502_v6 = vld [vmem:[%s7899_s5 + $0x240] ss:$16 sps:$4 sm:$0xff]   ;;  %v5516_v44 = vld [vmem:[%s7899_s5 + $0x284] ss:$16 sps:$4 sm:$0xff]  }
 0x41f   :  { %v1655_v15 = vcombine.low %v1647_v56, %v1654_v50  ;;  %v1656_v57 = vcombine.low %v1618_v17, %v1622_v58  ;;  %v1594_v5 = vpop.f32.mrb[24].mxu1  ;;  %v5511_v17 = vld [vmem:[%s7899_s5 + $0x268] ss:$16 sps:$4 sm:$0xff]   ;;  %v5522_v56 = vld [vmem:[%s7899_s5 + $0x2a4] ss:$16 sps:$4 sm:$0xff]  }
 0x420   :  { %v1626_v33 = vrot.slane %v1594_v5, %v6685_v2  ;;  %v1596_v47 = vpop.f32.mrb[25].mxu1  ;;  %v5525_v50 = vld [vmem:[%s7899_s5 + $0x2ac] ss:$16 sps:$4 sm:$0xff]   ;;  %v5520_v58 = vld [vmem:[%s7899_s5 + $0x2a0] ss:$16 sps:$4 sm:$0xff]  }
 0x421   :  { %v1675_v13 = vmul.f32 %v1655_v15, %v6699_v11  ;;  %v1630_v28 = vrot.slane %v1596_v47, %v6685_v2  ;;  %v1664_v30 = vrot.slane %v1656_v57, %v6043_v24  ;;  %v5531_v15 = vld [vmem:[%s7899_s5 + $0x2cc] ss:$16 sps:$4 sm:$0xff]   ;;  %v5526_v57 = vld [vmem:[%s7899_s5 + $0x2c0] ss:$16 sps:$4 sm:$0xff]   ;;  %v5529_v5 = vld [vmem:[%s7899_s5 + $0x2c8] ss:$16 sps:$4 sm:$0xff]  }
 0x422   :  { %v5535_v47 = vld [vmem:[%s7899_s5 + $0x2e8] ss:$16 sps:$4 sm:$0xff]  }
 0x423   :  { %v1657_v27 = vcombine.low %v1626_v33, %v1630_v28  ;;  %v1747_v53 = vmul.f32 %v1727_v61, %v1675_v13  ;;  %v5528_v61 = vld [vmem:[%s7899_s5 + $0x2c4] ss:$16 sps:$4 sm:$0xff]   ;;  %v5532_v33 = vld [vmem:[%s7899_s5 + $0x2e0] ss:$16 sps:$4 sm:$0xff]   ;;  %v5543_v13 = vld [vmem:[%s7899_s5 + $0x30c] ss:$16 sps:$4 sm:$0xff]  }
 0x424   :  { %v5538_v28 = vld [vmem:[%s7899_s5 + $0x300] ss:$16 sps:$4 sm:$0xff]  }
 0x425   :  { %v1671_v48 = vrot.slane %v1657_v27, %v6043_v24  ;;  %v1819_v32 = vadd.f32 %v1799_v10, %v1747_v53  ;;  %v5541_v10 = vld [vmem:[%s7899_s5 + $0x308] ss:$16 sps:$4 sm:$0xff]   ;;  %v5549_v27 = vld [vmem:[%s7899_s5 + $0x32c] ss:$16 sps:$4 sm:$0xff]   ;;  %v5544_v53 = vld [vmem:[%s7899_s5 + $0x320] ss:$16 sps:$4 sm:$0xff]  }
 0x427   :  { %v1672_v11 = vcombine.low %v1664_v30, %v1671_v48  ;;  %v1830_v1 = vrot.slane %v1819_v32, %v6043_v24  ;;  %v1823_v12 = vcombine.high %v1819_v32, %v1819_v32  ;;  %v5550_v30 = vld [vmem:[%s7899_s5 + $0x340] ss:$16 sps:$4 sm:$0xff]   ;;  %v5553_v48 = vld [vmem:[%s7899_s5 + $0x348] ss:$16 sps:$4 sm:$0xff]   ;;  %v5558_v32 = vld [vmem:[%s7899_s5 + $0x364] ss:$16 sps:$4 sm:$0xff]  }
 0x429   :  { %v1676_v19 = vmul.f32 %v1672_v11, %v7926_v26  ;;  %v1838_v41 = vcombine.high %v1830_v1, %v1830_v1  ;;  %v7020_v14 = vrot.slane %v1823_v12, %v6043_v24  ;;  %v1865_v55 = vpack.c.bf16 %v1830_v1, %v1830_v1  ;;  %v5556_v11 = vld [vmem:[%s7899_s5 + $0x360] ss:$16 sps:$4 sm:$0xff]   ;;  %v5559_v1 = vld [vmem:[%s7899_s5 + $0x368] ss:$16 sps:$4 sm:$0xff]   ;;  %v5564_v12 = vld [vmem:[%s7899_s5 + $0x384] ss:$16 sps:$4 sm:$0xff]  }
 0x42a   :  { %v5562_v26 = vld [vmem:[%s7899_s5 + $0x380] ss:$16 sps:$4 sm:$0xff]  }
 0x42b   :  { %v1866_v46 = vpack.c.bf16 %v1838_v41, %v1838_v41  ;;  %v1839_v0 = vcombine.high %v7020_v14, %v7020_v14  ;;  %v1748_v51 = vmul.f32 %v1744_v60, %v1676_v19  ;;  %v5567_v60 = vld [vmem:[%s7899_s5 + $0x38c] ss:$16 sps:$4 sm:$0xff]   ;;  %v5565_v19 = vld [vmem:[%s7899_s5 + $0x388] ss:$16 sps:$4 sm:$0xff]   ;;  %v5570_v41 = vld [vmem:[%s7899_s5 + $0x3a4] ss:$16 sps:$4 sm:$0xff]  }
 0x42d   :  { %3463 = vmatprep.mubr.bf16.mxu0 %v1866_v46  ;;  %3627 = vmatprep.mubr.bf16.mxu1 %v1866_v46  ;;  %v1868_v7 = vpack.c.bf16 %v1839_v0, %v1839_v0  ;;  %v7036_v39 = vadd.f32 %v1816_v54, %v1748_v51  ;;  %v5573_v54 = vld [vmem:[%s7899_s5 + $0x3ac] ss:$16 sps:$4 sm:$0xff]   ;;  %v5568_v46 = vld [vmem:[%s7899_s5 + $0x3a0] ss:$16 sps:$4 sm:$0xff]  }
 0x42e   :  { %3464 = vmatmul.mubr.bf16.vlgmr.msra.gmra.mrb[8].mxu0 %v1865_v55  ;;  %3628 = vmatmul.mubr.bf16.vlgmr.msra.gmra.mrb[28].mxu1 %v1865_v55  ;;  %v5579_v0 = vld [vmem:[%s7899_s5 + $0x3cc] ss:$16 sps:$4 sm:$0xff]   ;;  %v5574_v51 = vld [vmem:[%s7899_s5 + $0x3c0] ss:$16 sps:$4 sm:$0xff]   ;;  %v5577_v55 = vld [vmem:[%s7899_s5 + $0x3c8] ss:$16 sps:$4 sm:$0xff]  }
 0x42f   :  { %3473 = vmatpush1.bf16.msra.mxu0 %v5490_v16  ;;  %3637 = vmatpush1.bf16.msra.mxu1 %v5493_v29  ;;  %v5571_v16 = vld [vmem:[%s7899_s5 + $0x3a8] ss:$16 sps:$4 sm:$0xff]   ;;  %v5576_v29 = vld [vmem:[%s7899_s5 + $0x3c4] ss:$16 sps:$4 sm:$0xff]  }
 0x430   :  { %3504 = vmatprep.mubr.bf16.mxu0 %v1868_v7  ;;  %3668 = vmatprep.mubr.bf16.mxu1 %v1868_v7  ;;  %v5582_v7 = vld [vmem:[%s7899_s5 + $0x3e4] ss:$16 sps:$4 sm:$0xff]  }
 0x431   :  { %3474 = vmatprep.subr.bf16.mxu0 %v5498_v9  ;;  %3638 = vmatprep.subr.bf16.mxu1 %v5501_v21  ;;  %v5585_v9 = vld [vmem:[%s7899_s5 + $0x3ec] ss:$16 sps:$4 sm:$0xff]   ;;  %v7208_v21 = vrot.slane %v7036_v39, %v6043_v24 }
 0x433   :  { %3475 = vmatpush1.bf16.msra.mxu0 %v5496_v34  ;;  %3639 = vmatpush1.bf16.msra.mxu1 %v5499_v38  ;;  %v5580_v34 = vld [vmem:[%s7899_s5 + $0x3e0] ss:$16 sps:$4 sm:$0xff]   ;;  %v5583_v38 = vld [vmem:[%s7899_s5 + $0x3e8] ss:$16 sps:$4 sm:$0xff]  }
 0x434   :  { %3476 = vmatprep.subr.bf16.mxu0 %v5504_v36  ;;  %3640 = vmatprep.subr.bf16.mxu1 %v5507_v4  ;;  %v5588_v36 = vld [vmem:[%s7899_s5 + $0x404] ss:$16 sps:$4 sm:$0xff]   ;;  %v5591_v4 = vld [vmem:[%s7899_s5 + $0x40c] ss:$16 sps:$4 sm:$0xff]  }
 0x437   :  { %3477 = vmatpush1.bf16.msra.mxu0 %v5502_v6  ;;  %3641 = vmatpush1.bf16.msra.mxu1 %v5505_v3  ;;  %v1855_v6 = vcombine.high %v7208_v21, %v7208_v21  ;;  %v5586_v3 = vld [vmem:[%s7899_s5 + $0x400] ss:$16 sps:$4 sm:$0xff]  }
 0x438   :  { %3478 = vmatprep.subr.bf16.mxu0 %v5510_v8  ;;  %3642 = vmatprep.subr.bf16.mxu1 %v5513_v22  ;;  %v1867_v8 = vpack.c.bf16 %v7020_v14, %v7020_v14  ;;  %v5589_v22 = vld [vmem:[%s7899_s5 + $0x408] ss:$16 sps:$4 sm:$0xff]   ;;  %v5592_v14 = vld [vmem:[%s7899_s5 + $0x420] ss:$16 sps:$4 sm:$0xff]  }
 0x43b   :  { %3479 = vmatpush1.bf16.msra.mxu0 %v5508_v25  ;;  %3643 = vmatpush1.bf16.msra.mxu1 %v5511_v17  ;;  %v1870_v25 = vpack.c.bf16 %v1855_v6, %v1855_v6  ;;  %v5594_v17 = vld [vmem:[%s7899_s5 + $0x424] ss:$16 sps:$4 sm:$0xff]  }
 0x43c   :  { %3480 = vmatprep.subr.bf16.mxu0 %v5516_v44  ;;  %3644 = vmatprep.subr.bf16.mxu1 %v5519_v35  ;;  %v5597_v44 = vld [vmem:[%s7899_s5 + $0x42c] ss:$16 sps:$4 sm:$0xff]   ;;  %v5595_v35 = vld [vmem:[%s7899_s5 + $0x428] ss:$16 sps:$4 sm:$0xff]   ;;  %v5672_v6 = vld [vmem:[%s7899_s5 + $0x5c4] ss:$16 sps:$4 sm:$0xff]  }
 0x43f   :  { %3481 = vmatpush1.bf16.msra.mxu0 %v5514_v63  ;;  %3645 = vmatpush1.bf16.msra.mxu1 %v5517_v62  ;;  %v5600_v63 = vld [vmem:[%s7899_s5 + $0x444] ss:$16 sps:$4 sm:$0xff]   ;;  %v5603_v62 = vld [vmem:[%s7899_s5 + $0x44c] ss:$16 sps:$4 sm:$0xff]  }
 0x440   :  { %3482 = vmatprep.subr.bf16.mxu0 %v5522_v56  ;;  %3646 = vmatprep.subr.bf16.mxu1 %v5525_v50  ;;  %v5598_v56 = vld [vmem:[%s7899_s5 + $0x440] ss:$16 sps:$4 sm:$0xff]   ;;  %v5601_v50 = vld [vmem:[%s7899_s5 + $0x448] ss:$16 sps:$4 sm:$0xff]  }
 0x443   :  { %3483 = vmatpush1.bf16.msra.mxu0 %v5520_v58  ;;  %3647 = vmatpush1.bf16.msra.mxu1 %v5523_v40  ;;  %v5606_v58 = vld [vmem:[%s7899_s5 + $0x464] ss:$16 sps:$4 sm:$0xff]   ;;  %v5609_v40 = vld [vmem:[%s7899_s5 + $0x46c] ss:$16 sps:$4 sm:$0xff]  }
 0x444   :  { %3484 = vmatprep.subr.bf16.mxu0 %v5528_v61  ;;  %3648 = vmatprep.subr.bf16.mxu1 %v5531_v15  ;;  %v5604_v61 = vld [vmem:[%s7899_s5 + $0x460] ss:$16 sps:$4 sm:$0xff]   ;;  %v5607_v15 = vld [vmem:[%s7899_s5 + $0x468] ss:$16 sps:$4 sm:$0xff]  }
 0x447   :  { %3485 = vmatpush1.bf16.msra.mxu0 %v5526_v57  ;;  %3649 = vmatpush1.bf16.msra.mxu1 %v5529_v5  ;;  %v5612_v57 = vld [vmem:[%s7899_s5 + $0x484] ss:$16 sps:$4 sm:$0xff]   ;;  %v5615_v5 = vld [vmem:[%s7899_s5 + $0x48c] ss:$16 sps:$4 sm:$0xff]  }
 0x448   :  { %3486 = vmatprep.subr.bf16.mxu0 %v5534_v37  ;;  %3650 = vmatprep.subr.bf16.mxu1 %v5537_v23  ;;  %v5610_v37 = vld [vmem:[%s7899_s5 + $0x480] ss:$16 sps:$4 sm:$0xff]   ;;  %v5613_v23 = vld [vmem:[%s7899_s5 + $0x488] ss:$16 sps:$4 sm:$0xff]  }
 0x44b   :  { %3487 = vmatpush1.bf16.msra.mxu0 %v5532_v33  ;;  %3651 = vmatpush1.bf16.msra.mxu1 %v5535_v47  ;;  %v5618_v33 = vld [vmem:[%s7899_s5 + $0x4a4] ss:$16 sps:$4 sm:$0xff]   ;;  %v5621_v47 = vld [vmem:[%s7899_s5 + $0x4ac] ss:$16 sps:$4 sm:$0xff]  }
 0x44c   :  { %3488 = vmatprep.subr.bf16.mxu0 %v5540_v49  ;;  %3652 = vmatprep.subr.bf16.mxu1 %v5543_v13  ;;  %v5616_v49 = vld [vmem:[%s7899_s5 + $0x4a0] ss:$16 sps:$4 sm:$0xff]   ;;  %v5619_v13 = vld [vmem:[%s7899_s5 + $0x4a8] ss:$16 sps:$4 sm:$0xff]  }
 0x44f   :  { %3489 = vmatpush1.bf16.msra.mxu0 %v5538_v28  ;;  %3653 = vmatpush1.bf16.msra.mxu1 %v5541_v10  ;;  %v5624_v28 = vld [vmem:[%s7899_s5 + $0x4c4] ss:$16 sps:$4 sm:$0xff]   ;;  %v5627_v10 = vld [vmem:[%s7899_s5 + $0x4cc] ss:$16 sps:$4 sm:$0xff]  }
 0x450   :  { %3490 = vmatprep.subr.bf16.mxu0 %v5546_v18  ;;  %3654 = vmatprep.subr.bf16.mxu1 %v5549_v27  ;;  %v5622_v18 = vld [vmem:[%s7899_s5 + $0x4c0] ss:$16 sps:$4 sm:$0xff]   ;;  %v5625_v27 = vld [vmem:[%s7899_s5 + $0x4c8] ss:$16 sps:$4 sm:$0xff]  }
 0x453   :  { %3491 = vmatpush1.bf16.msra.mxu0 %v5544_v53  ;;  %3655 = vmatpush1.bf16.msra.mxu1 %v5547_v31  ;;  %v5630_v53 = vld [vmem:[%s7899_s5 + $0x4e4] ss:$16 sps:$4 sm:$0xff]   ;;  %v5633_v31 = vld [vmem:[%s7899_s5 + $0x4ec] ss:$16 sps:$4 sm:$0xff]  }
 0x454   :  { %3492 = vmatprep.subr.bf16.mxu0 %v5552_v52  ;;  %3656 = vmatprep.subr.bf16.mxu1 %v5555_v45  ;;  %v5628_v52 = vld [vmem:[%s7899_s5 + $0x4e0] ss:$16 sps:$4 sm:$0xff]   ;;  %v5631_v45 = vld [vmem:[%s7899_s5 + $0x4e8] ss:$16 sps:$4 sm:$0xff]  }
 0x457   :  { %3493 = vmatpush1.bf16.msra.mxu0 %v5550_v30  ;;  %3657 = vmatpush1.bf16.msra.mxu1 %v5553_v48  ;;  %v5636_v30 = vld [vmem:[%s7899_s5 + $0x504] ss:$16 sps:$4 sm:$0xff]   ;;  %v5639_v48 = vld [vmem:[%s7899_s5 + $0x50c] ss:$16 sps:$4 sm:$0xff]  }
 0x458   :  { %3494 = vmatprep.subr.bf16.mxu0 %v5558_v32  ;;  %3658 = vmatprep.subr.bf16.mxu1 %v5561_v59  ;;  %v5634_v32 = vld [vmem:[%s7899_s5 + $0x500] ss:$16 sps:$4 sm:$0xff]   ;;  %v5637_v59 = vld [vmem:[%s7899_s5 + $0x508] ss:$16 sps:$4 sm:$0xff]  }
 0x45b   :  { %3495 = vmatpush1.bf16.msra.mxu0 %v5556_v11  ;;  %3659 = vmatpush1.bf16.msra.mxu1 %v5559_v1  ;;  %v5642_v11 = vld [vmem:[%s7899_s5 + $0x524] ss:$16 sps:$4 sm:$0xff]   ;;  %v5645_v1 = vld [vmem:[%s7899_s5 + $0x52c] ss:$16 sps:$4 sm:$0xff]  }
 0x45c   :  { %3496 = vmatprep.subr.bf16.mxu0 %v5564_v12  ;;  %3660 = vmatprep.subr.bf16.mxu1 %v5567_v60  ;;  %v5640_v12 = vld [vmem:[%s7899_s5 + $0x520] ss:$16 sps:$4 sm:$0xff]   ;;  %v5643_v60 = vld [vmem:[%s7899_s5 + $0x528] ss:$16 sps:$4 sm:$0xff]  }
 0x45f   :  { %3497 = vmatpush1.bf16.msra.mxu0 %v5562_v26  ;;  %3661 = vmatpush1.bf16.msra.mxu1 %v5565_v19  ;;  %v5648_v26 = vld [vmem:[%s7899_s5 + $0x544] ss:$16 sps:$4 sm:$0xff]   ;;  %v5651_v19 = vld [vmem:[%s7899_s5 + $0x54c] ss:$16 sps:$4 sm:$0xff]  }
 0x460   :  { %3498 = vmatprep.subr.bf16.mxu0 %v5570_v41  ;;  %3662 = vmatprep.subr.bf16.mxu1 %v5573_v54  ;;  %v5646_v41 = vld [vmem:[%s7899_s5 + $0x540] ss:$16 sps:$4 sm:$0xff]   ;;  %v5649_v54 = vld [vmem:[%s7899_s5 + $0x548] ss:$16 sps:$4 sm:$0xff]  }
 0x463   :  { %3499 = vmatpush1.bf16.msra.mxu0 %v5568_v46  ;;  %3663 = vmatpush1.bf16.msra.mxu1 %v5571_v16  ;;  %v5654_v46 = vld [vmem:[%s7899_s5 + $0x564] ss:$16 sps:$4 sm:$0xff]   ;;  %v5657_v16 = vld [vmem:[%s7899_s5 + $0x56c] ss:$16 sps:$4 sm:$0xff]  }
 0x464   :  { %3500 = vmatprep.subr.bf16.mxu0 %v5576_v29  ;;  %3664 = vmatprep.subr.bf16.mxu1 %v5579_v0  ;;  %v5652_v29 = vld [vmem:[%s7899_s5 + $0x560] ss:$16 sps:$4 sm:$0xff]   ;;  %v5655_v0 = vld [vmem:[%s7899_s5 + $0x568] ss:$16 sps:$4 sm:$0xff]  }
 0x467   :  { %3501 = vmatpush1.bf16.msra.mxu0 %v5574_v51  ;;  %3665 = vmatpush1.bf16.msra.mxu1 %v5577_v55  ;;  %v5660_v51 = vld [vmem:[%s7899_s5 + $0x584] ss:$16 sps:$4 sm:$0xff]   ;;  %v5663_v55 = vld [vmem:[%s7899_s5 + $0x58c] ss:$16 sps:$4 sm:$0xff]  }
 0x468   :  { %3502 = vmatprep.subr.bf16.mxu0 %v5582_v7  ;;  %3666 = vmatprep.subr.bf16.mxu1 %v5585_v9  ;;  %v5658_v7 = vld [vmem:[%s7899_s5 + $0x580] ss:$16 sps:$4 sm:$0xff]   ;;  %v5661_v9 = vld [vmem:[%s7899_s5 + $0x588] ss:$16 sps:$4 sm:$0xff]  }
 0x46b   :  { %3503 = vmatpush1.bf16.msra.mxu0 %v5580_v34  ;;  %3667 = vmatpush1.bf16.msra.mxu1 %v5583_v38  ;;  %v5666_v34 = vld [vmem:[%s7899_s5 + $0x5a4] ss:$16 sps:$4 sm:$0xff]   ;;  %v5669_v38 = vld [vmem:[%s7899_s5 + $0x5ac] ss:$16 sps:$4 sm:$0xff]  }
 0x46c   :  { %3513 = vmatprep.subr.bf16.mxu0 %v5588_v36  ;;  %3677 = vmatprep.subr.bf16.mxu1 %v5591_v4  ;;  %v5664_v36 = vld [vmem:[%s7899_s5 + $0x5a0] ss:$16 sps:$4 sm:$0xff]   ;;  %v5667_v4 = vld [vmem:[%s7899_s5 + $0x5a8] ss:$16 sps:$4 sm:$0xff]  }
 0x46e   :  { %3505 = vmatmul.mubr.bf16.vlgmr.msra.gmra.mrb[8].mxu0 %v1867_v8  ;;  %3669 = vmatmul.mubr.bf16.vlgmr.msra.gmra.mrb[28].mxu1 %v1867_v8  ;;  %v1840_v8 = vcombine.high %v7036_v39, %v7036_v39  ;;  %v5681_v39 = vld [vmem:[%s7899_s5 + $0x5ec] ss:$16 sps:$4 sm:$0xff]  }
 0x46f   :  { %3514 = vmatpush1.bf16.msra.mxu0 %v5586_v3  ;;  %3545 = vmatprep.mubr.bf16.mxu0 %v1870_v25  ;;  %v5675_v3 = vld [vmem:[%s7899_s5 + $0x5cc] ss:$16 sps:$4 sm:$0xff]  }
 0x470   :  { %3678 = vmatpush1.bf16.msra.mxu1 %v5589_v22  ;;  %3709 = vmatprep.mubr.bf16.mxu1 %v1870_v25  ;;  %v5670_v22 = vld [vmem:[%s7899_s5 + $0x5c0] ss:$16 sps:$4 sm:$0xff]   ;;  %v5673_v25 = vld [vmem:[%s7899_s5 + $0x5c8] ss:$16 sps:$4 sm:$0xff]  }
 0x471   :  { %3515 = vmatprep.subr.bf16.mxu0 %v5594_v17  ;;  %3679 = vmatprep.subr.bf16.mxu1 %v5597_v44  ;;  %v5678_v17 = vld [vmem:[%s7899_s5 + $0x5e4] ss:$16 sps:$4 sm:$0xff]   ;;  %v7409_v44 = vrot.slane %v1840_v8, %v6043_v24  ;;  %v5687_v24 = vld [vmem:[%s7899_s5 + $0x60c] ss:$16 sps:$4 sm:$0xff]  }
 0x472   :  { %v5759_v8 = vld [vmem:[%s7899_s5 + $0x78c] ss:$16 sps:$4 sm:$0xff]  }
 0x473   :  { %3516 = vmatpush1.bf16.msra.mxu0 %v5592_v14  ;;  %v5676_v14 = vld [vmem:[%s7899_s5 + $0x5e0] ss:$16 sps:$4 sm:$0xff]  }
 0x474   :  { %3680 = vmatpush1.bf16.msra.mxu1 %v5595_v35  ;;  %3517 = vmatprep.subr.bf16.mxu0 %v5600_v63  ;;  %v5679_v35 = vld [vmem:[%s7899_s5 + $0x5e8] ss:$16 sps:$4 sm:$0xff]   ;;  %v5684_v63 = vld [vmem:[%s7899_s5 + $0x604] ss:$16 sps:$4 sm:$0xff]  }
 0x475   :  { %3681 = vmatprep.subr.bf16.mxu1 %v5603_v62  ;;  %v1856_v62 = vcombine.high %v7409_v44, %v7409_v44 }
 0x477   :  { %3518 = vmatpush1.bf16.msra.mxu0 %v5598_v56  ;;  %v5682_v56 = vld [vmem:[%s7899_s5 + $0x600] ss:$16 sps:$4 sm:$0xff]  }
 0x478   :  { %3682 = vmatpush1.bf16.msra.mxu1 %v5601_v50  ;;  %3519 = vmatprep.subr.bf16.mxu0 %v5606_v58  ;;  %v1869_v50 = vpack.c.bf16 %v7208_v21, %v7208_v21  ;;  %v5685_v58 = vld [vmem:[%s7899_s5 + $0x608] ss:$16 sps:$4 sm:$0xff]   ;;  %v5688_v21 = vld [vmem:[%s7899_s5 + $0x620] ss:$16 sps:$4 sm:$0xff]  }
 0x479   :  { %3683 = vmatprep.subr.bf16.mxu1 %v5609_v40  ;;  %v5690_v40 = vld [vmem:[%s7899_s5 + $0x624] ss:$16 sps:$4 sm:$0xff]  }
 0x47b   :  { %3520 = vmatpush1.bf16.msra.mxu0 %v5604_v61  ;;  %v1872_v61 = vpack.c.bf16 %v1856_v62, %v1856_v62  ;;  %v5766_v62 = vld [vmem:[%s7899_s5 + $0x7c0] ss:$16 sps:$4 sm:$0xff]  }
 0x47c   :  { %3684 = vmatpush1.bf16.msra.mxu1 %v5607_v15  ;;  %3521 = vmatprep.subr.bf16.mxu0 %v5612_v57  ;;  %v5693_v15 = vld [vmem:[%s7899_s5 + $0x62c] ss:$16 sps:$4 sm:$0xff]   ;;  %v5691_v57 = vld [vmem:[%s7899_s5 + $0x628] ss:$16 sps:$4 sm:$0xff]  }
 0x47d   :  { %3685 = vmatprep.subr.bf16.mxu1 %v5615_v5  ;;  %v5696_v5 = vld [vmem:[%s7899_s5 + $0x644] ss:$16 sps:$4 sm:$0xff]  }
 0x47f   :  { %3522 = vmatpush1.bf16.msra.mxu0 %v5610_v37  ;;  %v5699_v37 = vld [vmem:[%s7899_s5 + $0x64c] ss:$16 sps:$4 sm:$0xff]  }
 0x480   :  { %3686 = vmatpush1.bf16.msra.mxu1 %v5613_v23  ;;  %3523 = vmatprep.subr.bf16.mxu0 %v5618_v33  ;;  %v5694_v23 = vld [vmem:[%s7899_s5 + $0x640] ss:$16 sps:$4 sm:$0xff]   ;;  %v5697_v33 = vld [vmem:[%s7899_s5 + $0x648] ss:$16 sps:$4 sm:$0xff]  }
 0x481   :  { %3687 = vmatprep.subr.bf16.mxu1 %v5621_v47  ;;  %v5702_v47 = vld [vmem:[%s7899_s5 + $0x664] ss:$16 sps:$4 sm:$0xff]  }
 0x483   :  { %3524 = vmatpush1.bf16.msra.mxu0 %v5616_v49  ;;  %v5705_v49 = vld [vmem:[%s7899_s5 + $0x66c] ss:$16 sps:$4 sm:$0xff]  }
 0x484   :  { %3688 = vmatpush1.bf16.msra.mxu1 %v5619_v13  ;;  %3525 = vmatprep.subr.bf16.mxu0 %v5624_v28  ;;  %v5700_v13 = vld [vmem:[%s7899_s5 + $0x660] ss:$16 sps:$4 sm:$0xff]   ;;  %v5703_v28 = vld [vmem:[%s7899_s5 + $0x668] ss:$16 sps:$4 sm:$0xff]  }
 0x485   :  { %3689 = vmatprep.subr.bf16.mxu1 %v5627_v10  ;;  %v5708_v10 = vld [vmem:[%s7899_s5 + $0x684] ss:$16 sps:$4 sm:$0xff]  }
 0x487   :  { %3526 = vmatpush1.bf16.msra.mxu0 %v5622_v18  ;;  %v5711_v18 = vld [vmem:[%s7899_s5 + $0x68c] ss:$16 sps:$4 sm:$0xff]  }
 0x488   :  { %3690 = vmatpush1.bf16.msra.mxu1 %v5625_v27  ;;  %3527 = vmatprep.subr.bf16.mxu0 %v5630_v53  ;;  %v5706_v27 = vld [vmem:[%s7899_s5 + $0x680] ss:$16 sps:$4 sm:$0xff]   ;;  %v5709_v53 = vld [vmem:[%s7899_s5 + $0x688] ss:$16 sps:$4 sm:$0xff]  }
 0x489   :  { %3691 = vmatprep.subr.bf16.mxu1 %v5633_v31  ;;  %v5714_v31 = vld [vmem:[%s7899_s5 + $0x6a4] ss:$16 sps:$4 sm:$0xff]  }
 0x48b   :  { %3528 = vmatpush1.bf16.msra.mxu0 %v5628_v52  ;;  %v5717_v52 = vld [vmem:[%s7899_s5 + $0x6ac] ss:$16 sps:$4 sm:$0xff]  }
 0x48c   :  { %3692 = vmatpush1.bf16.msra.mxu1 %v5631_v45  ;;  %3529 = vmatprep.subr.bf16.mxu0 %v5636_v30  ;;  %v5712_v45 = vld [vmem:[%s7899_s5 + $0x6a0] ss:$16 sps:$4 sm:$0xff]   ;;  %v5715_v30 = vld [vmem:[%s7899_s5 + $0x6a8] ss:$16 sps:$4 sm:$0xff]  }
 0x48d   :  { %3693 = vmatprep.subr.bf16.mxu1 %v5639_v48  ;;  %v5720_v48 = vld [vmem:[%s7899_s5 + $0x6c4] ss:$16 sps:$4 sm:$0xff]  }
 0x48f   :  { %3530 = vmatpush1.bf16.msra.mxu0 %v5634_v32  ;;  %v5723_v32 = vld [vmem:[%s7899_s5 + $0x6cc] ss:$16 sps:$4 sm:$0xff]  }
 0x490   :  { %3694 = vmatpush1.bf16.msra.mxu1 %v5637_v59  ;;  %3531 = vmatprep.subr.bf16.mxu0 %v5642_v11  ;;  %v5718_v59 = vld [vmem:[%s7899_s5 + $0x6c0] ss:$16 sps:$4 sm:$0xff]   ;;  %v5721_v11 = vld [vmem:[%s7899_s5 + $0x6c8] ss:$16 sps:$4 sm:$0xff]  }
 0x491   :  { %3695 = vmatprep.subr.bf16.mxu1 %v5645_v1  ;;  %v5726_v1 = vld [vmem:[%s7899_s5 + $0x6e4] ss:$16 sps:$4 sm:$0xff]  }
 0x493   :  { %3532 = vmatpush1.bf16.msra.mxu0 %v5640_v12  ;;  %v5729_v12 = vld [vmem:[%s7899_s5 + $0x6ec] ss:$16 sps:$4 sm:$0xff]  }
 0x494   :  { %3696 = vmatpush1.bf16.msra.mxu1 %v5643_v60  ;;  %3533 = vmatprep.subr.bf16.mxu0 %v5648_v26  ;;  %v5724_v60 = vld [vmem:[%s7899_s5 + $0x6e0] ss:$16 sps:$4 sm:$0xff]   ;;  %v5727_v26 = vld [vmem:[%s7899_s5 + $0x6e8] ss:$16 sps:$4 sm:$0xff]  }
 0x495   :  { %3697 = vmatprep.subr.bf16.mxu1 %v5651_v19  ;;  %v5732_v19 = vld [vmem:[%s7899_s5 + $0x704] ss:$16 sps:$4 sm:$0xff]  }
 0x497   :  { %3534 = vmatpush1.bf16.msra.mxu0 %v5646_v41  ;;  %v5735_v41 = vld [vmem:[%s7899_s5 + $0x70c] ss:$16 sps:$4 sm:$0xff]  }
 0x498   :  { %3698 = vmatpush1.bf16.msra.mxu1 %v5649_v54  ;;  %3535 = vmatprep.subr.bf16.mxu0 %v5654_v46  ;;  %v5730_v54 = vld [vmem:[%s7899_s5 + $0x700] ss:$16 sps:$4 sm:$0xff]   ;;  %v5733_v46 = vld [vmem:[%s7899_s5 + $0x708] ss:$16 sps:$4 sm:$0xff]  }
 0x499   :  { %3699 = vmatprep.subr.bf16.mxu1 %v5657_v16  ;;  %v5738_v16 = vld [vmem:[%s7899_s5 + $0x724] ss:$16 sps:$4 sm:$0xff]  }
 0x49b   :  { %3536 = vmatpush1.bf16.msra.mxu0 %v5652_v29  ;;  %v5741_v29 = vld [vmem:[%s7899_s5 + $0x72c] ss:$16 sps:$4 sm:$0xff]  }
 0x49c   :  { %3700 = vmatpush1.bf16.msra.mxu1 %v5655_v0  ;;  %3537 = vmatprep.subr.bf16.mxu0 %v5660_v51  ;;  %v5736_v0 = vld [vmem:[%s7899_s5 + $0x720] ss:$16 sps:$4 sm:$0xff]   ;;  %v5739_v51 = vld [vmem:[%s7899_s5 + $0x728] ss:$16 sps:$4 sm:$0xff]  }
 0x49d   :  { %3701 = vmatprep.subr.bf16.mxu1 %v5663_v55  ;;  %v5744_v55 = vld [vmem:[%s7899_s5 + $0x744] ss:$16 sps:$4 sm:$0xff]  }
 0x49f   :  { %3538 = vmatpush1.bf16.msra.mxu0 %v5658_v7  ;;  %v5747_v7 = vld [vmem:[%s7899_s5 + $0x74c] ss:$16 sps:$4 sm:$0xff]  }
 0x4a0   :  { %3702 = vmatpush1.bf16.msra.mxu1 %v5661_v9  ;;  %3539 = vmatprep.subr.bf16.mxu0 %v5666_v34  ;;  %v5742_v9 = vld [vmem:[%s7899_s5 + $0x740] ss:$16 sps:$4 sm:$0xff]   ;;  %v5745_v34 = vld [vmem:[%s7899_s5 + $0x748] ss:$16 sps:$4 sm:$0xff]  }
 0x4a1   :  { %3703 = vmatprep.subr.bf16.mxu1 %v5669_v38  ;;  %v5750_v38 = vld [vmem:[%s7899_s5 + $0x764] ss:$16 sps:$4 sm:$0xff]  }
 0x4a3   :  { %3540 = vmatpush1.bf16.msra.mxu0 %v5664_v36  ;;  %v5753_v36 = vld [vmem:[%s7899_s5 + $0x76c] ss:$16 sps:$4 sm:$0xff]  }
 0x4a4   :  { %3704 = vmatpush1.bf16.msra.mxu1 %v5667_v4  ;;  %3541 = vmatprep.subr.bf16.mxu0 %v5672_v6  ;;  %v5748_v4 = vld [vmem:[%s7899_s5 + $0x760] ss:$16 sps:$4 sm:$0xff]   ;;  %v5751_v6 = vld [vmem:[%s7899_s5 + $0x768] ss:$16 sps:$4 sm:$0xff]  }
 0x4a5   :  { %3705 = vmatprep.subr.bf16.mxu1 %v5675_v3  ;;  %v5756_v3 = vld [vmem:[%s7899_s5 + $0x784] ss:$16 sps:$4 sm:$0xff]  }
 0x4a7   :  { %3542 = vmatpush1.bf16.msra.mxu0 %v5670_v22  ;;  %v5754_v22 = vld [vmem:[%s7899_s5 + $0x780] ss:$16 sps:$4 sm:$0xff]  }
 0x4a8   :  { %3706 = vmatpush1.bf16.msra.mxu1 %v5673_v25  ;;  %3543 = vmatprep.subr.bf16.mxu0 %v5678_v17  ;;  %v5757_v25 = vld [vmem:[%s7899_s5 + $0x788] ss:$16 sps:$4 sm:$0xff]   ;;  %v5762_v17 = vld [vmem:[%s7899_s5 + $0x7a4] ss:$16 sps:$4 sm:$0xff]  }
 0x4a9   :  { %3707 = vmatprep.subr.bf16.mxu1 %v5681_v39  ;;  %v5765_v39 = vld [vmem:[%s7899_s5 + $0x7ac] ss:$16 sps:$4 sm:$0xff]  }
 0x4ab   :  { %3544 = vmatpush1.bf16.msra.mxu0 %v5676_v14  ;;  %v5760_v14 = vld [vmem:[%s7899_s5 + $0x7a0] ss:$16 sps:$4 sm:$0xff]  }
 0x4ac   :  { %3708 = vmatpush1.bf16.msra.mxu1 %v5679_v35  ;;  %3554 = vmatprep.subr.bf16.mxu0 %v5684_v63  ;;  %v5763_v35 = vld [vmem:[%s7899_s5 + $0x7a8] ss:$16 sps:$4 sm:$0xff]   ;;  %v5768_v63 = vld [vmem:[%s7899_s5 + $0x7c4] ss:$16 sps:$4 sm:$0xff]  }
 0x4ad   :  { %3718 = vmatprep.subr.bf16.mxu1 %v5687_v24  ;;  %v5771_v24 = vld [vmem:[%s7899_s5 + $0x7cc] ss:$16 sps:$4 sm:$0xff]  }
 0x4ae   :  { %3546 = vmatmul.mubr.bf16.vlgmr.msra.gmra.mrb[8].mxu0 %v1869_v50 }
 0x4af   :  { %3710 = vmatmul.mubr.bf16.vlgmr.msra.gmra.mrb[28].mxu1 %v1869_v50  ;;  %3555 = vmatpush1.bf16.msra.mxu0 %v5682_v56  ;;  %v5769_v56 = vld [vmem:[%s7899_s5 + $0x7c8] ss:$16 sps:$4 sm:$0xff]   ;;  %v5774_v50 = vld [vmem:[%s7899_s5 + $0x7e4] ss:$16 sps:$4 sm:$0xff]  }
 0x4b0   :  { %3586 = vmatprep.mubr.bf16.mxu0 %v1872_v61  ;;  %3719 = vmatpush1.bf16.msra.mxu1 %v5685_v58  ;;  %v5777_v58 = vld [vmem:[%s7899_s5 + $0x7ec] ss:$16 sps:$4 sm:$0xff]  }
 0x4b1   :  { %3750 = vmatprep.mubr.bf16.mxu1 %v1872_v61  ;;  %3556 = vmatprep.subr.bf16.mxu0 %v5690_v40  ;;  %v5772_v40 = vld [vmem:[%s7899_s5 + $0x7e0] ss:$16 sps:$4 sm:$0xff]   ;;  %v5775_v61 = vld [vmem:[%s7899_s5 + $0x7e8] ss:$16 sps:$4 sm:$0xff]  }
 0x4b2   :  { %3720 = vmatprep.subr.bf16.mxu1 %v5693_v15  ;;  %v5780_v15 = vld [vmem:[%s7901_s7 + $0x4] ss:$8 sps:$4 sm:$0xff]  }
 0x4b3   :  { %3557 = vmatpush1.bf16.msra.mxu0 %v5688_v21  ;;  %v5778_v21 = vld [vmem:[%s7901_s7] ss:$8 sps:$4 sm:$0xff]  }
 0x4b4   :  { %3721 = vmatpush1.bf16.msra.mxu1 %v5691_v57  ;;  %3558 = vmatprep.subr.bf16.mxu0 %v5696_v5  ;;  %v1871_v57 = vpack.c.bf16 %v7409_v44, %v7409_v44  ;;  %v5783_v5 = vld [vmem:[%s7901_s7 + $0x14] ss:$8 sps:$4 sm:$0xff]   ;;  %v5784_v44 = vld [vmem:[%s7901_s7 + $0x20] ss:$8 sps:$4 sm:$0xff]  }
 0x4b5   :  { %3722 = vmatprep.subr.bf16.mxu1 %v5699_v37  ;;  %v5781_v37 = vld [vmem:[%s7901_s7 + $0x10] ss:$8 sps:$4 sm:$0xff]  }
 0x4b7   :  { %3559 = vmatpush1.bf16.msra.mxu0 %v5694_v23  ;;  %v5786_v23 = vld [vmem:[%s7901_s7 + $0x24] ss:$8 sps:$4 sm:$0xff]  }
 0x4b8   :  { %3723 = vmatpush1.bf16.msra.mxu1 %v5697_v33  ;;  %3560 = vmatprep.subr.bf16.mxu0 %v5702_v47  ;;  %v5789_v33 = vld [vmem:[%s7901_s7 + $0x34] ss:$8 sps:$4 sm:$0xff]   ;;  %v5787_v47 = vld [vmem:[%s7901_s7 + $0x30] ss:$8 sps:$4 sm:$0xff]  }
 0x4b9   :  { %3724 = vmatprep.subr.bf16.mxu1 %v5705_v49  ;;  %v5792_v49 = vld [vmem:[%s7901_s7 + $0x44] ss:$8 sps:$4 sm:$0xff]  }
 0x4bb   :  { %3561 = vmatpush1.bf16.msra.mxu0 %v5700_v13  ;;  %v5790_v13 = vld [vmem:[%s7901_s7 + $0x40] ss:$8 sps:$4 sm:$0xff]  }
 0x4bc   :  { %3725 = vmatpush1.bf16.msra.mxu1 %v5703_v28  ;;  %3562 = vmatprep.subr.bf16.mxu0 %v5708_v10  ;;  %v5795_v28 = vld [vmem:[%s7901_s7 + $0x54] ss:$8 sps:$4 sm:$0xff]   ;;  %v5793_v10 = vld [vmem:[%s7901_s7 + $0x50] ss:$8 sps:$4 sm:$0xff]  }
 0x4bd   :  { %3726 = vmatprep.subr.bf16.mxu1 %v5711_v18  ;;  %v5798_v18 = vld [vmem:[%s7901_s7 + $0x64] ss:$8 sps:$4 sm:$0xff]  }
 0x4bf   :  { %3563 = vmatpush1.bf16.msra.mxu0 %v5706_v27  ;;  %v5796_v27 = vld [vmem:[%s7901_s7 + $0x60] ss:$8 sps:$4 sm:$0xff]  }
 0x4c0   :  { %3727 = vmatpush1.bf16.msra.mxu1 %v5709_v53  ;;  %3564 = vmatprep.subr.bf16.mxu0 %v5714_v31  ;;  %v5801_v53 = vld [vmem:[%s7901_s7 + $0x74] ss:$8 sps:$4 sm:$0xff]   ;;  %v5799_v31 = vld [vmem:[%s7901_s7 + $0x70] ss:$8 sps:$4 sm:$0xff]  }
 0x4c1   :  { %3728 = vmatprep.subr.bf16.mxu1 %v5717_v52  ;;  %v5804_v52 = vld [vmem:[%s7901_s7 + $0x84] ss:$8 sps:$4 sm:$0xff]  }
 0x4c3   :  { %3565 = vmatpush1.bf16.msra.mxu0 %v5712_v45  ;;  %v5802_v45 = vld [vmem:[%s7901_s7 + $0x80] ss:$8 sps:$4 sm:$0xff]  }
 0x4c4   :  { %3729 = vmatpush1.bf16.msra.mxu1 %v5715_v30  ;;  %3566 = vmatprep.subr.bf16.mxu0 %v5720_v48  ;;  %v5807_v30 = vld [vmem:[%s7901_s7 + $0x94] ss:$8 sps:$4 sm:$0xff]   ;;  %v5805_v48 = vld [vmem:[%s7901_s7 + $0x90] ss:$8 sps:$4 sm:$0xff]  }
 0x4c5   :  { %3730 = vmatprep.subr.bf16.mxu1 %v5723_v32  ;;  %v5810_v32 = vld [vmem:[%s7901_s7 + $0xa4] ss:$8 sps:$4 sm:$0xff]  }
 0x4c7   :  { %3567 = vmatpush1.bf16.msra.mxu0 %v5718_v59  ;;  %v5808_v59 = vld [vmem:[%s7901_s7 + $0xa0] ss:$8 sps:$4 sm:$0xff]  }
 0x4c8   :  { %3731 = vmatpush1.bf16.msra.mxu1 %v5721_v11  ;;  %3568 = vmatprep.subr.bf16.mxu0 %v5726_v1  ;;  %v5813_v11 = vld [vmem:[%s7901_s7 + $0xb4] ss:$8 sps:$4 sm:$0xff]   ;;  %v5811_v1 = vld [vmem:[%s7901_s7 + $0xb0] ss:$8 sps:$4 sm:$0xff]  }
 0x4c9   :  { %3732 = vmatprep.subr.bf16.mxu1 %v5729_v12  ;;  %v5816_v12 = vld [vmem:[%s7901_s7 + $0xc4] ss:$8 sps:$4 sm:$0xff]  }
 0x4cb   :  { %3569 = vmatpush1.bf16.msra.mxu0 %v5724_v60  ;;  %v5814_v60 = vld [vmem:[%s7901_s7 + $0xc0] ss:$8 sps:$4 sm:$0xff]  }
 0x4cc   :  { %3733 = vmatpush1.bf16.msra.mxu1 %v5727_v26  ;;  %3570 = vmatprep.subr.bf16.mxu0 %v5732_v19  ;;  %v5819_v26 = vld [vmem:[%s7901_s7 + $0xd4] ss:$8 sps:$4 sm:$0xff]   ;;  %v5817_v19 = vld [vmem:[%s7901_s7 + $0xd0] ss:$8 sps:$4 sm:$0xff]  }
 0x4cd   :  { %3734 = vmatprep.subr.bf16.mxu1 %v5735_v41  ;;  %v5822_v41 = vld [vmem:[%s7901_s7 + $0xe4] ss:$8 sps:$4 sm:$0xff]  }
 0x4cf   :  { %3571 = vmatpush1.bf16.msra.mxu0 %v5730_v54  ;;  %v5820_v54 = vld [vmem:[%s7901_s7 + $0xe0] ss:$8 sps:$4 sm:$0xff]  }
 0x4d0   :  { %3735 = vmatpush1.bf16.msra.mxu1 %v5733_v46  ;;  %3572 = vmatprep.subr.bf16.mxu0 %v5738_v16  ;;  %v5825_v46 = vld [vmem:[%s7901_s7 + $0xf4] ss:$8 sps:$4 sm:$0xff]   ;;  %v5823_v16 = vld [vmem:[%s7901_s7 + $0xf0] ss:$8 sps:$4 sm:$0xff]  }
 0x4d1   :  { %3736 = vmatprep.subr.bf16.mxu1 %v5741_v29  ;;  %v5828_v29 = vld [vmem:[%s7901_s7 + $0x104] ss:$8 sps:$4 sm:$0xff]  }
 0x4d3   :  { %3573 = vmatpush1.bf16.msra.mxu0 %v5736_v0  ;;  %v5874_v0 = vld [vmem:[%s7903_s9 + $0x40] sm:$0xff]  }
 0x4d4   :  { %3737 = vmatpush1.bf16.msra.mxu1 %v5739_v51  ;;  %3574 = vmatprep.subr.bf16.mxu0 %v5744_v55  ;;  %v5875_v51 = vld [vmem:[%s7903_s9] sm:$0xff]   ;;  %v5876_v55 = vld [vmem:[%s7903_s9 + $0x48] sm:$0xff]  }
 0x4d5   :  { %3738 = vmatprep.subr.bf16.mxu1 %v5747_v7  ;;  %v5877_v7 = vld [vmem:[%s7903_s9 + $0x8] sm:$0xff]  }
 0x4d7   :  { %3575 = vmatpush1.bf16.msra.mxu0 %v5742_v9  ;;  %v5878_v9 = vld [vmem:[%s7903_s9 + $0x50] sm:$0xff]  }
 0x4d8   :  { %3739 = vmatpush1.bf16.msra.mxu1 %v5745_v34  ;;  %3576 = vmatprep.subr.bf16.mxu0 %v5750_v38  ;;  %v5879_v34 = vld [vmem:[%s7903_s9 + $0x10] sm:$0xff]   ;;  %v5880_v38 = vld [vmem:[%s7903_s9 + $0x58] sm:$0xff]  }
 0x4d9   :  { %3740 = vmatprep.subr.bf16.mxu1 %v5753_v36  ;;  %v5881_v36 = vld [vmem:[%s7903_s9 + $0x18] sm:$0xff]  }
 0x4db   :  { %3577 = vmatpush1.bf16.msra.mxu0 %v5748_v4  ;;  %v5882_v4 = vld [vmem:[%s7903_s9 + $0x60] sm:$0xff]  }
 0x4dc   :  { %3741 = vmatpush1.bf16.msra.mxu1 %v5751_v6  ;;  %3578 = vmatprep.subr.bf16.mxu0 %v5756_v3  ;;  %v5883_v6 = vld [vmem:[%s7903_s9 + $0x20] sm:$0xff]   ;;  %v5884_v3 = vld [vmem:[%s7903_s9 + $0x68] sm:$0xff]  }
 0x4dd   :  { %3742 = vmatprep.subr.bf16.mxu1 %v5759_v8  ;;  %v5885_v8 = vld [vmem:[%s7903_s9 + $0x28] sm:$0xff]  }
 0x4df   :  { %3579 = vmatpush1.bf16.msra.mxu0 %v5754_v22  ;;  %v7753_v22 = vld [vmem:[%s7900_s6] sm:$0xf] }
 0x4e0   :  { %3743 = vmatpush1.bf16.msra.mxu1 %v5757_v25  ;;  %3580 = vmatprep.subr.bf16.mxu0 %v5762_v17  ;;  %v2134_v25 = vrot.slane %v7753_v22, %v6685_v2  ;;  %v2138_v17 = vrot.slane %v7753_v22, %v6970_v43 }
 0x4e1   :  { %3744 = vmatprep.subr.bf16.mxu1 %v5765_v39  ;;  %v2146_v39 = vrot.slane %v7753_v22, %v6976_v42  ;;  %v5826_v42 = vld [vmem:[%s7901_s7 + $0x100] ss:$8 sps:$4 sm:$0xff]  }
 0x4e3   :  { %3581 = vmatpush1.bf16.msra.mxu0 %v5760_v14 }
 0x4e4   :  { %3745 = vmatpush1.bf16.msra.mxu1 %v5763_v35  ;;  %3582 = vmatprep.subr.bf16.mxu0 %v5768_v63 }
 0x4e5   :  { %3746 = vmatprep.subr.bf16.mxu1 %v5771_v24 }
 0x4e7   :  { %3583 = vmatpush1.bf16.msra.mxu0 %v5766_v62 }
 0x4e8   :  { %3747 = vmatpush1.bf16.msra.mxu1 %v5769_v56  ;;  %3584 = vmatprep.subr.bf16.mxu0 %v5774_v50 }
 0x4e9   :  { %3748 = vmatprep.subr.bf16.mxu1 %v5777_v58 }
 0x4eb   :  { %3585 = vmatpush1.bf16.msra.mxu0 %v5772_v40 }
 0x4ec   :  { %3749 = vmatpush1.bf16.msra.mxu1 %v5775_v61  ;;  %4163 = vmatprep.subr.bf16.mxu0 %v5780_v15 }
 0x4ed   :  { %5077 = vmatprep.subr.bf16.mxu1 %v5874_v0  ;;  %v5870_v0 = vld [vmem:[%s7901_s7 + $0x1e4] ss:$8 sps:$4 sm:$0xff]  }
 0x4ee   :  { %3587 = vmatmul.mubr.bf16.vlgmr.msra.gmra.mrb[8].mxu0 %v1871_v57 }
 0x4ef   :  { %3751 = vmatmul.mubr.bf16.vlgmr.msra.gmra.mrb[28].mxu1 %v1871_v57  ;;  %4164 = vmatpush1.bf16.msra.mxu0 %v5778_v21 }
 0x4f0   :  { %4165 = vmatprep.subr.bf16.mxu0 %v5783_v5  ;;  %5078 = vmatpush3.bf16.msra.mxu1 %v5875_v51  ;;  %v5868_v51 = vld [vmem:[%s7901_s7 + $0x1e0] ss:$8 sps:$4 sm:$0xff]  }
 0x4f1   :  { %5079 = vmatprep.subr.bf16.mxu1 %v5876_v55 }
 0x4f3   :  { %4166 = vmatpush1.bf16.msra.mxu0 %v5781_v37 }
 0x4f4   :  { %4167 = vmatprep.subr.bf16.mxu0 %v5786_v23  ;;  %5080 = vmatpush3.bf16.msra.mxu1 %v5877_v7  ;;  %v5873_v7 = vld [vmem:[%s7901_s7 + $0x1f4] ss:$8 sps:$4 sm:$0xff]  }
 0x4f5   :  { %5081 = vmatprep.subr.bf16.mxu1 %v5878_v9 }
 0x4f7   :  { %4168 = vmatpush1.bf16.msra.mxu0 %v5784_v44  ;;  %v5831_v44 = vld [vmem:[%s7901_s7 + $0x114] ss:$8 sps:$4 sm:$0xff]  }
 0x4f8   :  { %4169 = vmatprep.subr.bf16.mxu0 %v5789_v33  ;;  %5082 = vmatpush3.bf16.msra.mxu1 %v5879_v34 }
 0x4f9   :  { %5083 = vmatprep.subr.bf16.mxu1 %v5880_v38  ;;  %v5886_v38 = vld [vmem:[%s7903_s9 + $0x70] sm:$0xff]  }
 0x4fb   :  { %4170 = vmatpush1.bf16.msra.mxu0 %v5787_v47  ;;  %v5829_v47 = vld [vmem:[%s7901_s7 + $0x110] ss:$8 sps:$4 sm:$0xff]  }
 0x4fc   :  { %4171 = vmatprep.subr.bf16.mxu0 %v5792_v49  ;;  %5084 = vmatpush3.bf16.msra.mxu1 %v5881_v36  ;;  %v5834_v49 = vld [vmem:[%s7901_s7 + $0x124] ss:$8 sps:$4 sm:$0xff]   ;;  %v5887_v36 = vld [vmem:[%s7903_s9 + $0x30] sm:$0xff]  }
 0x4fd   :  { %5085 = vmatprep.subr.bf16.mxu1 %v5882_v4  ;;  %v5888_v4 = vld [vmem:[%s7903_s9 + $0x78] sm:$0xff]  }
 0x4ff   :  { %4172 = vmatpush1.bf16.msra.mxu0 %v5790_v13  ;;  %v5832_v13 = vld [vmem:[%s7901_s7 + $0x120] ss:$8 sps:$4 sm:$0xff]  }
 0x500   :  { %4173 = vmatprep.subr.bf16.mxu0 %v5795_v28  ;;  %5086 = vmatpush3.bf16.msra.mxu1 %v5883_v6  ;;  %v5837_v28 = vld [vmem:[%s7901_s7 + $0x134] ss:$8 sps:$4 sm:$0xff]  }
 0x501   :  { %5087 = vmatprep.subr.bf16.mxu1 %v5884_v3  ;;  %v5889_v6 = vld [vmem:[%s7903_s9 + $0x38] sm:$0xff]   ;;  %v3831_v3 = vld [vmem:[%s7902_s8] sm:$0x3] }
 0x503   :  { %4174 = vmatpush1.bf16.msra.mxu0 %v5793_v10  ;;  %v5835_v10 = vld [vmem:[%s7901_s7 + $0x130] ss:$8 sps:$4 sm:$0xff]  }
 0x504   :  { %4175 = vmatprep.subr.bf16.mxu0 %v5798_v18  ;;  %5088 = vmatpush3.bf16.msra.mxu1 %v5885_v8  ;;  %v5840_v18 = vld [vmem:[%s7901_s7 + $0x144] ss:$8 sps:$4 sm:$0xff]   ;;  %v3836_v8 = vrot.slane %v3831_v3, %v6685_v2  ;;  %v4780_v2 = vld [vmem:[%s7904_s10] ss:$0 sm:$0xff]  ;;  %s5924_s10 = smov [#allocation2]  }
 0x505   :  { %5089 = vmatprep.subr.bf16.mxu1 %v5886_v38  ;;  %s4444_s15 = sshll.u32 %s5924_s10, 4  ;;  %s4445_s15 = int_to_ptr.vmem [resolvable:$true] %s4444_s15 }
 0x506   :  { %s5898_s16 = scalar_lea.vmem %s4445_s15, 32  ;;  %p5903_p1 = scmp.lt.s32.totalorder %s4445_s15, %s4445_s15 }
 0x507   :  { %4176 = vmatpush1.bf16.msra.mxu0 %v5796_v27  ;;  %v5838_v27 = vld [vmem:[%s7901_s7 + $0x140] ss:$8 sps:$4 sm:$0xff]   ;;  %p5899_p0 = scmp.ne.s32.totalorder %s4445_s15, %s5898_s16  ;;  %p5904_p2 = scmp.lt.s32.totalorder %s5898_s16, %s5898_s16 }
 0x508   :  { %4177 = vmatprep.subr.bf16.mxu0 %v5801_v53  ;;  %v5843_v53 = vld [vmem:[%s7901_s7 + $0x154] ss:$8 sps:$4 sm:$0xff]   ;;  %5090 = vmatpush3.bf16.msra.mxu1 %v5887_v36 }
 0x509   :  { %5091 = vmatprep.subr.bf16.mxu1 %v5888_v4  ;;  %p5905_p3 = por %p5904_p2, %p5903_p1 }
 0x50b   :  { %4178 = vmatpush1.bf16.msra.mxu0 %v5799_v31  ;;  %v5841_v31 = vld [vmem:[%s7901_s7 + $0x150] ss:$8 sps:$4 sm:$0xff]   ;;  %p5906_p4 = pnand %p5905_p3, %p5899_p0 }
 0x50c   :  { %4179 = vmatprep.subr.bf16.mxu0 %v5804_v52  ;;  %v5846_v52 = vld [vmem:[%s7901_s7 + $0x164] ss:$8 sps:$4 sm:$0xff]   ;;  %5092 = vmatpush3.bf16.msra.mxu1 %v5889_v6 }
 0x50f   :  { %4180 = vmatpush1.bf16.msra.mxu0 %v5802_v45  ;;  %v5844_v45 = vld [vmem:[%s7901_s7 + $0x160] ss:$8 sps:$4 sm:$0xff]  }
 0x510   :  { %4181 = vmatprep.subr.bf16.mxu0 %v5807_v30  ;;  %v5849_v30 = vld [vmem:[%s7901_s7 + $0x174] ss:$8 sps:$4 sm:$0xff]  }
 0x513   :  { %4182 = vmatpush1.bf16.msra.mxu0 %v5805_v48  ;;  %v5847_v48 = vld [vmem:[%s7901_s7 + $0x170] ss:$8 sps:$4 sm:$0xff]  }
 0x514   :  { %4183 = vmatprep.subr.bf16.mxu0 %v5810_v32  ;;  %v5852_v32 = vld [vmem:[%s7901_s7 + $0x184] ss:$8 sps:$4 sm:$0xff]  }
 0x517   :  { %4184 = vmatpush1.bf16.msra.mxu0 %v5808_v59  ;;  %v5850_v59 = vld [vmem:[%s7901_s7 + $0x180] ss:$8 sps:$4 sm:$0xff]  }
 0x518   :  { %4185 = vmatprep.subr.bf16.mxu0 %v5813_v11  ;;  %v5855_v11 = vld [vmem:[%s7901_s7 + $0x194] ss:$8 sps:$4 sm:$0xff]  }
 0x51b   :  { %4186 = vmatpush1.bf16.msra.mxu0 %v5811_v1  ;;  %v5853_v1 = vld [vmem:[%s7901_s7 + $0x190] ss:$8 sps:$4 sm:$0xff]  }
 0x51c   :  { %4187 = vmatprep.subr.bf16.mxu0 %v5816_v12  ;;  %v5858_v12 = vld [vmem:[%s7901_s7 + $0x1a4] ss:$8 sps:$4 sm:$0xff]  }
 0x51f   :  { %4188 = vmatpush1.bf16.msra.mxu0 %v5814_v60  ;;  %v5856_v60 = vld [vmem:[%s7901_s7 + $0x1a0] ss:$8 sps:$4 sm:$0xff]  }
 0x520   :  { %4189 = vmatprep.subr.bf16.mxu0 %v5819_v26  ;;  %v5861_v26 = vld [vmem:[%s7901_s7 + $0x1b4] ss:$8 sps:$4 sm:$0xff]  }
 0x523   :  { %4190 = vmatpush1.bf16.msra.mxu0 %v5817_v19  ;;  %v5859_v19 = vld [vmem:[%s7901_s7 + $0x1b0] ss:$8 sps:$4 sm:$0xff]  }
 0x524   :  { %4191 = vmatprep.subr.bf16.mxu0 %v5822_v41  ;;  %v5864_v41 = vld [vmem:[%s7901_s7 + $0x1c4] ss:$8 sps:$4 sm:$0xff]  }
 0x527   :  { %4192 = vmatpush1.bf16.msra.mxu0 %v5820_v54  ;;  %v5862_v54 = vld [vmem:[%s7901_s7 + $0x1c0] ss:$8 sps:$4 sm:$0xff]  }
 0x528   :  { %4193 = vmatprep.subr.bf16.mxu0 %v5825_v46  ;;  %v5867_v46 = vld [vmem:[%s7901_s7 + $0x1d4] ss:$8 sps:$4 sm:$0xff]  }
 0x52b   :  { %4194 = vmatpush1.bf16.msra.mxu0 %v5823_v16  ;;  %v5865_v16 = vld [vmem:[%s7901_s7 + $0x1d0] ss:$8 sps:$4 sm:$0xff]  }
 0x52c   :  { %4204 = vmatprep.subr.bf16.mxu0 %v5828_v29  ;;  %v2142_v29 = vrot.slane %v7753_v22, %v6973_v20  ;;  %v5871_v20 = vld [vmem:[%s7901_s7 + $0x1f0] ss:$8 sps:$4 sm:$0xff]   ;;  %v3840_v22 = vrot.slane %v3831_v3, %v6970_v43 }
 0x5c1   :  { %v3588_v14 = vpop.f32.mrb[8].mxu0 }
 0x5c2   :  { %v5355_v35 = vadd.f32 %v3588_v14, %v2134_v25  ;;  %v7761_v63 = vpop.f32.mrb[28].mxu1  ;;  %v3590_v24 = vpop.f32.mrb[9].mxu0 }
 0x5c3   :  { %v5356_v62 = vadd.f32 %v3590_v24, %v2138_v17  ;;  %v3754_v56 = vpop.f32.mrb[29].mxu1  ;;  %v3592_v50 = vpop.f32.mrb[10].mxu0  ;;  %v5357_v55 = vadd.f32 %v7761_v63, %v2142_v29 }
 0x5c4   :  { %v3759_v58 = vmax.f32 %v5355_v35, 0.0  ;;  %v5358_v40 = vadd.f32 %v3754_v56, %v2146_v39  ;;  %v3756_v61 = vpop.f32.mrb[30].mxu1  ;;  %v3593_v15 = vpop.f32.mrb[11].mxu0 }
 0x5c5   :  { %v3760_v21 = vmax.f32 %v5356_v62, 0.0  ;;  %v3757_v57 = vpop.f32.mrb[31].mxu1  ;;  %v3761_v9 = vmax.f32 %v5357_v55, 0.0 }
 0x5c6   :  { %v3762_v5 = vmax.f32 %v5358_v40, 0.0  ;;  %v3763_v23 = vpack.c.bf16 %v3759_v58, %v3759_v58 }
 0x5c7   :  { %v3764_v37 = vpack.c.bf16 %v3760_v21, %v3760_v21  ;;  %v3765_v34 = vpack.c.bf16 %v3761_v9, %v3761_v9 }
 0x5c8   :  { %v3766_v33 = vpack.c.bf16 %v3762_v5, %v3762_v5 }
 0x5c9   :  { %4195 = vmatprep.mubr.bf16.mxu0 %v3764_v37 }
 0x5ca   :  { %4196 = vmatmul.mubr.bf16.vlgmr.msra.gmra.mrb[12].mxu0 %v3763_v23 }
 0x5cb   :  { %4205 = vmatpush1.bf16.msra.mxu0 %v5826_v42  ;;  %4236 = vmatprep.mubr.bf16.mxu0 %v3766_v33 }
 0x5cc   :  { %4206 = vmatprep.subr.bf16.mxu0 %v5831_v44 }
 0x5cf   :  { %4207 = vmatpush1.bf16.msra.mxu0 %v5829_v47 }
 0x5d0   :  { %4208 = vmatprep.subr.bf16.mxu0 %v5834_v49 }
 0x5d3   :  { %4209 = vmatpush1.bf16.msra.mxu0 %v5832_v13 }
 0x5d4   :  { %4210 = vmatprep.subr.bf16.mxu0 %v5837_v28 }
 0x5d7   :  { %4211 = vmatpush1.bf16.msra.mxu0 %v5835_v10 }
 0x5d8   :  { %4212 = vmatprep.subr.bf16.mxu0 %v5840_v18 }
 0x5db   :  { %4213 = vmatpush1.bf16.msra.mxu0 %v5838_v27 }
 0x5dc   :  { %4214 = vmatprep.subr.bf16.mxu0 %v5843_v53 }
 0x5df   :  { %4215 = vmatpush1.bf16.msra.mxu0 %v5841_v31 }
 0x5e0   :  { %4216 = vmatprep.subr.bf16.mxu0 %v5846_v52 }
 0x5e3   :  { %4217 = vmatpush1.bf16.msra.mxu0 %v5844_v45 }
 0x5e4   :  { %4218 = vmatprep.subr.bf16.mxu0 %v5849_v30 }
 0x5e7   :  { %4219 = vmatpush1.bf16.msra.mxu0 %v5847_v48 }
 0x5e8   :  { %4220 = vmatprep.subr.bf16.mxu0 %v5852_v32 }
 0x5eb   :  { %4221 = vmatpush1.bf16.msra.mxu0 %v5850_v59 }
 0x5ec   :  { %4222 = vmatprep.subr.bf16.mxu0 %v5855_v11 }
 0x5ef   :  { %4223 = vmatpush1.bf16.msra.mxu0 %v5853_v1 }
 0x5f0   :  { %4224 = vmatprep.subr.bf16.mxu0 %v5858_v12 }
 0x5f3   :  { %4225 = vmatpush1.bf16.msra.mxu0 %v5856_v60 }
 0x5f4   :  { %4226 = vmatprep.subr.bf16.mxu0 %v5861_v26 }
 0x5f7   :  { %4227 = vmatpush1.bf16.msra.mxu0 %v5859_v19 }
 0x5f8   :  { %4228 = vmatprep.subr.bf16.mxu0 %v5864_v41 }
 0x5fb   :  { %4229 = vmatpush1.bf16.msra.mxu0 %v5862_v54 }
 0x5fc   :  { %4230 = vmatprep.subr.bf16.mxu0 %v5867_v46 }
 0x5ff   :  { %4231 = vmatpush1.bf16.msra.mxu0 %v5865_v16 }
 0x600   :  { %4232 = vmatprep.subr.bf16.mxu0 %v5870_v0 }
 0x603   :  { %4233 = vmatpush1.bf16.msra.mxu0 %v5868_v51 }
 0x604   :  { %4234 = vmatprep.subr.bf16.mxu0 %v5873_v7 }
 0x607   :  { %4235 = vmatpush1.bf16.msra.mxu0 %v5871_v20 }
 0x60a   :  { %4237 = vmatmul.mubr.bf16.vlgmr.msra.gmra.mrb[12].mxu0 %v3765_v34 }
 0x6dd   :  { %v4238_v25 = vpop.f32.mrb[12].mxu0 }
 0x6de   :  { %v5359_v17 = vadd.f32 %v4238_v25, %v3836_v8  ;;  %v4240_v39 = vpop.f32.mrb[13].mxu0 }
 0x6df   :  { %v5360_v14 = vadd.f32 %v4240_v39, %v3840_v22  ;;  %v4242_v35 = vpop.f32.mrb[14].mxu0 }
 0x6e0   :  { %v4245_v63 = vmax.f32 %v5359_v17, 0.0  ;;  %v4243_v24 = vpop.f32.mrb[15].mxu0 }
 0x6e1   :  { %v4246_v62 = vmax.f32 %v5360_v14, 0.0 }
 0x6e2   :  { %v4247_v50 = vpack.c.bf16 %v4245_v63, %v4245_v63 }
 0x6e3   :  { %v4248_v56 = vpack.c.bf16 %v4246_v62, %v4246_v62 }
 0x6e5   :  { %4416 = vmatprep.mubr.bf16.mxu1 %v4248_v56 }
 0x6e6   :  { %4417 = vmatmul.mubr.bf16.vlgmr.msra.gmra.mrb[32].mxu1 %v4247_v50 }
 0x7b9   :  { %v5093_v58 = vpop.f32.mrb[32].mxu1 }
 0x7ba   :  { %v5094_v40 = vpop.f32.mrb[33].mxu1 }
 0x7bb   :  { %v5095_v61 = vadd.f32 %v5094_v40, %v5093_v58  ;;  %v5096_v43 = vpop.f32.mrb[34].mxu1 }
 0x7bc   :  { %v5097_v15 = vpop.f32.mrb[35].mxu1 }
 0x7bd   :  { %v4419_v21 = vadd.f32 %v5095_v61, %v4780_v2 }
 0x7bf   :  { %v4425_v57 = vsel %vm4424_vm2, %v4419_v21, -inf }
 0x7c0   :  { %4426 = vmax.xlane.f32.xlu0 %v4425_v57 }
 0x84d   :  { %v4427_v5 = vpop.xlane.xlu0 %4426 }
 0x84e   :  { %v4428_v37 = vsub.f32 %v4419_v21, %v4427_v5 }
 0x850   :  { %v4429_v42 = vmul.f32 1.442695, %v4428_v37 }
 0x852   :  { %5892 = vpow2.f32 %v4429_v42 }
 0x85c   :  { %v5893_v23 = vpop.eup %5892 }
 0x85d   :  { %v4431_v44 = vsel %vm4424_vm2, %v5893_v23, 0.0 }
 0x85e   :  { %4432 = vadd.xlane.f32.xlu0 %v4431_v44 }
 0x8eb   :  { %v4433_v33 = vpop.xlane.xlu0 %4432 }
 0x8ec   :  { %5894 = vlog2.f32 %v4433_v33 }
 0x8f6   :  { %v5895_v47 = vpop.eup %5894 }
 0x8f7   :  { %v4435_v49 = vmul.f32 0.6931472, %v5895_v47 }
 0x8f9   :  { %v4436_v13 = vsub.f32 %v4428_v37, %v4435_v49 }
 0x8fb   :  { %4437 = vst.msk [vmem:[#allocation2] sm:$0x3] %vm4424_vm2, %v4436_v13 }
 0x8fc   :  { %5909 = shalt.err (!%p5906_p4)
}
 0x8fd   :  { %s5910_s19 = scalar_lea.hbm %s7905_s11, 32 }
 0x8fe   :  { %p5911_p5 = scmp.ne.s32.totalorder %s7905_s11, %s5910_s19  ;;  %p5914_p6 = scmp.lt.u32.totalorder %s5910_s19, %s7905_s11 }
 0x900   :  { %p5916_p7 = pnand %p5914_p6, %p5911_p5 }
 0x902   :  { %5919 = shalt.err (!%p5916_p7)
}
 0x903   :  { %4447 = dma.vmem_to_hbm [thread:$0]  %s4445_s15, 32, %s7905_s11, [#allocation3]  }
 0x904   :  { %5920 = dma.done.wait [#allocation3], 32  }
 0x905   :  { %5921 = vsyncadd [#allocation3], 4294967264 }
 0x906   :  { %4451 = vsyncpa [#allocation3], 1 }

</bundles_post_ra>
